<compile_context>
chip_gen: v7x
topology: tpu7x:2x2x1
jax: 0.10.0
libtpu: 0.0.40
codegen_flags: <defaults>
</compile_context>

<pallas_src>
import math
import functools

import jax
import jax.numpy as jnp
from jax import lax
from jax.experimental import pallas as pl
from jax.experimental.pallas import tpu as pltpu


def _attention_kernel(x_ref, qkvw_ref, qkvb_ref, qnw_ref, knw_ref,
                      pw_ref, pb_ref, o_ref, attn_ref, *,
                      num_heads, seq_len, eps):
    """One grid step == Bt batch elements (rows = Bt * seq_len tokens).

    x_ref    : (rows, C)   tokens (batch*seq flattened in the wrapper)
    qkvw_ref : (C, 3C)     qkv weight, transposed (matmul dtype)
    qkvb_ref : (1, 3C)     qkv bias (f32)
    qnw_ref  : (1, C)      RMSNorm weight for Q (f32)
    knw_ref  : (1, C)      RMSNorm weight for K (f32)
    pw_ref   : (C, C)      output projection weight, transposed (matmul dtype)
    pb_ref   : (1, C)      output projection bias (f32)
    o_ref    : (rows, C)   output
    attn_ref : (rows, C)   VMEM scratch holding all heads' attention outputs
    """
    rows, C = x_ref.shape
    L = seq_len
    Bt = rows // L
    head_dim = C // num_heads
    scale = 1.0 / math.sqrt(head_dim)
    mxu_dtype = attn_ref.dtype          # MXU operand dtype

    # ---- qkv = Linear(dim, 3*dim): one (rows, C) @ (C, 3C) MXU matmul -------
    x = x_ref[...].astype(mxu_dtype)
    qkv = jnp.dot(x, qkvw_ref[...], preferred_element_type=jnp.float32)
    qkv = qkv + qkvb_ref[...].astype(jnp.float32)

    q = qkv[:, 0 * C:1 * C]
    k = qkv[:, 1 * C:2 * C]
    v = qkv[:, 2 * C:3 * C]

    # ---- full-dim RMSNorm on Q/K (f32 VPU/EUP math) --------------------------
    # 1/sqrt(head_dim) folded into the (1, C) q-norm row: O(C) work instead of
    # O(H * L^2) score-matrix scaling.
    q_w = qnw_ref[...].astype(jnp.float32) * scale
    k_w = knw_ref[...].astype(jnp.float32)
    q = q * lax.rsqrt(jnp.mean(q * q, axis=-1, keepdims=True) + eps) * q_w
    k = k * lax.rsqrt(jnp.mean(k * k, axis=-1, keepdims=True) + eps) * k_w

    q = q.astype(mxu_dtype)
    k = k.astype(mxu_dtype)
    v = v.astype(mxu_dtype)

    # ---- per (batch-element, head) attention -> scratch at lane offset ------
    # Static Python loops: Bt and num_heads are small compile-time constants
    # and head_dim may be < 128, so static lane slices stay aligned and cheap
    # (lax.fori_loop would force dynamic lane offsets here).
    # TODO(synk): for production L (>= ~1k) add a query-tile grid axis with
    # flash-style online softmax over KV tiles (VMEM cliff ~L>=1k on v7x,
    # ~L>=2k on v5e/v6e for C~1k bf16).
    for b0 in range(Bt):
        rs = slice(b0 * L, (b0 + 1) * L)
        qb, kb, vb = q[rs], k[rs], v[rs]
        for h in range(num_heads):
            cs = slice(h * head_dim, (h + 1) * head_dim)
            qh, kh, vh = qb[:, cs], kb[:, cs], vb[:, cs]

            # q . k^T contracting the last dims -> no explicit kh.T (XLU).
            s = lax.dot_general(qh, kh, (((1,), (1,)), ((), ())),
                                preferred_element_type=jnp.float32)    # (L, L)
            s = s - jnp.max(s, axis=-1, keepdims=True)
            # NOTE: f32 exp; on v6e/v7x a bf16 exp (or exp2 with log2(e) folded
            # into q_w) would halve EUP cost once L is large enough for the
            # EUP slot to bind -- numerics tradeoff, not taken here.
            p = jnp.exp(s)
            row_sum = jnp.sum(p, axis=-1, keepdims=True)               # (L, 1)

            # Unnormalized p @ v; normalize the small (L, Dh) result with an
            # EUP approx reciprocal + one Newton step (full f32 accuracy)
            # instead of dividing the whole (L, L) tile.
            oh = jnp.dot(p.astype(mxu_dtype), vh,
                         preferred_element_type=jnp.float32)           # (L, Dh)
            inv = pl.reciprocal(row_sum, approx=True)
            inv = inv * (2.0 - row_sum * inv)
            attn_ref[rs, cs] = (oh * inv).astype(mxu_dtype)

    # ---- single output projection: full K=C MXU contraction -----------------
    out = jnp.dot(attn_ref[...], pw_ref[...],
                  preferred_element_type=jnp.float32)                  # (rows,C)
    o_ref[...] = (out + pb_ref[...].astype(jnp.float32)).astype(o_ref.dtype)


def _pick_batch_tile(B, L, target_rows=256):
    """Largest divisor of B with Bt * L <= target_rows (at least 1)."""
    bt = 1
    for cand in range(1, B + 1):
        if B % cand == 0 and cand * L <= max(target_rows, L):
            bt = cand
    return bt


def _pick_vmem_limit():
    """Generation-dependent scoped-VMEM budget (~25% headroom below physical)."""
    try:
        cap = pltpu.get_tpu_info().vmem_capacity_bytes
    except Exception:
        cap = 64 * 1024 * 1024          # conservative fallback (v7x physical)
    return int(cap * 3 // 4)


def attention_forward(x, params, *, num_heads, eps=1e-6, matmul_dtype=None):
    """Pallas implementation of Attention.forward.  x: (B, L, C).

    matmul_dtype: dtype of the MXU operands (weights, activations, softmax
      probabilities).  None -> x.dtype (exact for f32 inputs).  Pass
      jnp.bfloat16 for ~3-4x higher MXU throughput on v5e/v6e/v7x at a small
      numerics cost (accumulation and norm/softmax math stay f32).
    """
    B, L, C = x.shape
    assert C % num_heads == 0
    mxu_dtype = jnp.dtype(matmul_dtype) if matmul_dtype is not None else x.dtype

    Bt = _pick_batch_tile(B, L)
    rows = Bt * L
    # (8, 128) block constraint on the flattened (B*L, C) view.
    assert rows % 8 == 0 or rows == B * L, "rows per step must be sublane-aligned"

    qkv_w_t = params["qkv_w"].T.astype(mxu_dtype)        # (C, 3C)
    proj_w_t = params["proj_w"].T.astype(mxu_dtype)      # (C, C)
    qkv_b = params["qkv_b"].reshape(1, 3 * C).astype(jnp.float32)
    qn_w = params["q_norm_w"].reshape(1, C).astype(jnp.float32)
    kn_w = params["k_norm_w"].reshape(1, C).astype(jnp.float32)
    proj_b = params["proj_b"].reshape(1, C).astype(jnp.float32)

    x2d = x.reshape(B * L, C)
    kernel = functools.partial(_attention_kernel, num_heads=num_heads,
                               seq_len=L, eps=eps)

    def build(single_buffer_weights):
        def const_spec(shape):
            index_map = lambda i: (0,) * len(shape)
            if single_buffer_weights:
                # Grid-invariant blocks are only fetched once; single-buffering
                # halves their VMEM footprint vs. the default double buffer.
                return pl.BlockSpec(shape, index_map,
                                    pipeline_mode=pl.Buffered(buffer_count=1))
            return pl.BlockSpec(shape, index_map)

        return pl.pallas_call(
            kernel,
            out_shape=jax.ShapeDtypeStruct((B * L, C), x.dtype),
            grid=(B // Bt,),
            in_specs=[
                pl.BlockSpec((rows, C), lambda i: (i, 0)),   # x (flattened rows)
                const_spec((C, 3 * C)),                      # qkv_w_t
                const_spec((1, 3 * C)),                      # qkv_b
                const_spec((1, C)),                          # q_norm weight
                const_spec((1, C)),                          # k_norm weight
                const_spec((C, C)),                          # proj_w_t
                const_spec((1, C)),                          # proj_b
            ],
            out_specs=pl.BlockSpec((rows, C), lambda i: (i, 0)),
            scratch_shapes=[pltpu.VMEM((rows, C), mxu_dtype)],
            compiler_params=pltpu.CompilerParams(
                # Row-tile axis is independent -> parallel (megacore on v7x).
                dimension_semantics=("parallel",),
                vmem_limit_bytes=_pick_vmem_limit(),
            ),
        )

    # TODO(synk): hide the cold-start weight DMA for tiny B (cross-call weight
    # prefetch, or a 3C-column grid axis on the qkv matmul).
    try:
        out2d = build(True)(x2d, qkv_w_t, qkv_b, qn_w, kn_w, proj_w_t, proj_b)
    except Exception:
        # pl.Buffered(1) on pallas_call BlockSpecs is a newer feature; fall
        # back to default double buffering if this toolchain rejects it.
        out2d = build(False)(x2d, qkv_w_t, qkv_b, qn_w, kn_w, proj_w_t, proj_b)

    return out2d.reshape(B, L, C)


def attention_reference(x, params, *, num_heads, eps=1e-6):
    """Pure-JAX reference mirroring the PyTorch module."""
    B, L, C = x.shape
    head_dim = C // num_heads
    qkv = x @ params["qkv_w"].T + params["qkv_b"]
    q, k, v = jnp.split(qkv, 3, axis=-1)
    q = q * lax.rsqrt(jnp.mean(q * q, -1, keepdims=True) + eps) * params["q_norm_w"]
    k = k * lax.rsqrt(jnp.mean(k * k, -1, keepdims=True) + eps) * params["k_norm_w"]

    def split_heads(t):
        return t.reshape(B, L, num_heads, head_dim).transpose(0, 2, 1, 3)

    qh, kh, vh = map(split_heads, (q, k, v))
    s = jnp.einsum("bhqd,bhkd->bhqk", qh, kh) / math.sqrt(head_dim)
    p = jax.nn.softmax(s, axis=-1)
    o = jnp.einsum("bhqk,bhkd->bhqd", p, vh)
    o = o.transpose(0, 2, 1, 3).reshape(B, L, C)
    return o @ params["proj_w"].T + params["proj_b"]


def init_params(key, dim):
    """Deterministic parameter init (shapes match the nn.Module __init__)."""
    k1, k2, k3, k4 = jax.random.split(key, 4)
    s = 1.0 / math.sqrt(dim)
    return {
        "qkv_w": jax.random.normal(k1, (3 * dim, dim), jnp.float32) * s,  # nn.Linear(dim, 3*dim)
        "qkv_b": jax.random.normal(k2, (3 * dim,), jnp.float32) * s,
        "proj_w": jax.random.normal(k3, (dim, dim), jnp.float32) * s,     # nn.Linear(dim, dim)
        "proj_b": jax.random.normal(k4, (dim,), jnp.float32) * s,
        "q_norm_w": jnp.ones((dim,), jnp.float32),                        # nn.RMSNorm(dim)
        "k_norm_w": jnp.ones((dim,), jnp.float32),
    }


if __name__ == "__main__":
    # Small but lane-dense demo shapes: C multiple of 128, L multiple of 8.
    B, L, C = 2, 16, 128
    num_heads = 4

    key = jax.random.PRNGKey(0)
    kx, kp = jax.random.split(key)
    x = jax.random.normal(kx, (B, L, C), jnp.float32)
    params = init_params(kp, C)

    # Default path keeps f32 MXU operands for exact numerics; pass
    # matmul_dtype=jnp.bfloat16 for the high-throughput bf16 MXU path.
    out = jax.block_until_ready(attention_forward(x, params, num_heads=num_heads))

    ref = attention_reference(x, params, num_heads=num_heads)
    assert out.shape == (B, L, C)
    # 1e-3 leaves headroom for the EUP approx-reciprocal path and f32
    # reassociation; typical max abs error is well below 1e-4.
    assert jnp.allclose(out, ref, atol=1e-3, rtol=1e-3), (
        f"max abs err = {jnp.max(jnp.abs(out - ref))}")

    print("KERNEL_OK")
</pallas_src>

<mosaic_0001>
module attributes {stable_mosaic.version = 11 : i64} {
  func.func @_attention_kernel(%arg0: i32, %arg1: memref<32x128xf32, #tpu.memory_space<vmem>>, %arg2: memref<128x384xf32, #tpu.memory_space<vmem>>, %arg3: memref<1x384xf32, #tpu.memory_space<vmem>>, %arg4: memref<1x128xf32, #tpu.memory_space<vmem>>, %arg5: memref<1x128xf32, #tpu.memory_space<vmem>>, %arg6: memref<128x128xf32, #tpu.memory_space<vmem>>, %arg7: memref<1x128xf32, #tpu.memory_space<vmem>>, %arg8: memref<32x128xf32, #tpu.memory_space<vmem>>, %arg9: memref<32x128xf32, #tpu.memory_space<vmem>>) attributes {dimension_semantics = [#tpu.dimension_semantics<parallel>], iteration_bounds = array<i64: 1>, scalar_prefetch = 0 : i64, scratch_operands = 1 : i64, tpu.core_type = #tpu.core_type<tc>, window_params = [{transform_indices = @transform_0, window_bounds = array<i64: 32, 128>}, {pipeline_mode = #tpu.pipeline_mode<synchronous>, transform_indices = @transform_1, window_bounds = array<i64: 128, 384>}, {pipeline_mode = #tpu.pipeline_mode<synchronous>, transform_indices = @transform_2, window_bounds = array<i64: 1, 384>}, {pipeline_mode = #tpu.pipeline_mode<synchronous>, transform_indices = @transform_3, window_bounds = array<i64: 1, 128>}, {pipeline_mode = #tpu.pipeline_mode<synchronous>, transform_indices = @transform_4, window_bounds = array<i64: 1, 128>}, {pipeline_mode = #tpu.pipeline_mode<synchronous>, transform_indices = @transform_5, window_bounds = array<i64: 128, 128>}, {pipeline_mode = #tpu.pipeline_mode<synchronous>, transform_indices = @transform_6, window_bounds = array<i64: 1, 128>}, {transform_indices = @transform_7, window_bounds = array<i64: 32, 128>}]} {
    %c0 = arith.constant 0 : index
    %c0_0 = arith.constant 0 : index
    %0 = vector.load %arg1[%c0, %c0_0] : memref<32x128xf32, #tpu.memory_space<vmem>>, vector<32x128xf32>
    %c0_1 = arith.constant 0 : index
    %c0_2 = arith.constant 0 : index
    %1 = vector.load %arg2[%c0_1, %c0_2] : memref<128x384xf32, #tpu.memory_space<vmem>>, vector<128x384xf32>
    %cst = arith.constant dense<0.000000e+00> : vector<32x384xf32>
    %2 = tpu.matmul %0, %1, %cst {dimension_numbers = #tpu.dot_dimension_numbers<[1], [0], [0], [1], [0, 0, 1, 1], [], []>} : vector<32x128xf32>, vector<128x384xf32>, vector<32x384xf32> -> vector<32x384xf32>
    %c0_3 = arith.constant 0 : index
    %c0_4 = arith.constant 0 : index
    %3 = vector.load %arg3[%c0_3, %c0_4] : memref<1x384xf32, #tpu.memory_space<vmem>>, vector<1x384xf32>
    %4 = vector.broadcast %3 : vector<1x384xf32> to vector<32x384xf32>
    %5 = arith.addf %2, %4 : vector<32x384xf32>
    %6 = vector.extract_strided_slice %5 {offsets = [0, 0], sizes = [32, 128], strides = [1, 1]} : vector<32x384xf32> to vector<32x128xf32>
    %7 = vector.extract_strided_slice %5 {offsets = [0, 128], sizes = [32, 128], strides = [1, 1]} : vector<32x384xf32> to vector<32x128xf32>
    %8 = vector.extract_strided_slice %5 {offsets = [0, 256], sizes = [32, 128], strides = [1, 1]} : vector<32x384xf32> to vector<32x128xf32>
    %c0_5 = arith.constant 0 : index
    %c0_6 = arith.constant 0 : index
    %9 = vector.load %arg4[%c0_5, %c0_6] : memref<1x128xf32, #tpu.memory_space<vmem>>, vector<1x128xf32>
    %cst_7 = arith.constant 0.176776692 : f32
    %10 = vector.broadcast %cst_7 : f32 to vector<1x128xf32>
    %11 = arith.mulf %9, %10 : vector<1x128xf32>
    %c0_8 = arith.constant 0 : index
    %c0_9 = arith.constant 0 : index
    %12 = vector.load %arg5[%c0_8, %c0_9] : memref<1x128xf32, #tpu.memory_space<vmem>>, vector<1x128xf32>
    %13 = arith.mulf %6, %6 : vector<32x128xf32>
    %cst_10 = arith.constant dense<0.000000e+00> : vector<32xf32>
    %14 = vector.multi_reduction <add>, %13, %cst_10 [1] : vector<32x128xf32> to vector<32xf32>
    %15 = vector.shape_cast %14 : vector<32xf32> to vector<32x1xf32>
    %cst_11 = arith.constant 1.280000e+02 : f32
    %16 = vector.broadcast %cst_11 : f32 to vector<32x1xf32>
    %17 = arith.divf %15, %16 : vector<32x1xf32>
    %cst_12 = arith.constant 9.99999997E-7 : f32
    %18 = vector.broadcast %cst_12 : f32 to vector<32x1xf32>
    %19 = arith.addf %17, %18 : vector<32x1xf32>
    %20 = math.rsqrt %19 : vector<32x1xf32>
    %21 = vector.broadcast %20 : vector<32x1xf32> to vector<32x128xf32>
    %22 = arith.mulf %6, %21 : vector<32x128xf32>
    %23 = vector.broadcast %11 : vector<1x128xf32> to vector<32x128xf32>
    %24 = arith.mulf %22, %23 : vector<32x128xf32>
    %25 = arith.mulf %7, %7 : vector<32x128xf32>
    %cst_13 = arith.constant dense<0.000000e+00> : vector<32xf32>
    %26 = vector.multi_reduction <add>, %25, %cst_13 [1] : vector<32x128xf32> to vector<32xf32>
    %27 = vector.shape_cast %26 : vector<32xf32> to vector<32x1xf32>
    %cst_14 = arith.constant 1.280000e+02 : f32
    %28 = vector.broadcast %cst_14 : f32 to vector<32x1xf32>
    %29 = arith.divf %27, %28 : vector<32x1xf32>
    %cst_15 = arith.constant 9.99999997E-7 : f32
    %30 = vector.broadcast %cst_15 : f32 to vector<32x1xf32>
    %31 = arith.addf %29, %30 : vector<32x1xf32>
    %32 = math.rsqrt %31 : vector<32x1xf32>
    %33 = vector.broadcast %32 : vector<32x1xf32> to vector<32x128xf32>
    %34 = arith.mulf %7, %33 : vector<32x128xf32>
    %35 = vector.broadcast %12 : vector<1x128xf32> to vector<32x128xf32>
    %36 = arith.mulf %34, %35 : vector<32x128xf32>
    %37 = vector.extract_strided_slice %24 {offsets = [0, 0], sizes = [16, 128], strides = [1, 1]} : vector<32x128xf32> to vector<16x128xf32>
    %38 = vector.extract_strided_slice %36 {offsets = [0, 0], sizes = [16, 128], strides = [1, 1]} : vector<32x128xf32> to vector<16x128xf32>
    %39 = vector.extract_strided_slice %8 {offsets = [0, 0], sizes = [16, 128], strides = [1, 1]} : vector<32x128xf32> to vector<16x128xf32>
    %40 = vector.extract_strided_slice %37 {offsets = [0, 0], sizes = [16, 32], strides = [1, 1]} : vector<16x128xf32> to vector<16x32xf32>
    %41 = vector.extract_strided_slice %38 {offsets = [0, 0], sizes = [16, 32], strides = [1, 1]} : vector<16x128xf32> to vector<16x32xf32>
    %42 = vector.extract_strided_slice %39 {offsets = [0, 0], sizes = [16, 32], strides = [1, 1]} : vector<16x128xf32> to vector<16x32xf32>
    %cst_16 = arith.constant dense<0.000000e+00> : vector<16x16xf32>
    %43 = tpu.matmul %40, %41, %cst_16 {dimension_numbers = #tpu.dot_dimension_numbers<[1], [1], [0], [0], [0, 0, 1, 0], [], []>} : vector<16x32xf32>, vector<16x32xf32>, vector<16x16xf32> -> vector<16x16xf32>
    %cst_17 = arith.constant dense<0xFF800000> : vector<16xf32>
    %44 = vector.multi_reduction <maximumf>, %43, %cst_17 [1] : vector<16x16xf32> to vector<16xf32>
    %45 = vector.shape_cast %44 : vector<16xf32> to vector<16x1xf32>
    %46 = vector.broadcast %45 : vector<16x1xf32> to vector<16x16xf32>
    %47 = arith.subf %43, %46 : vector<16x16xf32>
    %48 = math.exp %47 : vector<16x16xf32>
    %cst_18 = arith.constant dense<0.000000e+00> : vector<16xf32>
    %49 = vector.multi_reduction <add>, %48, %cst_18 [1] : vector<16x16xf32> to vector<16xf32>
    %50 = vector.shape_cast %49 : vector<16xf32> to vector<16x1xf32>
    %cst_19 = arith.constant dense<0.000000e+00> : vector<16x32xf32>
    %51 = tpu.matmul %48, %42, %cst_19 {dimension_numbers = #tpu.dot_dimension_numbers<[1], [0], [0], [1], [0, 0, 1, 1], [], []>} : vector<16x16xf32>, vector<16x32xf32>, vector<16x32xf32> -> vector<16x32xf32>
    %52 = tpu.reciprocal %50 {approx = true} : vector<16x1xf32> -> vector<16x1xf32>
    %53 = arith.mulf %50, %52 : vector<16x1xf32>
    %cst_20 = arith.constant 2.000000e+00 : f32
    %54 = vector.broadcast %cst_20 : f32 to vector<16x1xf32>
    %55 = arith.subf %54, %53 : vector<16x1xf32>
    %56 = arith.mulf %52, %55 : vector<16x1xf32>
    %57 = vector.broadcast %56 : vector<16x1xf32> to vector<16x32xf32>
    %58 = arith.mulf %51, %57 : vector<16x32xf32>
    %c0_21 = arith.constant 0 : index
    %c0_22 = arith.constant 0 : index
    %59 = vector.load %arg9[%c0_21, %c0_22] : memref<32x128xf32, #tpu.memory_space<vmem>>, vector<16x32xf32>
    tpu.vector_store %arg9[%c0_21, %c0_22], %58 {strides = array<i32>} : memref<32x128xf32, #tpu.memory_space<vmem>>, vector<16x32xf32>,
    %60 = vector.extract_strided_slice %37 {offsets = [0, 32], sizes = [16, 32], strides = [1, 1]} : vector<16x128xf32> to vector<16x32xf32>
    %61 = vector.extract_strided_slice %38 {offsets = [0, 32], sizes = [16, 32], strides = [1, 1]} : vector<16x128xf32> to vector<16x32xf32>
    %62 = vector.extract_strided_slice %39 {offsets = [0, 32], sizes = [16, 32], strides = [1, 1]} : vector<16x128xf32> to vector<16x32xf32>
    %cst_23 = arith.constant dense<0.000000e+00> : vector<16x16xf32>
    %63 = tpu.matmul %60, %61, %cst_23 {dimension_numbers = #tpu.dot_dimension_numbers<[1], [1], [0], [0], [0, 0, 1, 0], [], []>} : vector<16x32xf32>, vector<16x32xf32>, vector<16x16xf32> -> vector<16x16xf32>
    %cst_24 = arith.constant dense<0xFF800000> : vector<16xf32>
    %64 = vector.multi_reduction <maximumf>, %63, %cst_24 [1] : vector<16x16xf32> to vector<16xf32>
    %65 = vector.shape_cast %64 : vector<16xf32> to vector<16x1xf32>
    %66 = vector.broadcast %65 : vector<16x1xf32> to vector<16x16xf32>
    %67 = arith.subf %63, %66 : vector<16x16xf32>
    %68 = math.exp %67 : vector<16x16xf32>
    %cst_25 = arith.constant dense<0.000000e+00> : vector<16xf32>
    %69 = vector.multi_reduction <add>, %68, %cst_25 [1] : vector<16x16xf32> to vector<16xf32>
    %70 = vector.shape_cast %69 : vector<16xf32> to vector<16x1xf32>
    %cst_26 = arith.constant dense<0.000000e+00> : vector<16x32xf32>
    %71 = tpu.matmul %68, %62, %cst_26 {dimension_numbers = #tpu.dot_dimension_numbers<[1], [0], [0], [1], [0, 0, 1, 1], [], []>} : vector<16x16xf32>, vector<16x32xf32>, vector<16x32xf32> -> vector<16x32xf32>
    %72 = tpu.reciprocal %70 {approx = true} : vector<16x1xf32> -> vector<16x1xf32>
    %73 = arith.mulf %70, %72 : vector<16x1xf32>
    %cst_27 = arith.constant 2.000000e+00 : f32
    %74 = vector.broadcast %cst_27 : f32 to vector<16x1xf32>
    %75 = arith.subf %74, %73 : vector<16x1xf32>
    %76 = arith.mulf %72, %75 : vector<16x1xf32>
    %77 = vector.broadcast %76 : vector<16x1xf32> to vector<16x32xf32>
    %78 = arith.mulf %71, %77 : vector<16x32xf32>
    %c0_28 = arith.constant 0 : index
    %c32 = arith.constant 32 : index
    %79 = vector.load %arg9[%c0_28, %c32] : memref<32x128xf32, #tpu.memory_space<vmem>>, vector<16x32xf32>
    tpu.vector_store %arg9[%c0_28, %c32], %78 {strides = array<i32>} : memref<32x128xf32, #tpu.memory_space<vmem>>, vector<16x32xf32>,
    %80 = vector.extract_strided_slice %37 {offsets = [0, 64], sizes = [16, 32], strides = [1, 1]} : vector<16x128xf32> to vector<16x32xf32>
    %81 = vector.extract_strided_slice %38 {offsets = [0, 64], sizes = [16, 32], strides = [1, 1]} : vector<16x128xf32> to vector<16x32xf32>
    %82 = vector.extract_strided_slice %39 {offsets = [0, 64], sizes = [16, 32], strides = [1, 1]} : vector<16x128xf32> to vector<16x32xf32>
    %cst_29 = arith.constant dense<0.000000e+00> : vector<16x16xf32>
    %83 = tpu.matmul %80, %81, %cst_29 {dimension_numbers = #tpu.dot_dimension_numbers<[1], [1], [0], [0], [0, 0, 1, 0], [], []>} : vector<16x32xf32>, vector<16x32xf32>, vector<16x16xf32> -> vector<16x16xf32>
    %cst_30 = arith.constant dense<0xFF800000> : vector<16xf32>
    %84 = vector.multi_reduction <maximumf>, %83, %cst_30 [1] : vector<16x16xf32> to vector<16xf32>
    %85 = vector.shape_cast %84 : vector<16xf32> to vector<16x1xf32>
    %86 = vector.broadcast %85 : vector<16x1xf32> to vector<16x16xf32>
    %87 = arith.subf %83, %86 : vector<16x16xf32>
    %88 = math.exp %87 : vector<16x16xf32>
    %cst_31 = arith.constant dense<0.000000e+00> : vector<16xf32>
    %89 = vector.multi_reduction <add>, %88, %cst_31 [1] : vector<16x16xf32> to vector<16xf32>
    %90 = vector.shape_cast %89 : vector<16xf32> to vector<16x1xf32>
    %cst_32 = arith.constant dense<0.000000e+00> : vector<16x32xf32>
    %91 = tpu.matmul %88, %82, %cst_32 {dimension_numbers = #tpu.dot_dimension_numbers<[1], [0], [0], [1], [0, 0, 1, 1], [], []>} : vector<16x16xf32>, vector<16x32xf32>, vector<16x32xf32> -> vector<16x32xf32>
    %92 = tpu.reciprocal %90 {approx = true} : vector<16x1xf32> -> vector<16x1xf32>
    %93 = arith.mulf %90, %92 : vector<16x1xf32>
    %cst_33 = arith.constant 2.000000e+00 : f32
    %94 = vector.broadcast %cst_33 : f32 to vector<16x1xf32>
    %95 = arith.subf %94, %93 : vector<16x1xf32>
    %96 = arith.mulf %92, %95 : vector<16x1xf32>
    %97 = vector.broadcast %96 : vector<16x1xf32> to vector<16x32xf32>
    %98 = arith.mulf %91, %97 : vector<16x32xf32>
    %c0_34 = arith.constant 0 : index
    %c64 = arith.constant 64 : index
    %99 = vector.load %arg9[%c0_34, %c64] : memref<32x128xf32, #tpu.memory_space<vmem>>, vector<16x32xf32>
    tpu.vector_store %arg9[%c0_34, %c64], %98 {strides = array<i32>} : memref<32x128xf32, #tpu.memory_space<vmem>>, vector<16x32xf32>,
    %100 = vector.extract_strided_slice %37 {offsets = [0, 96], sizes = [16, 32], strides = [1, 1]} : vector<16x128xf32> to vector<16x32xf32>
    %101 = vector.extract_strided_slice %38 {offsets = [0, 96], sizes = [16, 32], strides = [1, 1]} : vector<16x128xf32> to vector<16x32xf32>
    %102 = vector.extract_strided_slice %39 {offsets = [0, 96], sizes = [16, 32], strides = [1, 1]} : vector<16x128xf32> to vector<16x32xf32>
    %cst_35 = arith.constant dense<0.000000e+00> : vector<16x16xf32>
    %103 = tpu.matmul %100, %101, %cst_35 {dimension_numbers = #tpu.dot_dimension_numbers<[1], [1], [0], [0], [0, 0, 1, 0], [], []>} : vector<16x32xf32>, vector<16x32xf32>, vector<16x16xf32> -> vector<16x16xf32>
    %cst_36 = arith.constant dense<0xFF800000> : vector<16xf32>
    %104 = vector.multi_reduction <maximumf>, %103, %cst_36 [1] : vector<16x16xf32> to vector<16xf32>
    %105 = vector.shape_cast %104 : vector<16xf32> to vector<16x1xf32>
    %106 = vector.broadcast %105 : vector<16x1xf32> to vector<16x16xf32>
    %107 = arith.subf %103, %106 : vector<16x16xf32>
    %108 = math.exp %107 : vector<16x16xf32>
    %cst_37 = arith.constant dense<0.000000e+00> : vector<16xf32>
    %109 = vector.multi_reduction <add>, %108, %cst_37 [1] : vector<16x16xf32> to vector<16xf32>
    %110 = vector.shape_cast %109 : vector<16xf32> to vector<16x1xf32>
    %cst_38 = arith.constant dense<0.000000e+00> : vector<16x32xf32>
    %111 = tpu.matmul %108, %102, %cst_38 {dimension_numbers = #tpu.dot_dimension_numbers<[1], [0], [0], [1], [0, 0, 1, 1], [], []>} : vector<16x16xf32>, vector<16x32xf32>, vector<16x32xf32> -> vector<16x32xf32>
    %112 = tpu.reciprocal %110 {approx = true} : vector<16x1xf32> -> vector<16x1xf32>
    %113 = arith.mulf %110, %112 : vector<16x1xf32>
    %cst_39 = arith.constant 2.000000e+00 : f32
    %114 = vector.broadcast %cst_39 : f32 to vector<16x1xf32>
    %115 = arith.subf %114, %113 : vector<16x1xf32>
    %116 = arith.mulf %112, %115 : vector<16x1xf32>
    %117 = vector.broadcast %116 : vector<16x1xf32> to vector<16x32xf32>
    %118 = arith.mulf %111, %117 : vector<16x32xf32>
    %c0_40 = arith.constant 0 : index
    %c96 = arith.constant 96 : index
    %119 = vector.load %arg9[%c0_40, %c96] : memref<32x128xf32, #tpu.memory_space<vmem>>, vector<16x32xf32>
    tpu.vector_store %arg9[%c0_40, %c96], %118 {strides = array<i32>} : memref<32x128xf32, #tpu.memory_space<vmem>>, vector<16x32xf32>,
    %120 = vector.extract_strided_slice %24 {offsets = [16, 0], sizes = [16, 128], strides = [1, 1]} : vector<32x128xf32> to vector<16x128xf32>
    %121 = vector.extract_strided_slice %36 {offsets = [16, 0], sizes = [16, 128], strides = [1, 1]} : vector<32x128xf32> to vector<16x128xf32>
    %122 = vector.extract_strided_slice %8 {offsets = [16, 0], sizes = [16, 128], strides = [1, 1]} : vector<32x128xf32> to vector<16x128xf32>
    %123 = vector.extract_strided_slice %120 {offsets = [0, 0], sizes = [16, 32], strides = [1, 1]} : vector<16x128xf32> to vector<16x32xf32>
    %124 = vector.extract_strided_slice %121 {offsets = [0, 0], sizes = [16, 32], strides = [1, 1]} : vector<16x128xf32> to vector<16x32xf32>
    %125 = vector.extract_strided_slice %122 {offsets = [0, 0], sizes = [16, 32], strides = [1, 1]} : vector<16x128xf32> to vector<16x32xf32>
    %cst_41 = arith.constant dense<0.000000e+00> : vector<16x16xf32>
    %126 = tpu.matmul %123, %124, %cst_41 {dimension_numbers = #tpu.dot_dimension_numbers<[1], [1], [0], [0], [0, 0, 1, 0], [], []>} : vector<16x32xf32>, vector<16x32xf32>, vector<16x16xf32> -> vector<16x16xf32>
    %cst_42 = arith.constant dense<0xFF800000> : vector<16xf32>
    %127 = vector.multi_reduction <maximumf>, %126, %cst_42 [1] : vector<16x16xf32> to vector<16xf32>
    %128 = vector.shape_cast %127 : vector<16xf32> to vector<16x1xf32>
    %129 = vector.broadcast %128 : vector<16x1xf32> to vector<16x16xf32>
    %130 = arith.subf %126, %129 : vector<16x16xf32>
    %131 = math.exp %130 : vector<16x16xf32>
    %cst_43 = arith.constant dense<0.000000e+00> : vector<16xf32>
    %132 = vector.multi_reduction <add>, %131, %cst_43 [1] : vector<16x16xf32> to vector<16xf32>
    %133 = vector.shape_cast %132 : vector<16xf32> to vector<16x1xf32>
    %cst_44 = arith.constant dense<0.000000e+00> : vector<16x32xf32>
    %134 = tpu.matmul %131, %125, %cst_44 {dimension_numbers = #tpu.dot_dimension_numbers<[1], [0], [0], [1], [0, 0, 1, 1], [], []>} : vector<16x16xf32>, vector<16x32xf32>, vector<16x32xf32> -> vector<16x32xf32>
    %135 = tpu.reciprocal %133 {approx = true} : vector<16x1xf32> -> vector<16x1xf32>
    %136 = arith.mulf %133, %135 : vector<16x1xf32>
    %cst_45 = arith.constant 2.000000e+00 : f32
    %137 = vector.broadcast %cst_45 : f32 to vector<16x1xf32>
    %138 = arith.subf %137, %136 : vector<16x1xf32>
    %139 = arith.mulf %135, %138 : vector<16x1xf32>
    %140 = vector.broadcast %139 : vector<16x1xf32> to vector<16x32xf32>
    %141 = arith.mulf %134, %140 : vector<16x32xf32>
    %c16 = arith.constant 16 : index
    %c0_46 = arith.constant 0 : index
    %142 = vector.load %arg9[%c16, %c0_46] : memref<32x128xf32, #tpu.memory_space<vmem>>, vector<16x32xf32>
    tpu.vector_store %arg9[%c16, %c0_46], %141 {strides = array<i32>} : memref<32x128xf32, #tpu.memory_space<vmem>>, vector<16x32xf32>,
    %143 = vector.extract_strided_slice %120 {offsets = [0, 32], sizes = [16, 32], strides = [1, 1]} : vector<16x128xf32> to vector<16x32xf32>
    %144 = vector.extract_strided_slice %121 {offsets = [0, 32], sizes = [16, 32], strides = [1, 1]} : vector<16x128xf32> to vector<16x32xf32>
    %145 = vector.extract_strided_slice %122 {offsets = [0, 32], sizes = [16, 32], strides = [1, 1]} : vector<16x128xf32> to vector<16x32xf32>
    %cst_47 = arith.constant dense<0.000000e+00> : vector<16x16xf32>
    %146 = tpu.matmul %143, %144, %cst_47 {dimension_numbers = #tpu.dot_dimension_numbers<[1], [1], [0], [0], [0, 0, 1, 0], [], []>} : vector<16x32xf32>, vector<16x32xf32>, vector<16x16xf32> -> vector<16x16xf32>
    %cst_48 = arith.constant dense<0xFF800000> : vector<16xf32>
    %147 = vector.multi_reduction <maximumf>, %146, %cst_48 [1] : vector<16x16xf32> to vector<16xf32>
    %148 = vector.shape_cast %147 : vector<16xf32> to vector<16x1xf32>
    %149 = vector.broadcast %148 : vector<16x1xf32> to vector<16x16xf32>
    %150 = arith.subf %146, %149 : vector<16x16xf32>
    %151 = math.exp %150 : vector<16x16xf32>
    %cst_49 = arith.constant dense<0.000000e+00> : vector<16xf32>
    %152 = vector.multi_reduction <add>, %151, %cst_49 [1] : vector<16x16xf32> to vector<16xf32>
    %153 = vector.shape_cast %152 : vector<16xf32> to vector<16x1xf32>
    %cst_50 = arith.constant dense<0.000000e+00> : vector<16x32xf32>
    %154 = tpu.matmul %151, %145, %cst_50 {dimension_numbers = #tpu.dot_dimension_numbers<[1], [0], [0], [1], [0, 0, 1, 1], [], []>} : vector<16x16xf32>, vector<16x32xf32>, vector<16x32xf32> -> vector<16x32xf32>
    %155 = tpu.reciprocal %153 {approx = true} : vector<16x1xf32> -> vector<16x1xf32>
    %156 = arith.mulf %153, %155 : vector<16x1xf32>
    %cst_51 = arith.constant 2.000000e+00 : f32
    %157 = vector.broadcast %cst_51 : f32 to vector<16x1xf32>
    %158 = arith.subf %157, %156 : vector<16x1xf32>
    %159 = arith.mulf %155, %158 : vector<16x1xf32>
    %160 = vector.broadcast %159 : vector<16x1xf32> to vector<16x32xf32>
    %161 = arith.mulf %154, %160 : vector<16x32xf32>
    %c16_52 = arith.constant 16 : index
    %c32_53 = arith.constant 32 : index
    %162 = vector.load %arg9[%c16_52, %c32_53] : memref<32x128xf32, #tpu.memory_space<vmem>>, vector<16x32xf32>
    tpu.vector_store %arg9[%c16_52, %c32_53], %161 {strides = array<i32>} : memref<32x128xf32, #tpu.memory_space<vmem>>, vector<16x32xf32>,
    %163 = vector.extract_strided_slice %120 {offsets = [0, 64], sizes = [16, 32], strides = [1, 1]} : vector<16x128xf32> to vector<16x32xf32>
    %164 = vector.extract_strided_slice %121 {offsets = [0, 64], sizes = [16, 32], strides = [1, 1]} : vector<16x128xf32> to vector<16x32xf32>
    %165 = vector.extract_strided_slice %122 {offsets = [0, 64], sizes = [16, 32], strides = [1, 1]} : vector<16x128xf32> to vector<16x32xf32>
    %cst_54 = arith.constant dense<0.000000e+00> : vector<16x16xf32>
    %166 = tpu.matmul %163, %164, %cst_54 {dimension_numbers = #tpu.dot_dimension_numbers<[1], [1], [0], [0], [0, 0, 1, 0], [], []>} : vector<16x32xf32>, vector<16x32xf32>, vector<16x16xf32> -> vector<16x16xf32>
    %cst_55 = arith.constant dense<0xFF800000> : vector<16xf32>
    %167 = vector.multi_reduction <maximumf>, %166, %cst_55 [1] : vector<16x16xf32> to vector<16xf32>
    %168 = vector.shape_cast %167 : vector<16xf32> to vector<16x1xf32>
    %169 = vector.broadcast %168 : vector<16x1xf32> to vector<16x16xf32>
    %170 = arith.subf %166, %169 : vector<16x16xf32>
    %171 = math.exp %170 : vector<16x16xf32>
    %cst_56 = arith.constant dense<0.000000e+00> : vector<16xf32>
    %172 = vector.multi_reduction <add>, %171, %cst_56 [1] : vector<16x16xf32> to vector<16xf32>
    %173 = vector.shape_cast %172 : vector<16xf32> to vector<16x1xf32>
    %cst_57 = arith.constant dense<0.000000e+00> : vector<16x32xf32>
    %174 = tpu.matmul %171, %165, %cst_57 {dimension_numbers = #tpu.dot_dimension_numbers<[1], [0], [0], [1], [0, 0, 1, 1], [], []>} : vector<16x16xf32>, vector<16x32xf32>, vector<16x32xf32> -> vector<16x32xf32>
    %175 = tpu.reciprocal %173 {approx = true} : vector<16x1xf32> -> vector<16x1xf32>
    %176 = arith.mulf %173, %175 : vector<16x1xf32>
    %cst_58 = arith.constant 2.000000e+00 : f32
    %177 = vector.broadcast %cst_58 : f32 to vector<16x1xf32>
    %178 = arith.subf %177, %176 : vector<16x1xf32>
    %179 = arith.mulf %175, %178 : vector<16x1xf32>
    %180 = vector.broadcast %179 : vector<16x1xf32> to vector<16x32xf32>
    %181 = arith.mulf %174, %180 : vector<16x32xf32>
    %c16_59 = arith.constant 16 : index
    %c64_60 = arith.constant 64 : index
    %182 = vector.load %arg9[%c16_59, %c64_60] : memref<32x128xf32, #tpu.memory_space<vmem>>, vector<16x32xf32>
    tpu.vector_store %arg9[%c16_59, %c64_60], %181 {strides = array<i32>} : memref<32x128xf32, #tpu.memory_space<vmem>>, vector<16x32xf32>,
    %183 = vector.extract_strided_slice %120 {offsets = [0, 96], sizes = [16, 32], strides = [1, 1]} : vector<16x128xf32> to vector<16x32xf32>
    %184 = vector.extract_strided_slice %121 {offsets = [0, 96], sizes = [16, 32], strides = [1, 1]} : vector<16x128xf32> to vector<16x32xf32>
    %185 = vector.extract_strided_slice %122 {offsets = [0, 96], sizes = [16, 32], strides = [1, 1]} : vector<16x128xf32> to vector<16x32xf32>
    %cst_61 = arith.constant dense<0.000000e+00> : vector<16x16xf32>
    %186 = tpu.matmul %183, %184, %cst_61 {dimension_numbers = #tpu.dot_dimension_numbers<[1], [1], [0], [0], [0, 0, 1, 0], [], []>} : vector<16x32xf32>, vector<16x32xf32>, vector<16x16xf32> -> vector<16x16xf32>
    %cst_62 = arith.constant dense<0xFF800000> : vector<16xf32>
    %187 = vector.multi_reduction <maximumf>, %186, %cst_62 [1] : vector<16x16xf32> to vector<16xf32>
    %188 = vector.shape_cast %187 : vector<16xf32> to vector<16x1xf32>
    %189 = vector.broadcast %188 : vector<16x1xf32> to vector<16x16xf32>
    %190 = arith.subf %186, %189 : vector<16x16xf32>
    %191 = math.exp %190 : vector<16x16xf32>
    %cst_63 = arith.constant dense<0.000000e+00> : vector<16xf32>
    %192 = vector.multi_reduction <add>, %191, %cst_63 [1] : vector<16x16xf32> to vector<16xf32>
    %193 = vector.shape_cast %192 : vector<16xf32> to vector<16x1xf32>
    %cst_64 = arith.constant dense<0.000000e+00> : vector<16x32xf32>
    %194 = tpu.matmul %191, %185, %cst_64 {dimension_numbers = #tpu.dot_dimension_numbers<[1], [0], [0], [1], [0, 0, 1, 1], [], []>} : vector<16x16xf32>, vector<16x32xf32>, vector<16x32xf32> -> vector<16x32xf32>
    %195 = tpu.reciprocal %193 {approx = true} : vector<16x1xf32> -> vector<16x1xf32>
    %196 = arith.mulf %193, %195 : vector<16x1xf32>
    %cst_65 = arith.constant 2.000000e+00 : f32
    %197 = vector.broadcast %cst_65 : f32 to vector<16x1xf32>
    %198 = arith.subf %197, %196 : vector<16x1xf32>
    %199 = arith.mulf %195, %198 : vector<16x1xf32>
    %200 = vector.broadcast %199 : vector<16x1xf32> to vector<16x32xf32>
    %201 = arith.mulf %194, %200 : vector<16x32xf32>
    %c16_66 = arith.constant 16 : index
    %c96_67 = arith.constant 96 : index
    %202 = vector.load %arg9[%c16_66, %c96_67] : memref<32x128xf32, #tpu.memory_space<vmem>>, vector<16x32xf32>
    tpu.vector_store %arg9[%c16_66, %c96_67], %201 {strides = array<i32>} : memref<32x128xf32, #tpu.memory_space<vmem>>, vector<16x32xf32>,
    %c0_68 = arith.constant 0 : index
    %c0_69 = arith.constant 0 : index
    %203 = vector.load %arg9[%c0_68, %c0_69] : memref<32x128xf32, #tpu.memory_space<vmem>>, vector<32x128xf32>
    %c0_70 = arith.constant 0 : index
    %c0_71 = arith.constant 0 : index
    %204 = vector.load %arg6[%c0_70, %c0_71] : memref<128x128xf32, #tpu.memory_space<vmem>>, vector<128x128xf32>
    %cst_72 = arith.constant dense<0.000000e+00> : vector<32x128xf32>
    %205 = tpu.matmul %203, %204, %cst_72 {dimension_numbers = #tpu.dot_dimension_numbers<[1], [0], [0], [1], [0, 0, 1, 1], [], []>} : vector<32x128xf32>, vector<128x128xf32>, vector<32x128xf32> -> vector<32x128xf32>
    %c0_73 = arith.constant 0 : index
    %c0_74 = arith.constant 0 : index
    %206 = vector.load %arg7[%c0_73, %c0_74] : memref<1x128xf32, #tpu.memory_space<vmem>>, vector<1x128xf32>
    %207 = vector.broadcast %206 : vector<1x128xf32> to vector<32x128xf32>
    %208 = arith.addf %205, %207 : vector<32x128xf32>
    %c0_75 = arith.constant 0 : index
    %c0_76 = arith.constant 0 : index
    %209 = vector.load %arg8[%c0_75, %c0_76] : memref<32x128xf32, #tpu.memory_space<vmem>>, vector<32x128xf32>
    tpu.vector_store %arg8[%c0_75, %c0_76], %208 {strides = array<i32>} : memref<32x128xf32, #tpu.memory_space<vmem>>, vector<32x128xf32>,
    return
  }
  func.func @transform_0(%arg0: i32) -> (i32, i32) {
    %c0_i32 = arith.constant 0 : i32
    %c0_i32_0 = arith.constant 0 : i32
    return %arg0, %c0_i32 : i32, i32
  }
  func.func @transform_1(%arg0: i32) -> (i32, i32) {
    %c0_i32 = arith.constant 0 : i32
    %c0_i32_0 = arith.constant 0 : i32
    %c0_i32_1 = arith.constant 0 : i32
    return %c0_i32, %c0_i32_0 : i32, i32
  }
  func.func @transform_2(%arg0: i32) -> (i32, i32) {
    %c0_i32 = arith.constant 0 : i32
    %c0_i32_0 = arith.constant 0 : i32
    %c0_i32_1 = arith.constant 0 : i32
    return %c0_i32, %c0_i32_0 : i32, i32
  }
  func.func @transform_3(%arg0: i32) -> (i32, i32) {
    %c0_i32 = arith.constant 0 : i32
    %c0_i32_0 = arith.constant 0 : i32
    %c0_i32_1 = arith.constant 0 : i32
    return %c0_i32, %c0_i32_0 : i32, i32
  }
  func.func @transform_4(%arg0: i32) -> (i32, i32) {
    %c0_i32 = arith.constant 0 : i32
    %c0_i32_0 = arith.constant 0 : i32
    %c0_i32_1 = arith.constant 0 : i32
    return %c0_i32, %c0_i32_0 : i32, i32
  }
  func.func @transform_5(%arg0: i32) -> (i32, i32) {
    %c0_i32 = arith.constant 0 : i32
    %c0_i32_0 = arith.constant 0 : i32
    %c0_i32_1 = arith.constant 0 : i32
    return %c0_i32, %c0_i32_0 : i32, i32
  }
  func.func @transform_6(%arg0: i32) -> (i32, i32) {
    %c0_i32 = arith.constant 0 : i32
    %c0_i32_0 = arith.constant 0 : i32
    %c0_i32_1 = arith.constant 0 : i32
    return %c0_i32, %c0_i32_0 : i32, i32
  }
  func.func @transform_7(%arg0: i32) -> (i32, i32) {
    %c0_i32 = arith.constant 0 : i32
    %c0_i32_0 = arith.constant 0 : i32
    return %arg0, %c0_i32 : i32, i32
  }
}

module attributes {stable_mosaic.version = 11 : i64} {
  func.func @_attention_kernel(%arg0: i32, %arg1: memref<32x128xf32, #tpu.memory_space<vmem>>, %arg2: memref<128x384xf32, #tpu.memory_space<vmem>>, %arg3: memref<1x384xf32, #tpu.memory_space<vmem>>, %arg4: memref<1x128xf32, #tpu.memory_space<vmem>>, %arg5: memref<1x128xf32, #tpu.memory_space<vmem>>, %arg6: memref<128x128xf32, #tpu.memory_space<vmem>>, %arg7: memref<1x128xf32, #tpu.memory_space<vmem>>, %arg8: memref<32x128xf32, #tpu.memory_space<vmem>>, %arg9: memref<32x128xf32, #tpu.memory_space<vmem>>) attributes {dimension_semantics = [#tpu.dimension_semantics<parallel>], iteration_bounds = array<i64: 1>, scalar_prefetch = 0 : i64, scratch_operands = 1 : i64, tpu.core_type = #tpu.core_type<tc>, window_params = [{transform_indices = @transform_0, window_bounds = array<i64: 32, 128>}, {pipeline_mode = #tpu.pipeline_mode<synchronous>, transform_indices = @transform_1, window_bounds = array<i64: 128, 384>}, {pipeline_mode = #tpu.pipeline_mode<synchronous>, transform_indices = @transform_2, window_bounds = array<i64: 1, 384>}, {pipeline_mode = #tpu.pipeline_mode<synchronous>, transform_indices = @transform_3, window_bounds = array<i64: 1, 128>}, {pipeline_mode = #tpu.pipeline_mode<synchronous>, transform_indices = @transform_4, window_bounds = array<i64: 1, 128>}, {pipeline_mode = #tpu.pipeline_mode<synchronous>, transform_indices = @transform_5, window_bounds = array<i64: 128, 128>}, {pipeline_mode = #tpu.pipeline_mode<synchronous>, transform_indices = @transform_6, window_bounds = array<i64: 1, 128>}, {transform_indices = @transform_7, window_bounds = array<i64: 32, 128>}]} {
    %c0 = arith.constant 0 : index
    %c0_0 = arith.constant 0 : index
    %0 = vector.load %arg1[%c0, %c0_0] : memref<32x128xf32, #tpu.memory_space<vmem>>, vector<32x128xf32>
    %c0_1 = arith.constant 0 : index
    %c0_2 = arith.constant 0 : index
    %1 = vector.load %arg2[%c0_1, %c0_2] : memref<128x384xf32, #tpu.memory_space<vmem>>, vector<128x384xf32>
    %cst = arith.constant dense<0.000000e+00> : vector<32x384xf32>
    %2 = tpu.matmul %0, %1, %cst {dimension_numbers = #tpu.dot_dimension_numbers<[1], [0], [0], [1], [0, 0, 1, 1], [], []>} : vector<32x128xf32>, vector<128x384xf32>, vector<32x384xf32> -> vector<32x384xf32>
    %c0_3 = arith.constant 0 : index
    %c0_4 = arith.constant 0 : index
    %3 = vector.load %arg3[%c0_3, %c0_4] : memref<1x384xf32, #tpu.memory_space<vmem>>, vector<1x384xf32>
    %4 = vector.broadcast %3 : vector<1x384xf32> to vector<32x384xf32>
    %5 = arith.addf %2, %4 : vector<32x384xf32>
    %6 = vector.extract_strided_slice %5 {offsets = [0, 0], sizes = [32, 128], strides = [1, 1]} : vector<32x384xf32> to vector<32x128xf32>
    %7 = vector.extract_strided_slice %5 {offsets = [0, 128], sizes = [32, 128], strides = [1, 1]} : vector<32x384xf32> to vector<32x128xf32>
    %8 = vector.extract_strided_slice %5 {offsets = [0, 256], sizes = [32, 128], strides = [1, 1]} : vector<32x384xf32> to vector<32x128xf32>
    %c0_5 = arith.constant 0 : index
    %c0_6 = arith.constant 0 : index
    %9 = vector.load %arg4[%c0_5, %c0_6] : memref<1x128xf32, #tpu.memory_space<vmem>>, vector<1x128xf32>
    %cst_7 = arith.constant 0.176776692 : f32
    %10 = vector.broadcast %cst_7 : f32 to vector<1x128xf32>
    %11 = arith.mulf %9, %10 : vector<1x128xf32>
    %c0_8 = arith.constant 0 : index
    %c0_9 = arith.constant 0 : index
    %12 = vector.load %arg5[%c0_8, %c0_9] : memref<1x128xf32, #tpu.memory_space<vmem>>, vector<1x128xf32>
    %13 = arith.mulf %6, %6 : vector<32x128xf32>
    %cst_10 = arith.constant dense<0.000000e+00> : vector<32xf32>
    %14 = vector.multi_reduction <add>, %13, %cst_10 [1] : vector<32x128xf32> to vector<32xf32>
    %15 = vector.shape_cast %14 : vector<32xf32> to vector<32x1xf32>
    %cst_11 = arith.constant 1.280000e+02 : f32
    %16 = vector.broadcast %cst_11 : f32 to vector<32x1xf32>
    %17 = arith.divf %15, %16 : vector<32x1xf32>
    %cst_12 = arith.constant 9.99999997E-7 : f32
    %18 = vector.broadcast %cst_12 : f32 to vector<32x1xf32>
    %19 = arith.addf %17, %18 : vector<32x1xf32>
    %20 = math.rsqrt %19 : vector<32x1xf32>
    %21 = vector.broadcast %20 : vector<32x1xf32> to vector<32x128xf32>
    %22 = arith.mulf %6, %21 : vector<32x128xf32>
    %23 = vector.broadcast %11 : vector<1x128xf32> to vector<32x128xf32>
    %24 = arith.mulf %22, %23 : vector<32x128xf32>
    %25 = arith.mulf %7, %7 : vector<32x128xf32>
    %cst_13 = arith.constant dense<0.000000e+00> : vector<32xf32>
    %26 = vector.multi_reduction <add>, %25, %cst_13 [1] : vector<32x128xf32> to vector<32xf32>
    %27 = vector.shape_cast %26 : vector<32xf32> to vector<32x1xf32>
    %cst_14 = arith.constant 1.280000e+02 : f32
    %28 = vector.broadcast %cst_14 : f32 to vector<32x1xf32>
    %29 = arith.divf %27, %28 : vector<32x1xf32>
    %cst_15 = arith.constant 9.99999997E-7 : f32
    %30 = vector.broadcast %cst_15 : f32 to vector<32x1xf32>
    %31 = arith.addf %29, %30 : vector<32x1xf32>
    %32 = math.rsqrt %31 : vector<32x1xf32>
    %33 = vector.broadcast %32 : vector<32x1xf32> to vector<32x128xf32>
    %34 = arith.mulf %7, %33 : vector<32x128xf32>
    %35 = vector.broadcast %12 : vector<1x128xf32> to vector<32x128xf32>
    %36 = arith.mulf %34, %35 : vector<32x128xf32>
    %37 = vector.extract_strided_slice %24 {offsets = [0, 0], sizes = [16, 128], strides = [1, 1]} : vector<32x128xf32> to vector<16x128xf32>
    %38 = vector.extract_strided_slice %36 {offsets = [0, 0], sizes = [16, 128], strides = [1, 1]} : vector<32x128xf32> to vector<16x128xf32>
    %39 = vector.extract_strided_slice %8 {offsets = [0, 0], sizes = [16, 128], strides = [1, 1]} : vector<32x128xf32> to vector<16x128xf32>
    %40 = vector.extract_strided_slice %37 {offsets = [0, 0], sizes = [16, 32], strides = [1, 1]} : vector<16x128xf32> to vector<16x32xf32>
    %41 = vector.extract_strided_slice %38 {offsets = [0, 0], sizes = [16, 32], strides = [1, 1]} : vector<16x128xf32> to vector<16x32xf32>
    %42 = vector.extract_strided_slice %39 {offsets = [0, 0], sizes = [16, 32], strides = [1, 1]} : vector<16x128xf32> to vector<16x32xf32>
    %cst_16 = arith.constant dense<0.000000e+00> : vector<16x16xf32>
    %43 = tpu.matmul %40, %41, %cst_16 {dimension_numbers = #tpu.dot_dimension_numbers<[1], [1], [0], [0], [0, 0, 1, 0], [], []>} : vector<16x32xf32>, vector<16x32xf32>, vector<16x16xf32> -> vector<16x16xf32>
    %cst_17 = arith.constant dense<0xFF800000> : vector<16xf32>
    %44 = vector.multi_reduction <maximumf>, %43, %cst_17 [1] : vector<16x16xf32> to vector<16xf32>
    %45 = vector.shape_cast %44 : vector<16xf32> to vector<16x1xf32>
    %46 = vector.broadcast %45 : vector<16x1xf32> to vector<16x16xf32>
    %47 = arith.subf %43, %46 : vector<16x16xf32>
    %48 = math.exp %47 : vector<16x16xf32>
    %cst_18 = arith.constant dense<0.000000e+00> : vector<16xf32>
    %49 = vector.multi_reduction <add>, %48, %cst_18 [1] : vector<16x16xf32> to vector<16xf32>
    %50 = vector.shape_cast %49 : vector<16xf32> to vector<16x1xf32>
    %cst_19 = arith.constant dense<0.000000e+00> : vector<16x32xf32>
    %51 = tpu.matmul %48, %42, %cst_19 {dimension_numbers = #tpu.dot_dimension_numbers<[1], [0], [0], [1], [0, 0, 1, 1], [], []>} : vector<16x16xf32>, vector<16x32xf32>, vector<16x32xf32> -> vector<16x32xf32>
    %52 = tpu.reciprocal %50 {approx = true} : vector<16x1xf32> -> vector<16x1xf32>
    %53 = arith.mulf %50, %52 : vector<16x1xf32>
    %cst_20 = arith.constant 2.000000e+00 : f32
    %54 = vector.broadcast %cst_20 : f32 to vector<16x1xf32>
    %55 = arith.subf %54, %53 : vector<16x1xf32>
    %56 = arith.mulf %52, %55 : vector<16x1xf32>
    %57 = vector.broadcast %56 : vector<16x1xf32> to vector<16x32xf32>
    %58 = arith.mulf %51, %57 : vector<16x32xf32>
    %c0_21 = arith.constant 0 : index
    %c0_22 = arith.constant 0 : index
    %59 = vector.load %arg9[%c0_21, %c0_22] : memref<32x128xf32, #tpu.memory_space<vmem>>, vector<16x32xf32>
    tpu.vector_store %arg9[%c0_21, %c0_22], %58 {strides = array<i32>} : memref<32x128xf32, #tpu.memory_space<vmem>>, vector<16x32xf32>,
    %60 = vector.extract_strided_slice %37 {offsets = [0, 32], sizes = [16, 32], strides = [1, 1]} : vector<16x128xf32> to vector<16x32xf32>
    %61 = vector.extract_strided_slice %38 {offsets = [0, 32], sizes = [16, 32], strides = [1, 1]} : vector<16x128xf32> to vector<16x32xf32>
    %62 = vector.extract_strided_slice %39 {offsets = [0, 32], sizes = [16, 32], strides = [1, 1]} : vector<16x128xf32> to vector<16x32xf32>
    %cst_23 = arith.constant dense<0.000000e+00> : vector<16x16xf32>
    %63 = tpu.matmul %60, %61, %cst_23 {dimension_numbers = #tpu.dot_dimension_numbers<[1], [1], [0], [0], [0, 0, 1, 0], [], []>} : vector<16x32xf32>, vector<16x32xf32>, vector<16x16xf32> -> vector<16x16xf32>
    %cst_24 = arith.constant dense<0xFF800000> : vector<16xf32>
    %64 = vector.multi_reduction <maximumf>, %63, %cst_24 [1] : vector<16x16xf32> to vector<16xf32>
    %65 = vector.shape_cast %64 : vector<16xf32> to vector<16x1xf32>
    %66 = vector.broadcast %65 : vector<16x1xf32> to vector<16x16xf32>
    %67 = arith.subf %63, %66 : vector<16x16xf32>
    %68 = math.exp %67 : vector<16x16xf32>
    %cst_25 = arith.constant dense<0.000000e+00> : vector<16xf32>
    %69 = vector.multi_reduction <add>, %68, %cst_25 [1] : vector<16x16xf32> to vector<16xf32>
    %70 = vector.shape_cast %69 : vector<16xf32> to vector<16x1xf32>
    %cst_26 = arith.constant dense<0.000000e+00> : vector<16x32xf32>
    %71 = tpu.matmul %68, %62, %cst_26 {dimension_numbers = #tpu.dot_dimension_numbers<[1], [0], [0], [1], [0, 0, 1, 1], [], []>} : vector<16x16xf32>, vector<16x32xf32>, vector<16x32xf32> -> vector<16x32xf32>
    %72 = tpu.reciprocal %70 {approx = true} : vector<16x1xf32> -> vector<16x1xf32>
    %73 = arith.mulf %70, %72 : vector<16x1xf32>
    %cst_27 = arith.constant 2.000000e+00 : f32
    %74 = vector.broadcast %cst_27 : f32 to vector<16x1xf32>
    %75 = arith.subf %74, %73 : vector<16x1xf32>
    %76 = arith.mulf %72, %75 : vector<16x1xf32>
    %77 = vector.broadcast %76 : vector<16x1xf32> to vector<16x32xf32>
    %78 = arith.mulf %71, %77 : vector<16x32xf32>
    %c0_28 = arith.constant 0 : index
    %c32 = arith.constant 32 : index
    %79 = vector.load %arg9[%c0_28, %c32] : memref<32x128xf32, #tpu.memory_space<vmem>>, vector<16x32xf32>
    tpu.vector_store %arg9[%c0_28, %c32], %78 {strides = array<i32>} : memref<32x128xf32, #tpu.memory_space<vmem>>, vector<16x32xf32>,
    %80 = vector.extract_strided_slice %37 {offsets = [0, 64], sizes = [16, 32], strides = [1, 1]} : vector<16x128xf32> to vector<16x32xf32>
    %81 = vector.extract_strided_slice %38 {offsets = [0, 64], sizes = [16, 32], strides = [1, 1]} : vector<16x128xf32> to vector<16x32xf32>
    %82 = vector.extract_strided_slice %39 {offsets = [0, 64], sizes = [16, 32], strides = [1, 1]} : vector<16x128xf32> to vector<16x32xf32>
    %cst_29 = arith.constant dense<0.000000e+00> : vector<16x16xf32>
    %83 = tpu.matmul %80, %81, %cst_29 {dimension_numbers = #tpu.dot_dimension_numbers<[1], [1], [0], [0], [0, 0, 1, 0], [], []>} : vector<16x32xf32>, vector<16x32xf32>, vector<16x16xf32> -> vector<16x16xf32>
    %cst_30 = arith.constant dense<0xFF800000> : vector<16xf32>
    %84 = vector.multi_reduction <maximumf>, %83, %cst_30 [1] : vector<16x16xf32> to vector<16xf32>
    %85 = vector.shape_cast %84 : vector<16xf32> to vector<16x1xf32>
    %86 = vector.broadcast %85 : vector<16x1xf32> to vector<16x16xf32>
    %87 = arith.subf %83, %86 : vector<16x16xf32>
    %88 = math.exp %87 : vector<16x16xf32>
    %cst_31 = arith.constant dense<0.000000e+00> : vector<16xf32>
    %89 = vector.multi_reduction <add>, %88, %cst_31 [1] : vector<16x16xf32> to vector<16xf32>
    %90 = vector.shape_cast %89 : vector<16xf32> to vector<16x1xf32>
    %cst_32 = arith.constant dense<0.000000e+00> : vector<16x32xf32>
    %91 = tpu.matmul %88, %82, %cst_32 {dimension_numbers = #tpu.dot_dimension_numbers<[1], [0], [0], [1], [0, 0, 1, 1], [], []>} : vector<16x16xf32>, vector<16x32xf32>, vector<16x32xf32> -> vector<16x32xf32>
    %92 = tpu.reciprocal %90 {approx = true} : vector<16x1xf32> -> vector<16x1xf32>
    %93 = arith.mulf %90, %92 : vector<16x1xf32>
    %cst_33 = arith.constant 2.000000e+00 : f32
    %94 = vector.broadcast %cst_33 : f32 to vector<16x1xf32>
    %95 = arith.subf %94, %93 : vector<16x1xf32>
    %96 = arith.mulf %92, %95 : vector<16x1xf32>
    %97 = vector.broadcast %96 : vector<16x1xf32> to vector<16x32xf32>
    %98 = arith.mulf %91, %97 : vector<16x32xf32>
    %c0_34 = arith.constant 0 : index
    %c64 = arith.constant 64 : index
    %99 = vector.load %arg9[%c0_34, %c64] : memref<32x128xf32, #tpu.memory_space<vmem>>, vector<16x32xf32>
    tpu.vector_store %arg9[%c0_34, %c64], %98 {strides = array<i32>} : memref<32x128xf32, #tpu.memory_space<vmem>>, vector<16x32xf32>,
    %100 = vector.extract_strided_slice %37 {offsets = [0, 96], sizes = [16, 32], strides = [1, 1]} : vector<16x128xf32> to vector<16x32xf32>
    %101 = vector.extract_strided_slice %38 {offsets = [0, 96], sizes = [16, 32], strides = [1, 1]} : vector<16x128xf32> to vector<16x32xf32>
    %102 = vector.extract_strided_slice %39 {offsets = [0, 96], sizes = [16, 32], strides = [1, 1]} : vector<16x128xf32> to vector<16x32xf32>
    %cst_35 = arith.constant dense<0.000000e+00> : vector<16x16xf32>
    %103 = tpu.matmul %100, %101, %cst_35 {dimension_numbers = #tpu.dot_dimension_numbers<[1], [1], [0], [0], [0, 0, 1, 0], [], []>} : vector<16x32xf32>, vector<16x32xf32>, vector<16x16xf32> -> vector<16x16xf32>
    %cst_36 = arith.constant dense<0xFF800000> : vector<16xf32>
    %104 = vector.multi_reduction <maximumf>, %103, %cst_36 [1] : vector<16x16xf32> to vector<16xf32>
    %105 = vector.shape_cast %104 : vector<16xf32> to vector<16x1xf32>
    %106 = vector.broadcast %105 : vector<16x1xf32> to vector<16x16xf32>
    %107 = arith.subf %103, %106 : vector<16x16xf32>
    %108 = math.exp %107 : vector<16x16xf32>
    %cst_37 = arith.constant dense<0.000000e+00> : vector<16xf32>
    %109 = vector.multi_reduction <add>, %108, %cst_37 [1] : vector<16x16xf32> to vector<16xf32>
    %110 = vector.shape_cast %109 : vector<16xf32> to vector<16x1xf32>
    %cst_38 = arith.constant dense<0.000000e+00> : vector<16x32xf32>
    %111 = tpu.matmul %108, %102, %cst_38 {dimension_numbers = #tpu.dot_dimension_numbers<[1], [0], [0], [1], [0, 0, 1, 1], [], []>} : vector<16x16xf32>, vector<16x32xf32>, vector<16x32xf32> -> vector<16x32xf32>
    %112 = tpu.reciprocal %110 {approx = true} : vector<16x1xf32> -> vector<16x1xf32>
    %113 = arith.mulf %110, %112 : vector<16x1xf32>
    %cst_39 = arith.constant 2.000000e+00 : f32
    %114 = vector.broadcast %cst_39 : f32 to vector<16x1xf32>
    %115 = arith.subf %114, %113 : vector<16x1xf32>
    %116 = arith.mulf %112, %115 : vector<16x1xf32>
    %117 = vector.broadcast %116 : vector<16x1xf32> to vector<16x32xf32>
    %118 = arith.mulf %111, %117 : vector<16x32xf32>
    %c0_40 = arith.constant 0 : index
    %c96 = arith.constant 96 : index
    %119 = vector.load %arg9[%c0_40, %c96] : memref<32x128xf32, #tpu.memory_space<vmem>>, vector<16x32xf32>
    tpu.vector_store %arg9[%c0_40, %c96], %118 {strides = array<i32>} : memref<32x128xf32, #tpu.memory_space<vmem>>, vector<16x32xf32>,
    %120 = vector.extract_strided_slice %24 {offsets = [16, 0], sizes = [16, 128], strides = [1, 1]} : vector<32x128xf32> to vector<16x128xf32>
    %121 = vector.extract_strided_slice %36 {offsets = [16, 0], sizes = [16, 128], strides = [1, 1]} : vector<32x128xf32> to vector<16x128xf32>
    %122 = vector.extract_strided_slice %8 {offsets = [16, 0], sizes = [16, 128], strides = [1, 1]} : vector<32x128xf32> to vector<16x128xf32>
    %123 = vector.extract_strided_slice %120 {offsets = [0, 0], sizes = [16, 32], strides = [1, 1]} : vector<16x128xf32> to vector<16x32xf32>
    %124 = vector.extract_strided_slice %121 {offsets = [0, 0], sizes = [16, 32], strides = [1, 1]} : vector<16x128xf32> to vector<16x32xf32>
    %125 = vector.extract_strided_slice %122 {offsets = [0, 0], sizes = [16, 32], strides = [1, 1]} : vector<16x128xf32> to vector<16x32xf32>
    %cst_41 = arith.constant dense<0.000000e+00> : vector<16x16xf32>
    %126 = tpu.matmul %123, %124, %cst_41 {dimension_numbers = #tpu.dot_dimension_numbers<[1], [1], [0], [0], [0, 0, 1, 0], [], []>} : vector<16x32xf32>, vector<16x32xf32>, vector<16x16xf32> -> vector<16x16xf32>
    %cst_42 = arith.constant dense<0xFF800000> : vector<16xf32>
    %127 = vector.multi_reduction <maximumf>, %126, %cst_42 [1] : vector<16x16xf32> to vector<16xf32>
    %128 = vector.shape_cast %127 : vector<16xf32> to vector<16x1xf32>
    %129 = vector.broadcast %128 : vector<16x1xf32> to vector<16x16xf32>
    %130 = arith.subf %126, %129 : vector<16x16xf32>
    %131 = math.exp %130 : vector<16x16xf32>
    %cst_43 = arith.constant dense<0.000000e+00> : vector<16xf32>
    %132 = vector.multi_reduction <add>, %131, %cst_43 [1] : vector<16x16xf32> to vector<16xf32>
    %133 = vector.shape_cast %132 : vector<16xf32> to vector<16x1xf32>
    %cst_44 = arith.constant dense<0.000000e+00> : vector<16x32xf32>
    %134 = tpu.matmul %131, %125, %cst_44 {dimension_numbers = #tpu.dot_dimension_numbers<[1], [0], [0], [1], [0, 0, 1, 1], [], []>} : vector<16x16xf32>, vector<16x32xf32>, vector<16x32xf32> -> vector<16x32xf32>
    %135 = tpu.reciprocal %133 {approx = true} : vector<16x1xf32> -> vector<16x1xf32>
    %136 = arith.mulf %133, %135 : vector<16x1xf32>
    %cst_45 = arith.constant 2.000000e+00 : f32
    %137 = vector.broadcast %cst_45 : f32 to vector<16x1xf32>
    %138 = arith.subf %137, %136 : vector<16x1xf32>
    %139 = arith.mulf %135, %138 : vector<16x1xf32>
    %140 = vector.broadcast %139 : vector<16x1xf32> to vector<16x32xf32>
    %141 = arith.mulf %134, %140 : vector<16x32xf32>
    %c16 = arith.constant 16 : index
    %c0_46 = arith.constant 0 : index
    %142 = vector.load %arg9[%c16, %c0_46] : memref<32x128xf32, #tpu.memory_space<vmem>>, vector<16x32xf32>
    tpu.vector_store %arg9[%c16, %c0_46], %141 {strides = array<i32>} : memref<32x128xf32, #tpu.memory_space<vmem>>, vector<16x32xf32>,
    %143 = vector.extract_strided_slice %120 {offsets = [0, 32], sizes = [16, 32], strides = [1, 1]} : vector<16x128xf32> to vector<16x32xf32>
    %144 = vector.extract_strided_slice %121 {offsets = [0, 32], sizes = [16, 32], strides = [1, 1]} : vector<16x128xf32> to vector<16x32xf32>
    %145 = vector.extract_strided_slice %122 {offsets = [0, 32], sizes = [16, 32], strides = [1, 1]} : vector<16x128xf32> to vector<16x32xf32>
    %cst_47 = arith.constant dense<0.000000e+00> : vector<16x16xf32>
    %146 = tpu.matmul %143, %144, %cst_47 {dimension_numbers = #tpu.dot_dimension_numbers<[1], [1], [0], [0], [0, 0, 1, 0], [], []>} : vector<16x32xf32>, vector<16x32xf32>, vector<16x16xf32> -> vector<16x16xf32>
    %cst_48 = arith.constant dense<0xFF800000> : vector<16xf32>
    %147 = vector.multi_reduction <maximumf>, %146, %cst_48 [1] : vector<16x16xf32> to vector<16xf32>
    %148 = vector.shape_cast %147 : vector<16xf32> to vector<16x1xf32>
    %149 = vector.broadcast %148 : vector<16x1xf32> to vector<16x16xf32>
    %150 = arith.subf %146, %149 : vector<16x16xf32>
    %151 = math.exp %150 : vector<16x16xf32>
    %cst_49 = arith.constant dense<0.000000e+00> : vector<16xf32>
    %152 = vector.multi_reduction <add>, %151, %cst_49 [1] : vector<16x16xf32> to vector<16xf32>
    %153 = vector.shape_cast %152 : vector<16xf32> to vector<16x1xf32>
    %cst_50 = arith.constant dense<0.000000e+00> : vector<16x32xf32>
    %154 = tpu.matmul %151, %145, %cst_50 {dimension_numbers = #tpu.dot_dimension_numbers<[1], [0], [0], [1], [0, 0, 1, 1], [], []>} : vector<16x16xf32>, vector<16x32xf32>, vector<16x32xf32> -> vector<16x32xf32>
    %155 = tpu.reciprocal %153 {approx = true} : vector<16x1xf32> -> vector<16x1xf32>
    %156 = arith.mulf %153, %155 : vector<16x1xf32>
    %cst_51 = arith.constant 2.000000e+00 : f32
    %157 = vector.broadcast %cst_51 : f32 to vector<16x1xf32>
    %158 = arith.subf %157, %156 : vector<16x1xf32>
    %159 = arith.mulf %155, %158 : vector<16x1xf32>
    %160 = vector.broadcast %159 : vector<16x1xf32> to vector<16x32xf32>
    %161 = arith.mulf %154, %160 : vector<16x32xf32>
    %c16_52 = arith.constant 16 : index
    %c32_53 = arith.constant 32 : index
    %162 = vector.load %arg9[%c16_52, %c32_53] : memref<32x128xf32, #tpu.memory_space<vmem>>, vector<16x32xf32>
    tpu.vector_store %arg9[%c16_52, %c32_53], %161 {strides = array<i32>} : memref<32x128xf32, #tpu.memory_space<vmem>>, vector<16x32xf32>,
    %163 = vector.extract_strided_slice %120 {offsets = [0, 64], sizes = [16, 32], strides = [1, 1]} : vector<16x128xf32> to vector<16x32xf32>
    %164 = vector.extract_strided_slice %121 {offsets = [0, 64], sizes = [16, 32], strides = [1, 1]} : vector<16x128xf32> to vector<16x32xf32>
    %165 = vector.extract_strided_slice %122 {offsets = [0, 64], sizes = [16, 32], strides = [1, 1]} : vector<16x128xf32> to vector<16x32xf32>
    %cst_54 = arith.constant dense<0.000000e+00> : vector<16x16xf32>
    %166 = tpu.matmul %163, %164, %cst_54 {dimension_numbers = #tpu.dot_dimension_numbers<[1], [1], [0], [0], [0, 0, 1, 0], [], []>} : vector<16x32xf32>, vector<16x32xf32>, vector<16x16xf32> -> vector<16x16xf32>
    %cst_55 = arith.constant dense<0xFF800000> : vector<16xf32>
    %167 = vector.multi_reduction <maximumf>, %166, %cst_55 [1] : vector<16x16xf32> to vector<16xf32>
    %168 = vector.shape_cast %167 : vector<16xf32> to vector<16x1xf32>
    %169 = vector.broadcast %168 : vector<16x1xf32> to vector<16x16xf32>
    %170 = arith.subf %166, %169 : vector<16x16xf32>
    %171 = math.exp %170 : vector<16x16xf32>
    %cst_56 = arith.constant dense<0.000000e+00> : vector<16xf32>
    %172 = vector.multi_reduction <add>, %171, %cst_56 [1] : vector<16x16xf32> to vector<16xf32>
    %173 = vector.shape_cast %172 : vector<16xf32> to vector<16x1xf32>
    %cst_57 = arith.constant dense<0.000000e+00> : vector<16x32xf32>
    %174 = tpu.matmul %171, %165, %cst_57 {dimension_numbers = #tpu.dot_dimension_numbers<[1], [0], [0], [1], [0, 0, 1, 1], [], []>} : vector<16x16xf32>, vector<16x32xf32>, vector<16x32xf32> -> vector<16x32xf32>
    %175 = tpu.reciprocal %173 {approx = true} : vector<16x1xf32> -> vector<16x1xf32>
    %176 = arith.mulf %173, %175 : vector<16x1xf32>
    %cst_58 = arith.constant 2.000000e+00 : f32
    %177 = vector.broadcast %cst_58 : f32 to vector<16x1xf32>
    %178 = arith.subf %177, %176 : vector<16x1xf32>
    %179 = arith.mulf %175, %178 : vector<16x1xf32>
    %180 = vector.broadcast %179 : vector<16x1xf32> to vector<16x32xf32>
    %181 = arith.mulf %174, %180 : vector<16x32xf32>
    %c16_59 = arith.constant 16 : index
    %c64_60 = arith.constant 64 : index
    %182 = vector.load %arg9[%c16_59, %c64_60] : memref<32x128xf32, #tpu.memory_space<vmem>>, vector<16x32xf32>
    tpu.vector_store %arg9[%c16_59, %c64_60], %181 {strides = array<i32>} : memref<32x128xf32, #tpu.memory_space<vmem>>, vector<16x32xf32>,
    %183 = vector.extract_strided_slice %120 {offsets = [0, 96], sizes = [16, 32], strides = [1, 1]} : vector<16x128xf32> to vector<16x32xf32>
    %184 = vector.extract_strided_slice %121 {offsets = [0, 96], sizes = [16, 32], strides = [1, 1]} : vector<16x128xf32> to vector<16x32xf32>
    %185 = vector.extract_strided_slice %122 {offsets = [0, 96], sizes = [16, 32], strides = [1, 1]} : vector<16x128xf32> to vector<16x32xf32>
    %cst_61 = arith.constant dense<0.000000e+00> : vector<16x16xf32>
    %186 = tpu.matmul %183, %184, %cst_61 {dimension_numbers = #tpu.dot_dimension_numbers<[1], [1], [0], [0], [0, 0, 1, 0], [], []>} : vector<16x32xf32>, vector<16x32xf32>, vector<16x16xf32> -> vector<16x16xf32>
    %cst_62 = arith.constant dense<0xFF800000> : vector<16xf32>
    %187 = vector.multi_reduction <maximumf>, %186, %cst_62 [1] : vector<16x16xf32> to vector<16xf32>
    %188 = vector.shape_cast %187 : vector<16xf32> to vector<16x1xf32>
    %189 = vector.broadcast %188 : vector<16x1xf32> to vector<16x16xf32>
    %190 = arith.subf %186, %189 : vector<16x16xf32>
    %191 = math.exp %190 : vector<16x16xf32>
    %cst_63 = arith.constant dense<0.000000e+00> : vector<16xf32>
    %192 = vector.multi_reduction <add>, %191, %cst_63 [1] : vector<16x16xf32> to vector<16xf32>
    %193 = vector.shape_cast %192 : vector<16xf32> to vector<16x1xf32>
    %cst_64 = arith.constant dense<0.000000e+00> : vector<16x32xf32>
    %194 = tpu.matmul %191, %185, %cst_64 {dimension_numbers = #tpu.dot_dimension_numbers<[1], [0], [0], [1], [0, 0, 1, 1], [], []>} : vector<16x16xf32>, vector<16x32xf32>, vector<16x32xf32> -> vector<16x32xf32>
    %195 = tpu.reciprocal %193 {approx = true} : vector<16x1xf32> -> vector<16x1xf32>
    %196 = arith.mulf %193, %195 : vector<16x1xf32>
    %cst_65 = arith.constant 2.000000e+00 : f32
    %197 = vector.broadcast %cst_65 : f32 to vector<16x1xf32>
    %198 = arith.subf %197, %196 : vector<16x1xf32>
    %199 = arith.mulf %195, %198 : vector<16x1xf32>
    %200 = vector.broadcast %199 : vector<16x1xf32> to vector<16x32xf32>
    %201 = arith.mulf %194, %200 : vector<16x32xf32>
    %c16_66 = arith.constant 16 : index
    %c96_67 = arith.constant 96 : index
    %202 = vector.load %arg9[%c16_66, %c96_67] : memref<32x128xf32, #tpu.memory_space<vmem>>, vector<16x32xf32>
    tpu.vector_store %arg9[%c16_66, %c96_67], %201 {strides = array<i32>} : memref<32x128xf32, #tpu.memory_space<vmem>>, vector<16x32xf32>,
    %c0_68 = arith.constant 0 : index
    %c0_69 = arith.constant 0 : index
    %203 = vector.load %arg9[%c0_68, %c0_69] : memref<32x128xf32, #tpu.memory_space<vmem>>, vector<32x128xf32>
    %c0_70 = arith.constant 0 : index
    %c0_71 = arith.constant 0 : index
    %204 = vector.load %arg6[%c0_70, %c0_71] : memref<128x128xf32, #tpu.memory_space<vmem>>, vector<128x128xf32>
    %cst_72 = arith.constant dense<0.000000e+00> : vector<32x128xf32>
    %205 = tpu.matmul %203, %204, %cst_72 {dimension_numbers = #tpu.dot_dimension_numbers<[1], [0], [0], [1], [0, 0, 1, 1], [], []>} : vector<32x128xf32>, vector<128x128xf32>, vector<32x128xf32> -> vector<32x128xf32>
    %c0_73 = arith.constant 0 : index
    %c0_74 = arith.constant 0 : index
    %206 = vector.load %arg7[%c0_73, %c0_74] : memref<1x128xf32, #tpu.memory_space<vmem>>, vector<1x128xf32>
    %207 = vector.broadcast %206 : vector<1x128xf32> to vector<32x128xf32>
    %208 = arith.addf %205, %207 : vector<32x128xf32>
    %c0_75 = arith.constant 0 : index
    %c0_76 = arith.constant 0 : index
    %209 = vector.load %arg8[%c0_75, %c0_76] : memref<32x128xf32, #tpu.memory_space<vmem>>, vector<32x128xf32>
    tpu.vector_store %arg8[%c0_75, %c0_76], %208 {strides = array<i32>} : memref<32x128xf32, #tpu.memory_space<vmem>>, vector<32x128xf32>,
    return
  }
  func.func @transform_0(%arg0: i32) -> (i32, i32) {
    %c0_i32 = arith.constant 0 : i32
    %c0_i32_0 = arith.constant 0 : i32
    return %arg0, %c0_i32 : i32, i32
  }
  func.func @transform_1(%arg0: i32) -> (i32, i32) {
    %c0_i32 = arith.constant 0 : i32
    %c0_i32_0 = arith.constant 0 : i32
    %c0_i32_1 = arith.constant 0 : i32
    return %c0_i32, %c0_i32_0 : i32, i32
  }
  func.func @transform_2(%arg0: i32) -> (i32, i32) {
    %c0_i32 = arith.constant 0 : i32
    %c0_i32_0 = arith.constant 0 : i32
    %c0_i32_1 = arith.constant 0 : i32
    return %c0_i32, %c0_i32_0 : i32, i32
  }
  func.func @transform_3(%arg0: i32) -> (i32, i32) {
    %c0_i32 = arith.constant 0 : i32
    %c0_i32_0 = arith.constant 0 : i32
    %c0_i32_1 = arith.constant 0 : i32
    return %c0_i32, %c0_i32_0 : i32, i32
  }
  func.func @transform_4(%arg0: i32) -> (i32, i32) {
    %c0_i32 = arith.constant 0 : i32
    %c0_i32_0 = arith.constant 0 : i32
    %c0_i32_1 = arith.constant 0 : i32
    return %c0_i32, %c0_i32_0 : i32, i32
  }
  func.func @transform_5(%arg0: i32) -> (i32, i32) {
    %c0_i32 = arith.constant 0 : i32
    %c0_i32_0 = arith.constant 0 : i32
    %c0_i32_1 = arith.constant 0 : i32
    return %c0_i32, %c0_i32_0 : i32, i32
  }
  func.func @transform_6(%arg0: i32) -> (i32, i32) {
    %c0_i32 = arith.constant 0 : i32
    %c0_i32_0 = arith.constant 0 : i32
    %c0_i32_1 = arith.constant 0 : i32
    return %c0_i32, %c0_i32_0 : i32, i32
  }
  func.func @transform_7(%arg0: i32) -> (i32, i32) {
    %c0_i32 = arith.constant 0 : i32
    %c0_i32_0 = arith.constant 0 : i32
    return %arg0, %c0_i32 : i32, i32
  }
}

</mosaic_0001>

<bundles_post_ra>
// kernel: tpu_custom_call.1
= control target key start
LH: loop header
LB: loop body
LE: loop exit
PB: predicated region body
PF: predicated region fallthrough
CT: control target
= control target key end

     0   :  { %12 = vsyncpa [#allocation4], 0  ;;  %s3472_s0 = inlined_call_operand.hbm [shape: f32[32,128], index: 0, kind: input, shape index: {}]   ;;  %s3473_s1 = inlined_call_operand.hbm [shape: f32[128,384], index: 1, kind: input, shape index: {}]   ;;  %s3474_s2 = inlined_call_operand.vmem [shape: f32[1,384], index: 2, kind: input, shape index: {}]   ;;  %s3475_s3 = inlined_call_operand.vmem [shape: f32[1,128], index: 3, kind: input, shape index: {}]   ;;  %s3476_s4 = inlined_call_operand.vmem [shape: f32[1,128], index: 4, kind: input, shape index: {}]   ;;  %s3477_s5 = inlined_call_operand.hbm [shape: f32[128,128], index: 5, kind: input, shape index: {}]   ;;  %s3478_s6 = inlined_call_operand.vmem [shape: f32[1,128], index: 6, kind: input, shape index: {}]   ;;  %s3479_s7 = inlined_call_operand.hbm [shape: f32[32,128], index: 7, kind: output, shape index: {}]  }
   0x1   :  { %13 = vsyncpa [#allocation7], 0 }
   0x2   :  { %14 = vsyncpa [#allocation5], 0  ;;  %s2990_s24 = smov [#allocation6]   ;;  %s2896_s28 = scalar_lea.hbm %s3473_s1, 6144 }
   0x3   :  { %s32_s25 = sshll.u32 %s2990_s24, 4  ;;  %p2897_p0 = scmp.ne.s32.totalorder %s3473_s1, %s2896_s28  ;;  %s33_s25 = int_to_ptr.vmem [resolvable:$true] %s32_s25 }
   0x4   :  { %p2900_p1 = scmp.lt.u32.totalorder %s2896_s28, %s3473_s1 }
   0x6   :  { %p2902_p2 = pnand %p2900_p1, %p2897_p0 }
   0x8   :  { %2905 = shalt.err (!%p2902_p2)
}
   0x9   :  { %s2906_s10 = scalar_lea.vmem %s33_s25, 6144  ;;  %p2911_p4 = scmp.lt.s32.totalorder %s33_s25, %s33_s25 }
   0xa   :  { %p2907_p3 = scmp.ne.s32.totalorder %s33_s25, %s2906_s10  ;;  %p2912_p5 = scmp.lt.s32.totalorder %s2906_s10, %s2906_s10 }
   0xc   :  { %p2913_p6 = por %p2912_p5, %p2911_p4 }
   0xe   :  { %p2914_p7 = pnand %p2913_p6, %p2907_p3 }
  0x10   :  { %2917 = shalt.err (!%p2914_p7)
}
  0x11   :  { %s2991_s11 = smov 384   ;;  %s2992_s12 = smov 24  }
  0x12   :  { %38 = dma.hbm_to_vmem [thread:$0]  %s3473_s1, 6144, %s33_s25, [#allocation7], %s2991_s11, %s2991_s11, %s2992_s12  }
  0x13   :  { %s2993_s15 = smov [#allocation3]   ;;  %s2918_s19 = scalar_lea.hbm %s3472_s0, 512 }
  0x14   :  { %s20_s16 = sshll.u32 %s2993_s15, 4  ;;  %p2919_p8 = scmp.ne.s32.totalorder %s3472_s0, %s2918_s19  ;;  %s21_s16 = int_to_ptr.vmem [resolvable:$true] %s20_s16 }
  0x15   :  { %p2922_p9 = scmp.lt.u32.totalorder %s2918_s19, %s3472_s0 }
  0x17   :  { %p2924_p10 = pnand %p2922_p9, %p2919_p8 }
  0x19   :  { %2927 = shalt.err (!%p2924_p10)
}
  0x1a   :  { %s2928_s24 = scalar_lea.vmem %s21_s16, 512  ;;  %p2933_p12 = scmp.lt.s32.totalorder %s21_s16, %s21_s16 }
  0x1b   :  { %p2929_p11 = scmp.ne.s32.totalorder %s21_s16, %s2928_s24  ;;  %p2934_p13 = scmp.lt.s32.totalorder %s2928_s24, %s2928_s24 }
  0x1d   :  { %p2935_p0 = por %p2934_p13, %p2933_p12 }
  0x1f   :  { %p2936_p1 = pnand %p2935_p0, %p2929_p11 }
  0x21   :  { %2939 = shalt.err (!%p2936_p1)
}
  0x22   :  { %s2994_s1 = smov 128   ;;  %s2995_s25 = smov 8  }
  0x23   :  { %26 = dma.hbm_to_vmem [thread:$0]  %s3472_s0, 512, %s21_s16, [#allocation4], %s2994_s1, %s2994_s1, %s2995_s25  }
  0x24   :  { %s2996_s28 = smov [#allocation8]   ;;  %s2940_s9 = scalar_lea.hbm %s3477_s5, 2048 }
  0x25   :  { %s50_s29 = sshll.u32 %s2996_s28, 4  ;;  %p2941_p2 = scmp.ne.s32.totalorder %s3477_s5, %s2940_s9  ;;  %s51_s29 = int_to_ptr.vmem [resolvable:$true] %s50_s29 }
  0x26   :  { %p2944_p3 = scmp.lt.u32.totalorder %s2940_s9, %s3477_s5 }
  0x28   :  { %p2946_p4 = pnand %p2944_p3, %p2941_p2 }
  0x2a   :  { %2949 = shalt.err (!%p2946_p4)
}
  0x2b   :  { %s2950_s14 = scalar_lea.vmem %s51_s29, 2048  ;;  %p2955_p6 = scmp.lt.s32.totalorder %s51_s29, %s51_s29 }
  0x2c   :  { %p2951_p5 = scmp.ne.s32.totalorder %s51_s29, %s2950_s14  ;;  %p2956_p7 = scmp.lt.s32.totalorder %s2950_s14, %s2950_s14 }
  0x2e   :  { %p2957_p8 = por %p2956_p7, %p2955_p6 }
  0x30   :  { %p2958_p9 = pnand %p2957_p8, %p2951_p5 }
  0x32   :  { %2961 = shalt.err (!%p2958_p9)
}
  0x33   :  { %56 = dma.hbm_to_vmem [thread:$0]  %s3477_s5, 2048, %s51_s29, [#allocation7], %s2994_s1, %s2994_s1, %s2995_s25  }
  0x34   :  { %2984 = dma.done.wait [#allocation4], 512  }
  0x35   :  { %2985 = vsyncadd [#allocation4], 4294966784 }
  0x36   :  { %2986 = dma.done.wait [#allocation7], 8192  }
  0x37   :  { %2987 = vsyncadd [#allocation7], 4294959104  ;;  %v2997_v0 = vmov 0.0   ;;  %v73_v1 = vld [vmem:[#allocation6 + $0x8] sm:$0xff]  ;;  %v76_v2 = vld [vmem:[#allocation6 + $0x20] sm:$0xff]  ;;  %vm391_vm0 = vcmask 261120  }
  0x38   :  { %201 = vmatprep.mubr.f32.mxu0 %v2997_v0  ;;  %v72_v3 = vld [vmem:[#allocation6] sm:$0xff]  ;;  %v2568_v4 = vpack.c.bf16 %v76_v2, %v73_v1  ;;  %v75_v5 = vld [vmem:[#allocation6 + $0x18] sm:$0xff]  ;;  %v82_v7 = vld [vmem:[#allocation6 + $0x50] sm:$0xff]  ;;  %vm479_vm2 = vcmask 130048   ;;  %s3000_s20 = smov 32   ;;  %vm807_vm3 = vcmask 523520  }
  0x39   :  { %v79_v6 = vld [vmem:[#allocation6 + $0x38] sm:$0xff]  ;;  %v2570_v8 = vpack.c.bf16 %v75_v5, %v72_v3  ;;  %v78_v10 = vld [vmem:[#allocation6 + $0x30] sm:$0xff]  ;;  %v81_v11 = vld [vmem:[#allocation6 + $0x48] sm:$0xff]  ;;  %v122_v3 = vlaneseq  ;;  %vm1024_vm4 = vcmask 785920   ;;  %vm1241_vm5 = vcmask 1048320   ;;  %s3001_s23 = smov [#allocation9]  }
  0x3a   :  { %v2572_v9 = vpack.c.bf16 %v82_v7, %v79_v6  ;;  %v85_v12 = vld [vmem:[#allocation6 + $0x68] sm:$0xff]  ;;  %2569 = vmatprep.subr.bf16.mxu0 %v2568_v4  ;;  %v88_v13 = vld [vmem:[#allocation6 + $0x80] sm:$0xff]  ;;  %v2574_v14 = vpack.c.bf16 %v81_v11, %v78_v10  ;;  %v87_v17 = vld [vmem:[#allocation6 + $0x78] sm:$0xff]  ;;  %s2213_s24 = sshll.u32 %s3001_s23, 4  ;;  %s2214_s24 = int_to_ptr.vmem [resolvable:$true] %s2213_s24 }
  0x3b   :  { %2571 = vmatpush1.bf16.msra.mxu0 %v2570_v8  ;;  %v2576_v15 = vpack.c.bf16 %v88_v13, %v85_v12  ;;  %v84_v16 = vld [vmem:[#allocation6 + $0x60] sm:$0xff]  ;;  %v91_v18 = vld [vmem:[#allocation6 + $0x98] sm:$0xff]  ;;  %v94_v19 = vld [vmem:[#allocation6 + $0xb0] sm:$0xff]  ;;  %v3090_v4 = vshrl.u32 %v122_v3, 7  ;;  %s2962_s26 = scalar_lea.vmem %s2214_s24, 512  ;;  %p2967_p11 = scmp.lt.s32.totalorder %s2214_s24, %s2214_s24 }
  0x3c   :  { %2573 = vmatprep.subr.bf16.mxu0 %v2572_v9  ;;  %v2578_v20 = vpack.c.bf16 %v87_v17, %v84_v16  ;;  %v2580_v21 = vpack.c.bf16 %v94_v19, %v91_v18  ;;  %v90_v22 = vld [vmem:[#allocation6 + $0x90] sm:$0xff]  ;;  %v93_v23 = vld [vmem:[#allocation6 + $0xa8] sm:$0xff]  ;;  %v100_v25 = vld [vmem:[#allocation6 + $0xe0] sm:$0xff]  ;;  %p2963_p10 = scmp.ne.s32.totalorder %s2214_s24, %s2962_s26  ;;  %p2968_p12 = scmp.lt.s32.totalorder %s2962_s26, %s2962_s26 }
  0x3d   :  { %v97_v24 = vld [vmem:[#allocation6 + $0xc8] sm:$0xff]  ;;  %v68_v26 = vld [vmem:[#allocation3] sm:$0xff]  ;;  %v2582_v27 = vpack.c.bf16 %v93_v23, %v90_v22  ;;  %v99_v30 = vld [vmem:[#allocation6 + $0xd8] sm:$0xff]  ;;  %v124_v5 = vsub.s32 0, %v3090_v4  ;;  %v128_v7 = vsub.s32 1, %v3090_v4 }
  0x3e   :  { %2412 = vmatprep.mubr.f32.mxu1 %v68_v26  ;;  %v2584_v28 = vpack.c.bf16 %v100_v25, %v97_v24  ;;  %v96_v29 = vld [vmem:[#allocation6 + $0xc0] sm:$0xff]  ;;  %v103_v31 = vld [vmem:[#allocation6 + $0xf8] sm:$0xff]  ;;  %v106_v32 = vld [vmem:[#allocation6 + $0x110] sm:$0xff]  ;;  %p2969_p13 = por %p2968_p12, %p2967_p11 }
  0x3f   :  { %2575 = vmatpush1.bf16.msra.mxu0 %v2574_v14  ;;  %v2586_v33 = vpack.c.bf16 %v99_v30, %v96_v29  ;;  %v2588_v34 = vpack.c.bf16 %v106_v32, %v103_v31  ;;  %v102_v35 = vld [vmem:[#allocation6 + $0xf0] sm:$0xff]  ;;  %v105_v36 = vld [vmem:[#allocation6 + $0x108] sm:$0xff]  ;;  %v112_v38 = vld [vmem:[#allocation6 + $0x140] sm:$0xff] }
  0x40   :  { %2577 = vmatprep.subr.bf16.mxu0 %v2576_v15  ;;  %v109_v37 = vld [vmem:[#allocation6 + $0x128] sm:$0xff]  ;;  %v2590_v39 = vpack.c.bf16 %v105_v36, %v102_v35  ;;  %v108_v41 = vld [vmem:[#allocation6 + $0x120] sm:$0xff]  ;;  %v111_v42 = vld [vmem:[#allocation6 + $0x138] sm:$0xff]  ;;  %p2970_p0 = pnand %p2969_p13, %p2963_p10 }
  0x41   :  { %v2592_v40 = vpack.c.bf16 %v112_v38, %v109_v37  ;;  %v115_v43 = vld [vmem:[#allocation6 + $0x158] sm:$0xff]  ;;  %v118_v44 = vld [vmem:[#allocation6 + $0x170] sm:$0xff]  ;;  %v2594_v45 = vpack.c.bf16 %v111_v42, %v108_v41  ;;  %v117_v48 = vld [vmem:[#allocation6 + $0x168] sm:$0xff] }
  0x42   :  { %v2596_v46 = vpack.c.bf16 %v118_v44, %v115_v43  ;;  %v114_v47 = vld [vmem:[#allocation6 + $0x150] sm:$0xff]  ;;  %v3086_v50 = vld [vmem:[#allocation3 + $0x8] sm:$0xff]  ;;  %v80_v53 = vld [vmem:[#allocation6 + $0x40] sm:$0xff] }
  0x43   :  { %2579 = vmatpush1.bf16.msra.mxu0 %v2578_v20  ;;  %v2598_v49 = vpack.c.bf16 %v117_v48, %v114_v47  ;;  %v74_v51 = vld [vmem:[#allocation6 + $0x10] sm:$0xff]  ;;  %v77_v52 = vld [vmem:[#allocation6 + $0x28] sm:$0xff]  ;;  %v83_v55 = vld [vmem:[#allocation6 + $0x58] sm:$0xff] }
  0x44   :  { %2581 = vmatprep.subr.bf16.mxu0 %v2580_v21  ;;  %v2600_v54 = vpack.c.bf16 %v77_v52, %v74_v51  ;;  %v2604_v56 = vpack.c.bf16 %v83_v55, %v80_v53  ;;  %v86_v57 = vld [vmem:[#allocation6 + $0x70] sm:$0xff]  ;;  %v89_v58 = vld [vmem:[#allocation6 + $0x88] sm:$0xff]  ;;  %v92_v60 = vld [vmem:[#allocation6 + $0xa0] sm:$0xff] }
  0x45   :  { %v2608_v59 = vpack.c.bf16 %v89_v58, %v86_v57  ;;  %v95_v61 = vld [vmem:[#allocation6 + $0xb8] sm:$0xff]  ;;  %v98_v63 = vld [vmem:[#allocation6 + $0xd0] sm:$0xff]  ;;  %v101_v1 = vld [vmem:[#allocation6 + $0xe8] sm:$0xff] }
  0x46   :  { %2601 = vmatprep.subr.bf16.mxu1 %v2600_v54  ;;  %v2612_v62 = vpack.c.bf16 %v95_v61, %v92_v60  ;;  %v2616_v2 = vpack.c.bf16 %v101_v1, %v98_v63  ;;  %v3096_v6 = vld [vmem:[%s3474_s2] sm:$0x7]  ;;  %v107_v23 = vld [vmem:[#allocation6 + $0x118] sm:$0xff]  ;;  %v110_v25 = vld [vmem:[#allocation6 + $0x130] sm:$0xff]  ;;  %v132_v63 = vsub.s32 2, %v3090_v4 }
  0x47   :  { %2583 = vmatpush1.bf16.msra.mxu0 %v2582_v27  ;;  %2603 = vmatpush3.bf16.msra.mxu1 %v2600_v54  ;;  %v3100_v8 = vrot.slane %v3096_v6, %v124_v5  ;;  %v3103_v9 = vrot.slane %v3096_v6, %v128_v7  ;;  %v104_v22 = vld [vmem:[#allocation6 + $0x100] sm:$0xff]  ;;  %v119_v29 = vld [vmem:[#allocation6 + $0x178] sm:$0xff]  ;;  %v70_v31 = vld [vmem:[#allocation3 + $0x10] sm:$0xff] }
  0x48   :  { %2585 = vmatprep.subr.bf16.mxu0 %v2584_v28  ;;  %2605 = vmatprep.subr.bf16.mxu1 %v2604_v56  ;;  %v2620_v24 = vpack.c.bf16 %v107_v23, %v104_v22  ;;  %v116_v28 = vld [vmem:[#allocation6 + $0x160] sm:$0xff]  ;;  %v71_v32 = vld [vmem:[#allocation3 + $0x18] sm:$0xff]  ;;  %vm3134_vm1 = vmpackc.low %vm391_vm0, %vm391_vm0  ;;  %v133_v1 = vrot.slane %v3096_v6, %v132_v63 }
  0x49   :  { %v2628_v30 = vpack.c.bf16 %v119_v29, %v116_v28  ;;  %v311_v42 = vld [vmem:[%s3475_s3] sm:$0x1]  ;;  %s2998_s3 = smov 96  }
  0x4a   :  { %v3126_v53 = vld [vmem:[%s3476_s4] ss:$0 sm:$0xff]  ;;  %s2999_s4 = smov 64  }
  0x4b   :  { %2587 = vmatpush1.bf16.msra.mxu0 %v2586_v33  ;;  %2607 = vmatpush3.bf16.msra.mxu1 %v2604_v56 }
  0x4c   :  { %2589 = vmatprep.subr.bf16.mxu0 %v2588_v34  ;;  %2609 = vmatprep.subr.bf16.mxu1 %v2608_v59 }
  0x4f   :  { %2591 = vmatpush1.bf16.msra.mxu0 %v2590_v39  ;;  %2611 = vmatpush3.bf16.msra.mxu1 %v2608_v59 }
  0x50   :  { %2593 = vmatprep.subr.bf16.mxu0 %v2592_v40  ;;  %2613 = vmatprep.subr.bf16.mxu1 %v2612_v62 }
  0x53   :  { %2595 = vmatpush1.bf16.msra.mxu0 %v2594_v45  ;;  %2615 = vmatpush3.bf16.msra.mxu1 %v2612_v62  ;;  %v312_v45 = vmul.f32 0.17677669, %v311_v42 }
  0x54   :  { %2597 = vmatprep.subr.bf16.mxu0 %v2596_v46  ;;  %2617 = vmatprep.subr.bf16.mxu1 %v2616_v2 }
  0x55   :  { %v3118_v46 = vrot.slane %v312_v45, %v124_v5 }
  0x57   :  { %2599 = vmatpush1.bf16.msra.mxu0 %v2598_v49  ;;  %2619 = vmatpush3.bf16.msra.mxu1 %v2616_v2 }
  0x58   :  { %2621 = vmatprep.subr.bf16.mxu1 %v2620_v24 }
  0x5a   :  { %202 = vmatmul.mubr.f32.vlgmr.msra.gmra.mrb[0].mxu0 %v68_v26  ;;  %v113_v26 = vld [vmem:[#allocation6 + $0x148] sm:$0xff] }
  0x5b   :  { %207 = vmatprep.mubr.f32.mxu0 %v2997_v0  ;;  %2623 = vmatpush3.bf16.msra.mxu1 %v2620_v24  ;;  %v2624_v27 = vpack.c.bf16 %v113_v26, %v110_v25 }
  0x5d   :  { %2625 = vmatprep.subr.bf16.mxu1 %v2624_v27 }
  0x5e   :  { %208 = vmatmul.mubr.f32.gmra.mrb[2].mxu0 %v3086_v50 }
  0x5f   :  { %213 = vmatprep.mubr.f32.mxu0 %v2997_v0  ;;  %2627 = vmatpush3.bf16.msra.mxu1 %v2624_v27 }
  0x60   :  { %2629 = vmatprep.subr.bf16.mxu1 %v2628_v30 }
  0x62   :  { %214 = vmatmul.mubr.f32.gmra.mrb[4].mxu0 %v70_v31 }
  0x63   :  { %2631 = vmatpush3.bf16.msra.mxu1 %v2628_v30  ;;  %219 = vmatprep.mubr.f32.mxu0 %v2997_v0 }
  0x66   :  { %2413 = vmatmul.mubr.f32.vlgmr.msra.gmra.mrb[0].mxu1 %v3086_v50  ;;  %220 = vmatmul.mubr.f32.gmra.mrb[6].mxu0 %v71_v32 }
  0x67   :  { %2415 = vmatprep.mubr.f32.mxu1 %v70_v31 }
  0x6a   :  { %2416 = vmatmul.mubr.f32.gmra.mrb[2].mxu1 %v71_v32 }
 0x12d   :  { %v203_v10 = vpop.f32.mrb[0].mxu0 }
 0x12e   :  { %v204_v11 = vadd.f32 %v203_v10, %v3100_v8  ;;  %v205_v12 = vpop.f32.mrb[1].mxu0 }
 0x12f   :  { %v206_v13 = vadd.f32 %v205_v12, %v3103_v9 }
 0x130   :  { %v314_v14 = vmul.f32 %v204_v11, %v204_v11 }
 0x131   :  { %v209_v15 = vpop.f32.mrb[2].mxu0  ;;  %v353_v16 = vmul.f32 %v206_v13, %v206_v13 }
 0x132   :  { %v3108_v17 = vadd.f32 %v209_v15, %v3100_v8  ;;  %v211_v18 = vpop.f32.mrb[3].mxu0  ;;  %318 = vadd.xlane.f32.xlu1 %v314_v14 }
 0x133   :  { %v212_v19 = vadd.f32 %v211_v18, %v3103_v9  ;;  %357 = vadd.xlane.f32.xlu0 %v353_v16 }
 0x134   :  { %v315_v20 = vmul.f32 %v3108_v17, %v3108_v17 }
 0x135   :  { %v354_v21 = vmul.f32 %v212_v19, %v212_v19 }
 0x136   :  { %320 = vadd.xlane.f32.xlu1 %v315_v20  ;;  %v215_v20 = vpop.f32.mrb[4].mxu0 }
 0x137   :  { %359 = vadd.xlane.f32.xlu0 %v354_v21  ;;  %v217_v21 = vpop.f32.mrb[5].mxu0  ;;  %v3174_v25 = vadd.f32 %v215_v20, %v3100_v8 }
 0x138   :  { %v218_v24 = vadd.f32 %v217_v21, %v3103_v9 }
 0x139   :  { %v2414_v2 = vpop.f32.mrb[0].mxu1  ;;  %v221_v22 = vpop.f32.mrb[6].mxu0  ;;  %v316_v28 = vmul.f32 %v3174_v25, %v3174_v25 }
 0x13a   :  { %v298_v3 = vadd.f32 %v2414_v2, %v133_v1  ;;  %v292_v5 = vpop.f32.mrb[1].mxu1  ;;  %v223_v23 = vpop.f32.mrb[7].mxu0  ;;  %v355_v26 = vmul.f32 %v218_v24, %v218_v24  ;;  %v3180_v29 = vadd.f32 %v221_v22, %v3100_v8 }
 0x13b   :  { %v293_v7 = vadd.f32 %v292_v5, %v133_v1  ;;  %v224_v27 = vadd.f32 %v223_v23, %v3103_v9 }
 0x13c   :  { %v317_v31 = vmul.f32 %v3180_v29, %v3180_v29 }
 0x13d   :  { %v2417_v10 = vpop.f32.mrb[2].mxu1  ;;  %v3152_v15 = vpack.i.bf16 %v298_v3, %v293_v7  ;;  %v356_v30 = vmul.f32 %v224_v27, %v224_v27 }
 0x13e   :  { %v308_v12 = vadd.f32 %v2417_v10, %v133_v1 }
 0x1bf   :  { %v319_v33 = vpop.xlane.xlu1 %318 }
 0x1c0   :  { %v327_v34 = vmul.f32 0.0078125, %v319_v33  ;;  %v358_v35 = vpop.xlane.xlu0 %357 }
 0x1c1   :  { %v365_v36 = vmul.f32 0.0078125, %v358_v35 }
 0x1c2   :  { %v331_v37 = vadd.f32 1e-06, %v327_v34 }
 0x1c3   :  { %v369_v38 = vadd.f32 1e-06, %v365_v36  ;;  %v321_v39 = vpop.xlane.xlu1 %320 }
 0x1c4   :  { %2816 = vrsqrt.f32 %v331_v37  ;;  %v360_v40 = vpop.xlane.xlu0 %359  ;;  %v328_v43 = vmul.f32 0.0078125, %v321_v39 }
 0x1c5   :  { %2818 = vrsqrt.f32 %v369_v38  ;;  %v366_v41 = vmul.f32 0.0078125, %v360_v40 }
 0x1c6   :  { %v332_v0 = vadd.f32 1e-06, %v328_v43 }
 0x1c7   :  { %v370_v44 = vadd.f32 1e-06, %v366_v41 }
 0x1c9   :  { %2820 = vrsqrt.f32 %v370_v44 }
 0x1ca   :  { %2822 = vrsqrt.f32 %v332_v0 }
 0x1ce   :  { %v2817_v47 = vpop.eup %2816 }
 0x1cf   :  { %v2819_v48 = vpop.eup %2818  ;;  %v339_v49 = vmul.f32 %v2817_v47, %v204_v11  ;;  %v2638_v11 = vpack.c.bf16 %v298_v3, %v293_v7 }
 0x1d0   :  { %v377_v51 = vmul.f32 %v2819_v48, %v206_v13  ;;  %v302_v13 = vpop.f32.mrb[3].mxu1 }
 0x1d1   :  { %v3121_v50 = vmul.f32 %v3118_v46, %v339_v49  ;;  %v303_v14 = vadd.f32 %v302_v13, %v133_v1 }
 0x1d2   :  { %v387_v55 = vmul.f32 %v3126_v53, %v377_v51 }
 0x1d3   :  { %v2821_v52 = vpop.eup %2820  ;;  %2422 = vmatprep.mubr.msk.f32.mxu1 %vm391_vm0, %v3121_v50  ;;  %v3154_v16 = vpack.c.bf16 %v308_v12, %v303_v14 }
 0x1d4   :  { %v378_v54 = vmul.f32 %v2821_v52, %v212_v19  ;;  %v2823_v60 = vpop.eup %2822 }
 0x1d5   :  { %v340_v61 = vmul.f32 %v2823_v60, %v3108_v17  ;;  %v3156_v17 = vpack.i.bf16 %v308_v12, %v303_v14 }
 0x1d6   :  { %v388_v56 = vmul.f32 %v3126_v53, %v378_v54 }
 0x1d7   :  { %v3146_v62 = vmul.f32 %v3118_v46, %v340_v61 }
 0x1d8   :  { %v2632_v58 = vpack.c.bf16 %v388_v56, %v387_v55  ;;  %v3138_v59 = vpack.i.bf16 %v388_v56, %v387_v55 }
 0x1da   :  { %2634 = vmatprep.subr.msk.bf16.mxu1 %vm3134_vm1, %v2632_v58 }
 0x1db   :  { %2637 = vmatpush3.bf16.xpose.msk.msra.mxu1 %vm3134_vm1, %v2632_v58 }
 0x1dc   :  { %2639 = vmatprep.subr.bf16.mxu1 %v2638_v11 }
 0x1e2   :  { %2423 = vmatmul.mubr.msk.f32.vlgmr.msra.gmra.mrb[4].mxu1 %vm391_vm0, %v3146_v62 }
 0x1e3   :  { %2641 = vmatpush3.bf16.msra.mxu1 %v2638_v11 }
 0x2b5   :  { %v2424_v4 = vpop.f32.mrb[4].mxu1 }
 0x2b6   :  { %v470_v6 = vpop.f32.mrb[5].mxu1  ;;  %v483_v18 = vsel %vm479_vm2, %v2424_v4, -inf }
 0x2b7   :  { %484 = vmax.xlane.f32.xlu1 %v483_v18  ;;  %v480_v19 = vsel %vm479_vm2, %v470_v6, -inf }
 0x2b8   :  { %481 = vmax.xlane.f32.xlu0 %v480_v19 }
 0x2c8   :  { %591 = vrot.lane.b32.xlu1 %v3121_v50, %s2998_s3 }
 0x2cc   :  { %2762 = vrot.lane.b32.xlu1 %v3138_v59, %s2999_s4 }
 0x2ce   :  { %2757 = vrot.lane.b32.xlu0 %v3138_v59, %s2998_s3 }
 0x2d0   :  { %593 = vrot.lane.b32.xlu1 %v3146_v62, %s2998_s3 }
 0x2d2   :  { %810 = vrot.lane.b32.xlu0 %v3121_v50, %s2999_s4 }
 0x2d4   :  { %812 = vrot.lane.b32.xlu1 %v3146_v62, %s2999_s4 }
 0x2f1   :  { %361 = vadd.xlane.f32.xlu0 %v355_v26 }
 0x2f5   :  { %322 = vadd.xlane.f32.xlu0 %v316_v28 }
 0x2f8   :  { %363 = vadd.xlane.f32.xlu1 %v356_v30 }
 0x2fc   :  { %324 = vadd.xlane.f32.xlu1 %v317_v31 }
 0x344   :  { %v485_v32 = vpop.xlane.xlu1 %484 }
 0x345   :  { %v487_v33 = vsub.f32 %v2424_v4, %v485_v32  ;;  %v482_v34 = vpop.xlane.xlu0 %481 }
 0x346   :  { %v486_v35 = vsub.f32 %v470_v6, %v482_v34 }
 0x347   :  { %v490_v36 = vmul.f32 1.442695, %v487_v33 }
 0x348   :  { %v488_v9 = vmul.f32 1.442695, %v486_v35  ;;  %v592_v37 = vpop.permute.xlu1 %591 }
 0x349   :  { %v2758_v38 = vpop.permute.xlu0 %2757 }
 0x34a   :  { %2824 = vpow2.f32 %v488_v9  ;;  %v2760_v39 = vunpack.i.h.bf16 %v2758_v38  ;;  %v2759_v40 = vunpack.i.l.bf16 %v2758_v38 }
 0x34b   :  { %2826 = vpow2.f32 %v490_v36 }
 0x34c   :  { %v2642_v8 = vpack.c.bf16 %v2760_v39, %v2759_v40  ;;  %v2763_v41 = vpop.permute.xlu1 %2762 }
 0x34d   :  { %v2765_v42 = vunpack.i.h.bf16 %v2763_v41  ;;  %v2764_v43 = vunpack.i.l.bf16 %v2763_v41  ;;  %v811_v44 = vpop.permute.xlu0 %810 }
 0x34e   :  { %2644 = vmatprep.subr.msk.bf16.mxu1 %vm3134_vm1, %v2642_v8  ;;  %2450 = vmatprep.mubr.msk.f32.mxu0 %vm391_vm0, %v811_v44 }
 0x34f   :  { %v2652_v45 = vpack.c.bf16 %v2765_v42, %v2764_v43 }
 0x350   :  { %v594_v0 = vpop.permute.xlu1 %593 }
 0x351   :  { %2654 = vmatprep.subr.msk.bf16.mxu0 %vm3134_vm1, %v2652_v45 }
 0x352   :  { %2657 = vmatpush3.bf16.xpose.msk.msra.mxu0 %vm3134_vm1, %v2652_v45 }
 0x354   :  { %v3191_v47 = vpop.eup %2824  ;;  %v813_v49 = vpop.permute.xlu1 %812 }
 0x355   :  { %v3193_v48 = vpop.eup %2826  ;;  %2429 = vmatprep.mubr.msk.f32.mxu1 %vm479_vm2, %v3191_v47 }
 0x356   :  { %2430 = vmatmul.mubr.msk.f32.vlgmr.msra.gmra.mrb[6].mxu1 %vm479_vm2, %v3193_v48 }
 0x357   :  { %2647 = vmatpush3.bf16.xpose.msk.msra.mxu1 %vm3134_vm1, %v2642_v8  ;;  %2436 = vmatprep.mubr.msk.f32.mxu1 %vm391_vm0, %v592_v37 }
 0x359   :  { %2451 = vmatmul.mubr.msk.f32.vlgmr.msra.gmra.mrb[8].mxu0 %vm391_vm0, %v813_v49 }
 0x35e   :  { %2437 = vmatmul.mubr.msk.f32.vlgmr.msra.gmra.mrb[8].mxu1 %vm391_vm0, %v594_v0 }
 0x37e   :  { %v362_v52 = vpop.xlane.xlu0 %361 }
 0x37f   :  { %v367_v54 = vmul.f32 0.0078125, %v362_v52 }
 0x381   :  { %v371_v56 = vadd.f32 1e-06, %v367_v54 }
 0x382   :  { %v323_v19 = vpop.xlane.xlu0 %322 }
 0x383   :  { %2828 = vrsqrt.f32 %v371_v56  ;;  %v329_v38 = vmul.f32 0.0078125, %v323_v19 }
 0x385   :  { %v364_v51 = vpop.xlane.xlu1 %363  ;;  %v333_v8 = vadd.f32 1e-06, %v329_v38 }
 0x386   :  { %v368_v55 = vmul.f32 0.0078125, %v364_v51 }
 0x388   :  { %v372_v58 = vadd.f32 1e-06, %v368_v55 }
 0x389   :  { %v325_v21 = vpop.xlane.xlu1 %324 }
 0x38a   :  { %2830 = vrsqrt.f32 %v372_v58  ;;  %v330_v44 = vmul.f32 0.0078125, %v325_v21 }
 0x38c   :  { %v334_v51 = vadd.f32 1e-06, %v330_v44 }
 0x38d   :  { %v2829_v60 = vpop.eup %2828 }
 0x38e   :  { %v379_v63 = vmul.f32 %v2829_v60, %v218_v24 }
 0x390   :  { %v3205_v2 = vmul.f32 %v3126_v53, %v379_v63 }
 0x394   :  { %v2831_v61 = vpop.eup %2830 }
 0x395   :  { %v380_v1 = vmul.f32 %v2831_v61, %v224_v27 }
 0x397   :  { %v3208_v3 = vmul.f32 %v3126_v53, %v380_v1 }
 0x399   :  { %v3212_v5 = vpack.i.bf16 %v3208_v3, %v3205_v2  ;;  %v2672_v56 = vpack.c.bf16 %v3208_v3, %v3205_v2 }
 0x429   :  { %v3214_v7 = vpop.f32.mrb[6].mxu1 }
 0x42a   :  { %v3216_v10 = vpop.f32.mrb[7].mxu1 }
 0x42c   :  { %v2452_v11 = vpop.f32.mrb[8].mxu0 }
 0x42d   :  { %v892_v12 = vpop.f32.mrb[9].mxu0  ;;  %v904_v13 = vsel %vm479_vm2, %v2452_v11, -inf }
 0x42e   :  { %905 = vmax.xlane.f32.xlu0 %v904_v13  ;;  %v901_v4 = vsel %vm479_vm2, %v892_v12, -inf }
 0x431   :  { %v2438_v14 = vpop.f32.mrb[8].mxu1 }
 0x432   :  { %v673_v6 = vpop.f32.mrb[9].mxu1  ;;  %902 = vmax.xlane.f32.xlu0 %v901_v4  ;;  %v685_v53 = vsel %vm479_vm2, %v2438_v14, -inf }
 0x433   :  { %686 = vmax.xlane.f32.xlu1 %v685_v53  ;;  %v682_v18 = vsel %vm479_vm2, %v673_v6, -inf }
 0x436   :  { %683 = vmax.xlane.f32.xlu0 %v682_v18 }
 0x444   :  { %2772 = vrot.lane.b32.xlu1 %v3152_v15, %s2999_s4 }
 0x448   :  { %2777 = vrot.lane.b32.xlu1 %v3138_v59, %s3000_s20 }
 0x44c   :  { %1027 = vrot.lane.b32.xlu1 %v3121_v50, %s3000_s20  ;;  %2767 = vrot.lane.b32.xlu0 %v3152_v15, %s2998_s3 }
 0x450   :  { %1029 = vrot.lane.b32.xlu0 %v3146_v62, %s3000_s20 }
 0x4bb   :  { %v906_v20 = vpop.xlane.xlu0 %905 }
 0x4bc   :  { %v908_v59 = vsub.f32 %v2452_v11, %v906_v20 }
 0x4be   :  { %v911_v9 = vmul.f32 1.442695, %v908_v59 }
 0x4bf   :  { %v903_v22 = vpop.xlane.xlu0 %902 }
 0x4c0   :  { %v687_v23 = vpop.xlane.xlu1 %686  ;;  %v907_v26 = vsub.f32 %v892_v12, %v903_v22 }
 0x4c1   :  { %v689_v24 = vsub.f32 %v2438_v14, %v687_v23 }
 0x4c2   :  { %v909_v32 = vmul.f32 1.442695, %v907_v26 }
 0x4c3   :  { %v684_v27 = vpop.xlane.xlu0 %683  ;;  %v692_v31 = vmul.f32 1.442695, %v689_v24 }
 0x4c4   :  { %v2773_v28 = vpop.permute.xlu1 %2772  ;;  %v688_v30 = vsub.f32 %v673_v6, %v684_v27 }
 0x4c5   :  { %v2775_v33 = vunpack.i.h.bf16 %v2773_v28  ;;  %v2774_v35 = vunpack.i.l.bf16 %v2773_v28 }
 0x4c6   :  { %v690_v50 = vmul.f32 1.442695, %v688_v30 }
 0x4c7   :  { %v2768_v34 = vpop.permute.xlu0 %2767  ;;  %v2658_v39 = vpack.c.bf16 %v2775_v33, %v2774_v35 }
 0x4c8   :  { %2832 = vpow2.f32 %v690_v50  ;;  %v2770_v36 = vunpack.i.h.bf16 %v2768_v34  ;;  %v2769_v62 = vunpack.i.l.bf16 %v2768_v34  ;;  %v2778_v40 = vpop.permute.xlu1 %2777 }
 0x4c9   :  { %2834 = vpow2.f32 %v692_v31  ;;  %v2780_v41 = vunpack.i.h.bf16 %v2778_v40  ;;  %v2779_v42 = vunpack.i.l.bf16 %v2778_v40 }
 0x4ca   :  { %2836 = vpow2.f32 %v909_v32  ;;  %v2648_v37 = vpack.c.bf16 %v2770_v36, %v2769_v62 }
 0x4cb   :  { %2838 = vpow2.f32 %v911_v9  ;;  %v2662_v49 = vpack.c.bf16 %v2780_v41, %v2779_v42  ;;  %v1030_v61 = vpop.permute.xlu0 %1029 }
 0x4cc   :  { %2649 = vmatprep.subr.bf16.mxu1 %v2648_v37  ;;  %2840 = vrsqrt.f32 %v333_v8  ;;  %v1028_v54 = vpop.permute.xlu1 %1027 }
 0x4cd   :  { %2651 = vmatpush3.bf16.msra.mxu1 %v2648_v37  ;;  %2842 = vrsqrt.f32 %v334_v51 }
 0x4ce   :  { %2659 = vmatprep.subr.bf16.mxu1 %v2658_v39 }
 0x4d2   :  { %v3232_v43 = vpop.eup %2832 }
 0x4d3   :  { %v3234_v45 = vpop.eup %2834  ;;  %2443 = vmatprep.mubr.msk.f32.mxu1 %vm479_vm2, %v3232_v43  ;;  %v694_v57 = vsel %vm479_vm2, %v3232_v43, 0.0 }
 0x4d4   :  { %v3238_v0 = vpop.eup %2836  ;;  %2444 = vmatmul.mubr.msk.f32.vlgmr.msra.gmra.mrb[10].mxu1 %vm479_vm2, %v3234_v45 }
 0x4d5   :  { %2661 = vmatpush3.bf16.msra.mxu1 %v2658_v39  ;;  %2457 = vmatprep.mubr.msk.f32.mxu1 %vm479_vm2, %v3238_v0  ;;  %v3246_v52 = vpop.eup %2838 }
 0x4d6   :  { %2664 = vmatprep.subr.msk.bf16.mxu1 %vm3134_vm1, %v2662_v49  ;;  %v2841_v55 = vpop.eup %2840 }
 0x4d7   :  { %v341_v58 = vmul.f32 %v2841_v55, %v3174_v25  ;;  %v2843_v60 = vpop.eup %2842 }
 0x4d8   :  { %2458 = vmatmul.mubr.msk.f32.vlgmr.msra.gmra.mrb[12].mxu1 %vm479_vm2, %v3246_v52  ;;  %v342_v1 = vmul.f32 %v2843_v60, %v3180_v29 }
 0x4d9   :  { %2464 = vmatprep.mubr.msk.f32.mxu1 %vm391_vm0, %v1028_v54  ;;  %v3259_v63 = vmul.f32 %v3118_v46, %v341_v58 }
 0x4da   :  { %v3269_v2 = vmul.f32 %v3118_v46, %v342_v1 }
 0x4de   :  { %2667 = vmatpush3.bf16.xpose.msk.msra.mxu1 %vm3134_vm1, %v2662_v49 }
 0x4df   :  { %2674 = vmatprep.subr.msk.bf16.mxu1 %vm3134_vm1, %v2672_v56 }
 0x4e5   :  { %2465 = vmatmul.mubr.msk.f32.vlgmr.msra.gmra.mrb[14].mxu1 %vm391_vm0, %v1030_v61 }
 0x4e6   :  { %2677 = vmatpush3.bf16.xpose.msk.msra.mxu1 %vm3134_vm1, %v2672_v56  ;;  %2478 = vmatprep.mubr.msk.f32.mxu1 %vm391_vm0, %v3259_v63 }
 0x4e7   :  { %2679 = vmatprep.subr.bf16.mxu1 %v3154_v16 }
 0x4ed   :  { %2479 = vmatmul.mubr.msk.f32.vlgmr.msra.gmra.mrb[16].mxu1 %vm391_vm0, %v3269_v2 }
 0x4ee   :  { %2681 = vmatpush3.bf16.msra.mxu1 %v3154_v16 }
 0x5a7   :  { %v3274_v25 = vpop.f32.mrb[10].mxu1 }
 0x5a8   :  { %v3276_v3 = vpop.f32.mrb[11].mxu1 }
 0x5ab   :  { %v3278_v11 = vpop.f32.mrb[12].mxu1 }
 0x5ac   :  { %v3280_v12 = vpop.f32.mrb[13].mxu1 }
 0x5b8   :  { %v2466_v13 = vpop.f32.mrb[14].mxu1 }
 0x5b9   :  { %v1109_v29 = vpop.f32.mrb[15].mxu1  ;;  %v1121_v53 = vsel %vm479_vm2, %v2466_v13, -inf }
 0x5ba   :  { %v1118_v16 = vsel %vm479_vm2, %v1109_v29, -inf }
 0x5c0   :  { %v2480_v14 = vpop.f32.mrb[16].mxu1 }
 0x5c1   :  { %v1322_v4 = vpop.f32.mrb[17].mxu1  ;;  %v1334_v46 = vsel %vm479_vm2, %v2480_v14, -inf }
 0x5c2   :  { %1335 = vmax.xlane.f32.xlu0 %v1334_v46  ;;  %v1331_v6 = vsel %vm479_vm2, %v1322_v4, -inf }
 0x5c3   :  { %1332 = vmax.xlane.f32.xlu1 %v1331_v6 }
 0x5d4   :  { %1442 = vrot.lane.b32.xlu1 %v3259_v63, %s2998_s3 }
 0x5d8   :  { %2782 = vrot.lane.b32.xlu0 %v3212_v5, %s2998_s3  ;;  %1444 = vrot.lane.b32.xlu1 %v3269_v2, %s2998_s3 }
 0x5f7   :  { %1119 = vmax.xlane.f32.xlu0 %v1118_v16 }
 0x5fc   :  { %1122 = vmax.xlane.f32.xlu1 %v1121_v53 }
 0x60d   :  { %2792 = vrot.lane.b32.xlu1 %v3156_v17, %s2998_s3 }
 0x611   :  { %2797 = vrot.lane.b32.xlu1 %v3212_v5, %s2999_s4 }
 0x615   :  { %1660 = vrot.lane.b32.xlu1 %v3259_v63, %s2999_s4 }
 0x619   :  { %2807 = vrot.lane.b32.xlu1 %v3212_v5, %s3000_s20 }
 0x64f   :  { %v1336_v18 = vpop.xlane.xlu0 %1335 }
 0x650   :  { %v1338_v19 = vsub.f32 %v2480_v14, %v1336_v18  ;;  %v1333_v20 = vpop.xlane.xlu1 %1332 }
 0x651   :  { %v1337_v21 = vsub.f32 %v1322_v4, %v1333_v20 }
 0x652   :  { %v1341_v22 = vmul.f32 1.442695, %v1338_v19 }
 0x653   :  { %v1339_v23 = vmul.f32 1.442695, %v1337_v21  ;;  %v2783_v24 = vpop.permute.xlu0 %2782 }
 0x654   :  { %v2785_v26 = vunpack.i.h.bf16 %v2783_v24  ;;  %v2784_v27 = vunpack.i.l.bf16 %v2783_v24  ;;  %v1443_v5 = vpop.permute.xlu1 %1442 }
 0x655   :  { %2844 = vpow2.f32 %v1339_v23 }
 0x656   :  { %2846 = vpow2.f32 %v1341_v22  ;;  %v2682_v28 = vpack.c.bf16 %v2785_v26, %v2784_v27 }
 0x658   :  { %2684 = vmatprep.subr.msk.bf16.mxu1 %vm3134_vm1, %v2682_v28  ;;  %v1445_v31 = vpop.permute.xlu1 %1444 }
 0x65f   :  { %v3302_v30 = vpop.eup %2844 }
 0x660   :  { %v3304_v59 = vpop.eup %2846  ;;  %2485 = vmatprep.mubr.msk.f32.mxu1 %vm479_vm2, %v3302_v30 }
 0x661   :  { %2486 = vmatmul.mubr.msk.f32.vlgmr.msra.gmra.mrb[18].mxu1 %vm479_vm2, %v3304_v59 }
 0x662   :  { %2687 = vmatpush3.bf16.xpose.msk.msra.mxu1 %vm3134_vm1, %v2682_v28  ;;  %2492 = vmatprep.mubr.msk.f32.mxu1 %vm391_vm0, %v1443_v5 }
 0x669   :  { %2493 = vmatmul.mubr.msk.f32.vlgmr.msra.gmra.mrb[20].mxu1 %vm391_vm0, %v1445_v31 }
 0x684   :  { %v1120_v32 = vpop.xlane.xlu0 %1119 }
 0x685   :  { %v1124_v50 = vsub.f32 %v1109_v29, %v1120_v32 }
 0x687   :  { %v1126_v33 = vmul.f32 1.442695, %v1124_v50 }
 0x689   :  { %2848 = vpow2.f32 %v1126_v33  ;;  %v1123_v39 = vpop.xlane.xlu1 %1122 }
 0x68a   :  { %v1125_v40 = vsub.f32 %v2466_v13, %v1123_v39 }
 0x68c   :  { %v1128_v41 = vmul.f32 1.442695, %v1125_v40 }
 0x68d   :  { %v2793_v44 = vpop.permute.xlu1 %2792 }
 0x68e   :  { %2850 = vpow2.f32 %v1128_v41  ;;  %v2795_v56 = vunpack.i.h.bf16 %v2793_v44  ;;  %v2794_v60 = vunpack.i.l.bf16 %v2793_v44 }
 0x690   :  { %v2688_v14 = vpack.c.bf16 %v2795_v56, %v2794_v60 }
 0x691   :  { %v2798_v1 = vpop.permute.xlu1 %2797 }
 0x692   :  { %v2800_v13 = vunpack.i.h.bf16 %v2798_v1  ;;  %v2799_v4 = vunpack.i.l.bf16 %v2798_v1  ;;  %v916_v1 = vsel %vm479_vm2, %v3246_v52, 0.0 }
 0x693   :  { %v3314_v34 = vpop.eup %2848 }
 0x694   :  { %2471 = vmatprep.mubr.msk.f32.mxu0 %vm479_vm2, %v3314_v34  ;;  %v2692_v6 = vpack.c.bf16 %v2800_v13, %v2799_v4 }
 0x695   :  { %v1661_v18 = vpop.permute.xlu1 %1660 }
 0x698   :  { %v3328_v46 = vpop.eup %2850 }
 0x699   :  { %v2808_v5 = vpop.permute.xlu1 %2807 }
 0x69a   :  { %v2809_v39 = vunpack.i.l.bf16 %v2808_v5 }
 0x734   :  { %v3318_v35 = vpop.f32.mrb[18].mxu1 }
 0x735   :  { %v3320_v36 = vpop.f32.mrb[19].mxu1 }
 0x73c   :  { %v2494_v62 = vpop.f32.mrb[20].mxu1 }
 0x73d   :  { %v1524_v9 = vpop.f32.mrb[21].mxu1  ;;  %v1536_v37 = vsel %vm479_vm2, %v2494_v62, -inf }
 0x73e   :  { %1537 = vmax.xlane.f32.xlu0 %v1536_v37  ;;  %v1533_v38 = vsel %vm479_vm2, %v1524_v9, -inf }
 0x742   :  { %1534 = vmax.xlane.f32.xlu0 %v1533_v38  ;;  %v2810_v38 = vunpack.i.h.bf16 %v2808_v5 }
 0x744   :  { %v2702_v41 = vpack.c.bf16 %v2810_v38, %v2809_v39 }
 0x758   :  { %2787 = vrot.lane.b32.xlu0 %v3152_v15, %s3000_s20 }
 0x75c   :  { %1662 = vrot.lane.b32.xlu0 %v3269_v2, %s2999_s4 }
 0x7cb   :  { %v1538_v8 = vpop.xlane.xlu0 %1537 }
 0x7cc   :  { %v1540_v42 = vsub.f32 %v2494_v62, %v1538_v8 }
 0x7ce   :  { %v1543_v54 = vmul.f32 1.442695, %v1540_v42 }
 0x7cf   :  { %v1535_v49 = vpop.xlane.xlu0 %1534 }
 0x7d0   :  { %v1539_v51 = vsub.f32 %v1524_v9, %v1535_v49 }
 0x7d2   :  { %v1541_v55 = vmul.f32 1.442695, %v1539_v51 }
 0x7d3   :  { %v2788_v58 = vpop.permute.xlu0 %2787 }
 0x7d4   :  { %2852 = vpow2.f32 %v1541_v55  ;;  %v2790_v61 = vunpack.i.h.bf16 %v2788_v58  ;;  %v2789_v15 = vunpack.i.l.bf16 %v2788_v58 }
 0x7d5   :  { %2854 = vpow2.f32 %v1543_v54 }
 0x7d6   :  { %v2668_v29 = vpack.c.bf16 %v2790_v61, %v2789_v15  ;;  %v697_v61 = vsel %vm479_vm2, %v3234_v45, 0.0  ;;  %v913_v15 = vsel %vm479_vm2, %v3238_v0, 0.0 }
 0x7d7   :  { %v1663_v19 = vpop.permute.xlu0 %1662 }
 0x7d8   :  { %2669 = vmatprep.subr.bf16.mxu0 %v2668_v29 }
 0x7d9   :  { %2671 = vmatpush3.bf16.msra.mxu0 %v2668_v29  ;;  %v1130_v29 = vsel %vm479_vm2, %v3314_v34, 0.0  ;;  %v1133_v34 = vsel %vm479_vm2, %v3328_v46, 0.0 }
 0x7da   :  { %2689 = vmatprep.subr.bf16.mxu0 %v2688_v14 }
 0x7dc   :  { %2472 = vmatmul.mubr.msk.f32.vlgmr.msra.gmra.mrb[10].mxu0 %vm479_vm2, %v3328_v46 }
 0x7dd   :  { %2691 = vmatpush3.bf16.msra.mxu0 %v2688_v14 }
 0x7de   :  { %v3332_v16 = vpop.eup %2852  ;;  %2694 = vmatprep.subr.msk.bf16.mxu0 %vm3134_vm1, %v2692_v6 }
 0x7df   :  { %v3336_v53 = vpop.eup %2854  ;;  %2499 = vmatprep.mubr.msk.f32.mxu0 %vm479_vm2, %v3332_v16  ;;  %v1545_v43 = vsel %vm479_vm2, %v3332_v16, 0.0 }
 0x7e0   :  { %2500 = vmatmul.mubr.msk.f32.vlgmr.msra.gmra.mrb[12].mxu0 %vm479_vm2, %v3336_v53  ;;  %v1548_v45 = vsel %vm479_vm2, %v3336_v53, 0.0 }
 0x7e1   :  { %2506 = vmatprep.mubr.msk.f32.mxu0 %vm391_vm0, %v1661_v18 }
 0x7e6   :  { %2697 = vmatpush3.bf16.xpose.msk.msra.mxu0 %vm3134_vm1, %v2692_v6 }
 0x7ed   :  { %2507 = vmatmul.mubr.msk.f32.vlgmr.msra.gmra.mrb[14].mxu0 %vm391_vm0, %v1663_v19 }
 0x8af   :  { %v3346_v20 = vpop.f32.mrb[10].mxu0 }
 0x8b0   :  { %v3348_v21 = vpop.f32.mrb[11].mxu0 }
 0x8b3   :  { %v3350_v22 = vpop.f32.mrb[12].mxu0 }
 0x8b4   :  { %v3352_v23 = vpop.f32.mrb[13].mxu0 }
 0x8c0   :  { %v2508_v24 = vpop.f32.mrb[14].mxu0 }
 0x8c1   :  { %v1742_v26 = vpop.f32.mrb[15].mxu0  ;;  %v1754_v27 = vsel %vm479_vm2, %v2508_v24, -inf }
 0x8c2   :  { %1755 = vmax.xlane.f32.xlu0 %v1754_v27  ;;  %v1751_v28 = vsel %vm479_vm2, %v1742_v26, -inf }
 0x8c3   :  { %1752 = vmax.xlane.f32.xlu1 %v1751_v28 }
 0x8d4   :  { %1876 = vrot.lane.b32.xlu1 %v3259_v63, %s3000_s20 }
 0x8d8   :  { %2802 = vrot.lane.b32.xlu0 %v3156_v17, %s2999_s4 }
 0x8dc   :  { %1878 = vrot.lane.b32.xlu0 %v3269_v2, %s3000_s20 }
 0x94f   :  { %v1756_v31 = vpop.xlane.xlu0 %1755 }
 0x950   :  { %v1758_v32 = vsub.f32 %v2508_v24, %v1756_v31  ;;  %v1753_v50 = vpop.xlane.xlu1 %1752 }
 0x951   :  { %v1757_v33 = vsub.f32 %v1742_v26, %v1753_v50 }
 0x952   :  { %v1761_v62 = vmul.f32 1.442695, %v1758_v32 }
 0x953   :  { %v1759_v9 = vmul.f32 1.442695, %v1757_v33  ;;  %v2803_v37 = vpop.permute.xlu0 %2802 }
 0x954   :  { %v2805_v40 = vunpack.i.h.bf16 %v2803_v37  ;;  %v2804_v8 = vunpack.i.l.bf16 %v2803_v37  ;;  %v1877_v44 = vpop.permute.xlu1 %1876 }
 0x955   :  { %2856 = vpow2.f32 %v1759_v9 }
 0x956   :  { %2858 = vpow2.f32 %v1761_v62  ;;  %v2698_v63 = vpack.c.bf16 %v2805_v40, %v2804_v8  ;;  %v492_v8 = vsel %vm479_vm2, %v3191_v47, 0.0 }
 0x957   :  { %v1879_v49 = vpop.permute.xlu0 %1878 }
 0x958   :  { %2699 = vmatprep.subr.bf16.mxu1 %v2698_v63 }
 0x959   :  { %2701 = vmatpush3.bf16.msra.mxu1 %v2698_v63 }
 0x95a   :  { %2704 = vmatprep.subr.msk.bf16.mxu1 %vm3134_vm1, %v2702_v41 }
 0x95f   :  { %v2857_v2 = vpop.eup %2856 }
 0x960   :  { %v2859_v42 = vpop.eup %2858  ;;  %2513 = vmatprep.mubr.msk.f32.mxu1 %vm479_vm2, %v2857_v2  ;;  %v1763_v0 = vsel %vm479_vm2, %v2857_v2, 0.0  ;;  %v495_v2 = vsel %vm479_vm2, %v3193_v48, 0.0 }
 0x961   :  { %2514 = vmatmul.mubr.msk.f32.vlgmr.msra.gmra.mrb[22].mxu1 %vm479_vm2, %v2859_v42  ;;  %v1766_v52 = vsel %vm479_vm2, %v2859_v42, 0.0 }
 0x962   :  { %2707 = vmatpush3.bf16.xpose.msk.msra.mxu1 %vm3134_vm1, %v2702_v41  ;;  %2520 = vmatprep.mubr.msk.f32.mxu1 %vm391_vm0, %v1877_v44 }
 0x969   :  { %2521 = vmatmul.mubr.msk.f32.vlgmr.msra.gmra.mrb[24].mxu1 %vm391_vm0, %v1879_v49 }
 0xa34   :  { %v3370_v51 = vpop.f32.mrb[22].mxu1 }
 0xa35   :  { %v3372_v54 = vpop.f32.mrb[23].mxu1 }
 0xa3c   :  { %v2522_v55 = vpop.f32.mrb[24].mxu1 }
 0xa3d   :  { %v1958_v56 = vpop.f32.mrb[25].mxu1  ;;  %v1970_v58 = vsel %vm479_vm2, %v2522_v55, -inf }
 0xa3e   :  { %1971 = vmax.xlane.f32.xlu0 %v1970_v58  ;;  %v1967_v60 = vsel %vm479_vm2, %v1958_v56, -inf }
 0xa3f   :  { %1968 = vmax.xlane.f32.xlu1 %v1967_v60 }
 0xa43   :  { %695 = vadd.xlane.f32.xlu1 %v694_v57  ;;  %v2096_v57 = vld [vmem:[#allocation8] sm:$0xff] }
 0xa47   :  { %698 = vadd.xlane.f32.xlu1 %v697_v61  ;;  %v2097_v61 = vld [vmem:[#allocation8 + $0x8] sm:$0xff] }
 0xa4b   :  { %914 = vadd.xlane.f32.xlu1 %v913_v15 }
 0xa4f   :  { %917 = vadd.xlane.f32.xlu1 %v916_v1 }
 0xa53   :  { %1131 = vadd.xlane.f32.xlu1 %v1130_v29  ;;  %v2712_v29 = vpack.c.bf16 %v2097_v61, %v2096_v57 }
 0xa54   :  { %2812 = vrot.lane.b32.xlu0 %v3156_v17, %s3000_s20  ;;  %v1343_v17 = vsel %vm479_vm2, %v3302_v30, 0.0 }
 0xa57   :  { %1546 = vadd.xlane.f32.xlu1 %v1545_v43 }
 0xa5b   :  { %1549 = vadd.xlane.f32.xlu1 %v1548_v45  ;;  %v2098_v45 = vld [vmem:[#allocation8 + $0x10] sm:$0xff] }
 0xa5f   :  { %1764 = vadd.xlane.f32.xlu1 %v1763_v0  ;;  %v2099_v0 = vld [vmem:[#allocation8 + $0x18] sm:$0xff] }
 0xa63   :  { %1767 = vadd.xlane.f32.xlu1 %v1766_v52  ;;  %v2716_v52 = vpack.c.bf16 %v2099_v0, %v2098_v45 }
 0xa73   :  { %1134 = vadd.xlane.f32.xlu0 %v1133_v34 }
 0xa77   :  { %1344 = vadd.xlane.f32.xlu0 %v1343_v17 }
 0xacb   :  { %v1972_v14 = vpop.xlane.xlu0 %1971 }
 0xacc   :  { %v1974_v13 = vsub.f32 %v2522_v55, %v1972_v14  ;;  %v1969_v4 = vpop.xlane.xlu1 %1968 }
 0xacd   :  { %v1973_v6 = vsub.f32 %v1958_v56, %v1969_v4  ;;  %v2101_v4 = vld [vmem:[#allocation8 + $0x28] sm:$0xff] }
 0xace   :  { %v1977_v16 = vmul.f32 1.442695, %v1974_v13  ;;  %v2100_v13 = vld [vmem:[#allocation8 + $0x20] sm:$0xff] }
 0xacf   :  { %v1975_v53 = vmul.f32 1.442695, %v1973_v6  ;;  %v2813_v18 = vpop.permute.xlu0 %2812 }
 0xad0   :  { %2860 = vpow2.f32 %v1977_v16  ;;  %v2815_v19 = vunpack.i.h.bf16 %v2813_v18  ;;  %v2814_v24 = vunpack.i.l.bf16 %v2813_v18  ;;  %v696_v26 = vpop.xlane.xlu1 %695 }
 0xad1   :  { %2862 = vpow2.f32 %v1975_v53  ;;  %v2720_v53 = vpack.c.bf16 %v2101_v4, %v2100_v13 }
 0xad2   :  { %v2708_v27 = vpack.c.bf16 %v2815_v19, %v2814_v24  ;;  %2864 = vrcp.f32 %v696_v26 }
 0xad4   :  { %2709 = vmatprep.subr.bf16.mxu0 %v2708_v27  ;;  %v699_v46 = vpop.xlane.xlu1 %698 }
 0xad5   :  { %2711 = vmatpush3.bf16.msra.mxu0 %v2708_v27  ;;  %v2102_v27 = vld [vmem:[#allocation8 + $0x30] sm:$0xff] }
 0xad6   :  { %2713 = vmatprep.subr.bf16.mxu0 %v2712_v29 }
 0xad8   :  { %v915_v28 = vpop.xlane.xlu1 %914 }
 0xada   :  { %v2861_v30 = vpop.eup %2860 }
 0xadb   :  { %v2863_v5 = vpop.eup %2862  ;;  %v1982_v37 = vsel %vm479_vm2, %v2861_v30, 0.0 }
 0xadc   :  { %v2865_v31 = vpop.eup %2864  ;;  %2527 = vmatprep.mubr.msk.f32.mxu0 %vm479_vm2, %v2863_v5  ;;  %v918_v32 = vpop.xlane.xlu1 %917  ;;  %v1979_v50 = vsel %vm479_vm2, %v2863_v5, 0.0 }
 0xadd   :  { %v791_v33 = vmul.f32 %v2865_v31, %v696_v26  ;;  %2866 = vrcp.f32 %v918_v32  ;;  %2528 = vmatmul.mubr.msk.f32.vlgmr.msra.gmra.mrb[16].mxu0 %vm479_vm2, %v2861_v30  ;;  %1980 = vadd.xlane.f32.xlu1 %v1979_v50 }
 0xade   :  { %2868 = vrcp.f32 %v699_v46  ;;  %2715 = vmatpush3.bf16.msra.mxu0 %v2712_v29 }
 0xadf   :  { %v793_v62 = vsub.f32 2.0, %v791_v33  ;;  %2870 = vrcp.f32 %v915_v28  ;;  %2717 = vmatprep.subr.bf16.mxu0 %v2716_v52 }
 0xae0   :  { %v1132_v9 = vpop.xlane.xlu1 %1131 }
 0xae1   :  { %v795_v38 = vmul.f32 %v2865_v31, %v793_v62  ;;  %1983 = vadd.xlane.f32.xlu1 %v1982_v37  ;;  %2872 = vrcp.f32 %v1132_v9 }
 0xae2   :  { %2719 = vmatpush3.bf16.msra.mxu0 %v2716_v52 }
 0xae3   :  { %v797_v39 = vmul.f32 %v795_v38, %v3276_v3  ;;  %v1346_v3 = vsel %vm479_vm2, %v3304_v59, 0.0  ;;  %2721 = vmatprep.subr.bf16.mxu0 %v2720_v53  ;;  %v2106_v38 = vld [vmem:[#allocation8 + $0x50] sm:$0xff] }
 0xae4   :  { %v1547_v40 = vpop.xlane.xlu1 %1546 }
 0xae5   :  { %801 = vrot.lane.b32.xlu0 %v797_v39, %s3000_s20  ;;  %493 = vadd.xlane.f32.xlu1 %v492_v8  ;;  %2874 = vrcp.f32 %v1547_v40  ;;  %v2107_v39 = vld [vmem:[#allocation8 + $0x58] sm:$0xff] }
 0xae6   :  { %2723 = vmatpush3.bf16.msra.mxu0 %v2720_v53 }
 0xae7   :  { %v2867_v63 = vpop.eup %2866 }
 0xae8   :  { %v1009_v41 = vmul.f32 %v2867_v63, %v918_v32  ;;  %v3408_v44 = vpop.xlane.xlu1 %1549  ;;  %v2869_v55 = vpop.eup %2868  ;;  %v2105_v32 = vld [vmem:[#allocation8 + $0x48] sm:$0xff] }
 0xae9   :  { %496 = vadd.xlane.f32.xlu1 %v495_v2  ;;  %v2871_v56 = vpop.eup %2870  ;;  %v792_v58 = vmul.f32 %v2869_v55, %v699_v46  ;;  %v2103_v46 = vld [vmem:[#allocation8 + $0x38] sm:$0xff] }
 0xaea   :  { %v1011_v42 = vsub.f32 2.0, %v1009_v41  ;;  %v1008_v48 = vmul.f32 %v2871_v56, %v915_v28  ;;  %v2724_v31 = vpack.c.bf16 %v2103_v46, %v2102_v27 }
 0xaeb   :  { %v2873_v15 = vpop.eup %2872  ;;  %v794_v1 = vsub.f32 2.0, %v792_v58 }
 0xaec   :  { %v1013_v49 = vmul.f32 %v2867_v63, %v1011_v42  ;;  %v1765_v60 = vpop.xlane.xlu1 %1764  ;;  %v1010_v43 = vsub.f32 2.0, %v1008_v48  ;;  %v1225_v59 = vmul.f32 %v2873_v15, %v1132_v9  ;;  %2725 = vmatprep.subr.bf16.mxu0 %v2724_v31  ;;  %v2732_v63 = vpack.c.bf16 %v2107_v39, %v2106_v38  ;;  %v2108_v42 = vld [vmem:[#allocation8 + $0x60] sm:$0xff]  ;;  %v2111_v48 = vld [vmem:[#allocation8 + $0x78] sm:$0xff] }
 0xaed   :  { %1347 = vadd.xlane.f32.xlu1 %v1346_v3  ;;  %2876 = vrcp.f32 %v1765_v60  ;;  %2727 = vmatpush3.bf16.msra.mxu0 %v2724_v31 }
 0xaee   :  { %v1015_v47 = vmul.f32 %v3278_v11, %v1013_v49  ;;  %v796_v11 = vmul.f32 %v2869_v55, %v794_v1  ;;  %v1012_v17 = vmul.f32 %v2871_v56, %v1010_v43  ;;  %v1227_v14 = vsub.f32 2.0, %v1225_v59  ;;  %v2109_v49 = vld [vmem:[#allocation8 + $0x68] sm:$0xff] }
 0xaef   :  { %v2875_v34 = vpop.eup %2874  ;;  %2878 = vrcp.f32 %v3408_v44 }
 0xaf0   :  { %1020 = vrot.lane.b32.xlu0 %v1015_v47, %s2999_s4  ;;  %v1642_v6 = vmul.f32 %v2875_v34, %v1547_v40  ;;  %v798_v16 = vmul.f32 %v3274_v25, %v796_v11  ;;  %v1768_v19 = vpop.xlane.xlu1 %1767  ;;  %v1229_v24 = vmul.f32 %v2873_v15, %v1227_v14  ;;  %v1014_v26 = vmul.f32 %v1012_v17, %v3280_v12  ;;  %v2104_v25 = vld [vmem:[#allocation8 + $0x40] sm:$0xff] }
 0xaf1   :  { %2880 = vrcp.f32 %v1768_v19  ;;  %v2728_v9 = vpack.c.bf16 %v2105_v32, %v2104_v25  ;;  %v2736_v47 = vpack.c.bf16 %v2109_v49, %v2108_v42 }
 0xaf2   :  { %v1644_v28 = vsub.f32 2.0, %v1642_v6  ;;  %v1231_v12 = vmul.f32 %v1229_v24, %v3348_v21 }
 0xaf3   :  { %2729 = vmatprep.subr.bf16.mxu0 %v2728_v9 }
 0xaf4   :  { %v1646_v50 = vmul.f32 %v2875_v34, %v1644_v28  ;;  %2731 = vmatpush3.bf16.msra.mxu0 %v2728_v9 }
 0xaf5   :  { %2733 = vmatprep.subr.bf16.mxu0 %v2732_v63 }
 0xaf6   :  { %v1648_v8 = vmul.f32 %v1646_v50, %v3352_v23 }
 0xaf7   :  { %v2877_v18 = vpop.eup %2876 }
 0xaf8   :  { %v1858_v30 = vmul.f32 %v2877_v18, %v1765_v60  ;;  %2735 = vmatpush3.bf16.msra.mxu0 %v2732_v63 }
 0xaf9   :  { %v2879_v37 = vpop.eup %2878  ;;  %2737 = vmatprep.subr.bf16.mxu0 %v2736_v47 }
 0xafa   :  { %v1860_v33 = vsub.f32 2.0, %v1858_v30  ;;  %v1643_v2 = vmul.f32 %v2879_v37, %v3408_v44  ;;  %v2110_v44 = vld [vmem:[#allocation8 + $0x70] sm:$0xff] }
 0xafb   :  { %v2881_v41 = vpop.eup %2880  ;;  %v2740_v15 = vpack.c.bf16 %v2111_v48, %v2110_v44 }
 0xafc   :  { %v1862_v40 = vmul.f32 %v2877_v18, %v1860_v33  ;;  %v1645_v56 = vsub.f32 2.0, %v1643_v2  ;;  %v1859_v58 = vmul.f32 %v2881_v41, %v1768_v19  ;;  %2739 = vmatpush3.bf16.msra.mxu0 %v2736_v47 }
 0xafd   :  { %2741 = vmatprep.subr.bf16.mxu0 %v2740_v15 }
 0xafe   :  { %803 = vrot.lane.b32.xlu1 %v798_v16, %s3000_s20  ;;  %v1864_v55 = vmul.f32 %v1862_v40, %v3372_v54  ;;  %v1647_v1 = vmul.f32 %v2879_v37, %v1645_v56  ;;  %v1861_v29 = vsub.f32 2.0, %v1859_v58 }
 0xb00   :  { %v1135_v5 = vpop.xlane.xlu0 %1134  ;;  %2743 = vmatpush3.bf16.msra.mxu0 %v2740_v15  ;;  %v1863_v45 = vmul.f32 %v2881_v41, %v1861_v29  ;;  %v1649_v11 = vmul.f32 %v3350_v22, %v1647_v1 }
 0xb01   :  { %2882 = vrcp.f32 %v1135_v5 }
 0xb02   :  { %1018 = vrot.lane.b32.xlu1 %v1014_v26, %s2999_s4  ;;  %v1865_v52 = vmul.f32 %v3370_v51, %v1863_v45 }
 0xb04   :  { %v1345_v62 = vpop.xlane.xlu0 %1344 }
 0xb05   :  { %2884 = vrcp.f32 %v1345_v62 }
 0xb06   :  { %1235 = vrot.lane.b32.xlu1 %v1231_v12, %s2998_s3 }
 0xb0a   :  { %1652 = vrot.lane.b32.xlu1 %v1648_v8, %s3000_s20 }
 0xb0b   :  { %v2883_v21 = vpop.eup %2882 }
 0xb0c   :  { %v1226_v3 = vmul.f32 %v2883_v21, %v1135_v5 }
 0xb0e   :  { %v1228_v60 = vsub.f32 2.0, %v1226_v3  ;;  %1868 = vrot.lane.b32.xlu1 %v1864_v55, %s2999_s4 }
 0xb0f   :  { %v2885_v23 = vpop.eup %2884 }
 0xb10   :  { %v1230_v57 = vmul.f32 %v2883_v21, %v1228_v60  ;;  %v1432_v61 = vmul.f32 %v2885_v23, %v1345_v62  ;;  %v2275_v60 = vld [vmem:[%s3478_s6] ss:$0 sm:$0xff] }
 0xb12   :  { %v1434_v43 = vsub.f32 2.0, %v1432_v61  ;;  %v1232_v59 = vmul.f32 %v3346_v20, %v1230_v57 }
 0xb14   :  { %v1436_v54 = vmul.f32 %v2885_v23, %v1434_v43  ;;  %1237 = vrot.lane.b32.xlu0 %v1232_v59, %s2998_s3 }
 0xb16   :  { %v1438_v0 = vmul.f32 %v1436_v54, %v3320_v36 }
 0xb18   :  { %1440 = vst.msk [vmem:[#allocation2 + $0x10] sm:$0xff] %vm391_vm0, %v1438_v0  ;;  %1654 = vrot.lane.b32.xlu0 %v1649_v11, %s3000_s20 }
 0xb1c   :  { %1870 = vrot.lane.b32.xlu0 %v1865_v52, %s2999_s4 }
 0xb57   :  { %v802_v36 = vpop.permute.xlu0 %801 }
 0xb62   :  { %v1021_v18 = vpop.permute.xlu0 %1020 }
 0xb6a   :  { %v1981_v34 = vpop.xlane.xlu1 %1980 }
 0xb6e   :  { %v1984_v20 = vpop.xlane.xlu1 %1983 }
 0xb72   :  { %v494_v17 = vpop.xlane.xlu1 %493 }
 0xb73   :  { %2886 = vrcp.f32 %v494_v17 }
 0xb76   :  { %v497_v14 = vpop.xlane.xlu1 %496 }
 0xb77   :  { %2888 = vrcp.f32 %v497_v14 }
 0xb7a   :  { %v1348_v13 = vpop.xlane.xlu1 %1347 }
 0xb7b   :  { %2890 = vrcp.f32 %v1348_v13 }
 0xb7c   :  { %2892 = vrcp.f32 %v1984_v20 }
 0xb7d   :  { %v2887_v4 = vpop.eup %2886  ;;  %2894 = vrcp.f32 %v1981_v34 }
 0xb7e   :  { %v581_v6 = vmul.f32 %v2887_v4, %v494_v17  ;;  %v804_v22 = vpop.permute.xlu1 %803 }
 0xb80   :  { %v583_v16 = vsub.f32 2.0, %v581_v6 }
 0xb81   :  { %v2889_v53 = vpop.eup %2888 }
 0xb82   :  { %v585_v19 = vmul.f32 %v2887_v4, %v583_v16  ;;  %v582_v24 = vmul.f32 %v2889_v53, %v497_v14  ;;  %v1019_v51 = vpop.permute.xlu1 %1018 }
 0xb84   :  { %v587_v26 = vmul.f32 %v585_v19, %v3216_v10  ;;  %v584_v27 = vsub.f32 2.0, %v582_v24 }
 0xb85   :  { %v2891_v46 = vpop.eup %2890 }
 0xb86   :  { %589 = vst.msk [vmem:[#allocation2] sm:$0xff] %vm391_vm0, %v587_v26  ;;  %v586_v28 = vmul.f32 %v2889_v53, %v584_v27  ;;  %v1433_v30 = vmul.f32 %v2891_v46, %v1348_v13  ;;  %v1238_v5 = vpop.permute.xlu0 %1237  ;;  %v1236_v31 = vpop.permute.xlu1 %1235 }
 0xb87   :  { %808 = vst.msk [vmem:[#allocation2] sm:$0xff] %vm807_vm3, %v802_v36 }
 0xb88   :  { %v588_v25 = vmul.f32 %v3214_v7, %v586_v28  ;;  %v1435_v32 = vsub.f32 2.0, %v1433_v30  ;;  %1025 = vst.msk [vmem:[#allocation2] sm:$0xff] %vm1024_vm4, %v1019_v51 }
 0xb89   :  { %1242 = vst.msk [vmem:[#allocation2] sm:$0xff] %vm1241_vm5, %v1236_v31 }
 0xb8a   :  { %590 = vst.msk [vmem:[#allocation2 + $0x8] sm:$0xff] %vm391_vm0, %v588_v25  ;;  %v1437_v10 = vmul.f32 %v2891_v46, %v1435_v32  ;;  %v1655_v50 = vpop.permute.xlu0 %1654  ;;  %v1653_v33 = vpop.permute.xlu1 %1652 }
 0xb8b   :  { %809 = vst.msk [vmem:[#allocation2 + $0x8] sm:$0xff] %vm807_vm3, %v804_v22  ;;  %1658 = vst.msk [vmem:[#allocation2 + $0x10] sm:$0xff] %vm807_vm3, %v1653_v33 }
 0xb8c   :  { %v1439_v62 = vmul.f32 %v3318_v35, %v1437_v10  ;;  %1026 = vst.msk [vmem:[#allocation2 + $0x8] sm:$0xff] %vm1024_vm4, %v1021_v18  ;;  %v2893_v35 = vpop.eup %2892 }
 0xb8d   :  { %1243 = vst.msk [vmem:[#allocation2 + $0x8] sm:$0xff] %vm1241_vm5, %v1238_v5  ;;  %v2895_v38 = vpop.eup %2894  ;;  %v2075_v39 = vmul.f32 %v2893_v35, %v1984_v20 }
 0xb8e   :  { %1441 = vst.msk [vmem:[#allocation2 + $0x18] sm:$0xff] %vm391_vm0, %v1439_v62  ;;  %v1871_v7 = vpop.permute.xlu0 %1870  ;;  %v1869_v12 = vpop.permute.xlu1 %1868  ;;  %v2074_v40 = vmul.f32 %v2895_v38, %v1981_v34 }
 0xb8f   :  { %1659 = vst.msk [vmem:[#allocation2 + $0x18] sm:$0xff] %vm807_vm3, %v1655_v50  ;;  %v2077_v8 = vsub.f32 2.0, %v2075_v39 }
 0xb90   :  { %1874 = vst.msk [vmem:[#allocation2 + $0x10] sm:$0xff] %vm1024_vm4, %v1869_v12  ;;  %1875 = vst.msk [vmem:[#allocation2 + $0x18] sm:$0xff] %vm1024_vm4, %v1871_v7  ;;  %v2092_v9 = vld [vmem:[#allocation2] sm:$0xff]  ;;  %v2076_v63 = vsub.f32 2.0, %v2074_v40 }
 0xb91   :  { %2562 = vmatprep.mubr.f32.mxu0 %v2092_v9  ;;  %v2079_v41 = vmul.f32 %v2893_v35, %v2077_v8 }
 0xb92   :  { %v2078_v21 = vmul.f32 %v2895_v38, %v2076_v63 }
 0xb94   :  { %v2093_v37 = vld [vmem:[#allocation2 + $0x8] sm:$0xff] }
 0xb95   :  { %2563 = vmatmul.mubr.f32.vlgmr.msra.gmra.mrb[18].mxu0 %v2093_v37 }
 0xbb0   :  { %v2529_v2 = vpop.f32.mrb[16].mxu0 }
 0xbb1   :  { %v2081_v42 = vmul.f32 %v2529_v2, %v2079_v41  ;;  %v2063_v49 = vpop.f32.mrb[17].mxu0 }
 0xbb2   :  { %v2080_v3 = vmul.f32 %v2078_v21, %v2063_v49 }
 0xbb3   :  { %2086 = vrot.lane.b32.xlu0 %v2081_v42, %s2998_s3 }
 0xbb4   :  { %2084 = vrot.lane.b32.xlu1 %v2080_v3, %s2998_s3 }
 0xc25   :  { %v2087_v55 = vpop.permute.xlu0 %2086 }
 0xc26   :  { %2091 = vst.msk [vmem:[#allocation2 + $0x18] sm:$0xff] %vm1241_vm5, %v2087_v55  ;;  %v2085_v47 = vpop.permute.xlu1 %2084 }
 0xc27   :  { %2090 = vst.msk [vmem:[#allocation2 + $0x10] sm:$0xff] %vm1241_vm5, %v2085_v47 }
 0xc2d   :  { %v2095_v58 = vld [vmem:[#allocation2 + $0x18] sm:$0xff] }
 0xc2e   :  { %v2094_v56 = vld [vmem:[#allocation2 + $0x10] sm:$0xff] }
 0xc2f   :  { %2565 = vmatprep.mubr.f32.mxu0 %v2094_v56 }
 0xc30   :  { %2566 = vmatmul.mubr.f32.gmra.mrb[20].mxu0 %v2095_v58 }
 0xc68   :  { %v2564_v23 = vpop.f32.mrb[18].mxu0 }
 0xc69   :  { %v2191_v44 = vadd.f32 %v2564_v23, %v2275_v60  ;;  %v2185_v48 = vpop.f32.mrb[19].mxu0 }
 0xc6a   :  { %v2186_v57 = vadd.f32 %v2275_v60, %v2185_v48 }
 0xc6b   :  { %2205 = vst [vmem:[#allocation9 + $0x8] sm:$0xff] %v2191_v44 }
 0xc6c   :  { %2204 = vst [vmem:[#allocation9] sm:$0xff] %v2186_v57 }
 0xd03   :  { %v2567_v61 = vpop.f32.mrb[20].mxu0 }
 0xd04   :  { %v2201_v15 = vadd.f32 %v2567_v61, %v2275_v60  ;;  %v2195_v1 = vpop.f32.mrb[21].mxu0 }
 0xd05   :  { %v2196_v29 = vadd.f32 %v2275_v60, %v2195_v1 }
 0xd06   :  { %2207 = vst [vmem:[#allocation9 + $0x18] sm:$0xff] %v2201_v15 }
 0xd07   :  { %2206 = vst [vmem:[#allocation9 + $0x10] sm:$0xff] %v2196_v29 }
 0xd08   :  { %2973 = shalt.err (!%p2970_p0)
}
 0xd09   :  { %s2974_s28 = scalar_lea.hbm %s3479_s7, 512 }
 0xd0a   :  { %p2975_p1 = scmp.ne.s32.totalorder %s3479_s7, %s2974_s28  ;;  %p2978_p2 = scmp.lt.u32.totalorder %s2974_s28, %s3479_s7 }
 0xd0c   :  { %p2980_p3 = pnand %p2978_p2, %p2975_p1 }
 0xd0e   :  { %2983 = shalt.err (!%p2980_p3)
}
 0xd0f   :  { %2219 = dma.vmem_to_hbm [thread:$0]  %s2214_s24, 512, %s3479_s7, [#allocation5], %s2994_s1, %s2994_s1, %s2995_s25  }
 0xd10   :  { %2988 = dma.done.wait [#allocation5], 512  }
 0xd11   :  { %2989 = vsyncadd [#allocation5], 4294966784 }
 0xd12   :  { %2223 = vsyncpa [#allocation4], 1 }
 0xd13   :  { %2224 = vsyncpa [#allocation7], 1 }
 0xd14   :  { %2225 = vsyncpa [#allocation5], 1 }

// kernel: tpu_custom_call.1
= control target key start
LH: loop header
LB: loop body
LE: loop exit
PB: predicated region body
PF: predicated region fallthrough
CT: control target
= control target key end

     0   :  { %12 = vsyncpa [#allocation4], 0  ;;  %s3472_s0 = inlined_call_operand.hbm [shape: f32[32,128], index: 0, kind: input, shape index: {}]   ;;  %s3473_s1 = inlined_call_operand.hbm [shape: f32[128,384], index: 1, kind: input, shape index: {}]   ;;  %s3474_s2 = inlined_call_operand.vmem [shape: f32[1,384], index: 2, kind: input, shape index: {}]   ;;  %s3475_s3 = inlined_call_operand.vmem [shape: f32[1,128], index: 3, kind: input, shape index: {}]   ;;  %s3476_s4 = inlined_call_operand.vmem [shape: f32[1,128], index: 4, kind: input, shape index: {}]   ;;  %s3477_s5 = inlined_call_operand.hbm [shape: f32[128,128], index: 5, kind: input, shape index: {}]   ;;  %s3478_s6 = inlined_call_operand.vmem [shape: f32[1,128], index: 6, kind: input, shape index: {}]   ;;  %s3479_s7 = inlined_call_operand.hbm [shape: f32[32,128], index: 7, kind: output, shape index: {}]  }
   0x1   :  { %13 = vsyncpa [#allocation7], 0 }
   0x2   :  { %14 = vsyncpa [#allocation5], 0  ;;  %s2990_s24 = smov [#allocation6]   ;;  %s2896_s28 = scalar_lea.hbm %s3473_s1, 6144 }
   0x3   :  { %s32_s25 = sshll.u32 %s2990_s24, 4  ;;  %p2897_p0 = scmp.ne.s32.totalorder %s3473_s1, %s2896_s28  ;;  %s33_s25 = int_to_ptr.vmem [resolvable:$true] %s32_s25 }
   0x4   :  { %p2900_p1 = scmp.lt.u32.totalorder %s2896_s28, %s3473_s1 }
   0x6   :  { %p2902_p2 = pnand %p2900_p1, %p2897_p0 }
   0x8   :  { %2905 = shalt.err (!%p2902_p2)
}
   0x9   :  { %s2906_s10 = scalar_lea.vmem %s33_s25, 6144  ;;  %p2911_p4 = scmp.lt.s32.totalorder %s33_s25, %s33_s25 }
   0xa   :  { %p2907_p3 = scmp.ne.s32.totalorder %s33_s25, %s2906_s10  ;;  %p2912_p5 = scmp.lt.s32.totalorder %s2906_s10, %s2906_s10 }
   0xc   :  { %p2913_p6 = por %p2912_p5, %p2911_p4 }
   0xe   :  { %p2914_p7 = pnand %p2913_p6, %p2907_p3 }
  0x10   :  { %2917 = shalt.err (!%p2914_p7)
}
  0x11   :  { %s2991_s11 = smov 384   ;;  %s2992_s12 = smov 24  }
  0x12   :  { %38 = dma.hbm_to_vmem [thread:$0]  %s3473_s1, 6144, %s33_s25, [#allocation7], %s2991_s11, %s2991_s11, %s2992_s12  }
  0x13   :  { %s2993_s15 = smov [#allocation3]   ;;  %s2918_s19 = scalar_lea.hbm %s3472_s0, 512 }
  0x14   :  { %s20_s16 = sshll.u32 %s2993_s15, 4  ;;  %p2919_p8 = scmp.ne.s32.totalorder %s3472_s0, %s2918_s19  ;;  %s21_s16 = int_to_ptr.vmem [resolvable:$true] %s20_s16 }
  0x15   :  { %p2922_p9 = scmp.lt.u32.totalorder %s2918_s19, %s3472_s0 }
  0x17   :  { %p2924_p10 = pnand %p2922_p9, %p2919_p8 }
  0x19   :  { %2927 = shalt.err (!%p2924_p10)
}
  0x1a   :  { %s2928_s24 = scalar_lea.vmem %s21_s16, 512  ;;  %p2933_p12 = scmp.lt.s32.totalorder %s21_s16, %s21_s16 }
  0x1b   :  { %p2929_p11 = scmp.ne.s32.totalorder %s21_s16, %s2928_s24  ;;  %p2934_p13 = scmp.lt.s32.totalorder %s2928_s24, %s2928_s24 }
  0x1d   :  { %p2935_p0 = por %p2934_p13, %p2933_p12 }
  0x1f   :  { %p2936_p1 = pnand %p2935_p0, %p2929_p11 }
  0x21   :  { %2939 = shalt.err (!%p2936_p1)
}
  0x22   :  { %s2994_s1 = smov 128   ;;  %s2995_s25 = smov 8  }
  0x23   :  { %26 = dma.hbm_to_vmem [thread:$0]  %s3472_s0, 512, %s21_s16, [#allocation4], %s2994_s1, %s2994_s1, %s2995_s25  }
  0x24   :  { %s2996_s28 = smov [#allocation8]   ;;  %s2940_s9 = scalar_lea.hbm %s3477_s5, 2048 }
  0x25   :  { %s50_s29 = sshll.u32 %s2996_s28, 4  ;;  %p2941_p2 = scmp.ne.s32.totalorder %s3477_s5, %s2940_s9  ;;  %s51_s29 = int_to_ptr.vmem [resolvable:$true] %s50_s29 }
  0x26   :  { %p2944_p3 = scmp.lt.u32.totalorder %s2940_s9, %s3477_s5 }
  0x28   :  { %p2946_p4 = pnand %p2944_p3, %p2941_p2 }
  0x2a   :  { %2949 = shalt.err (!%p2946_p4)
}
  0x2b   :  { %s2950_s14 = scalar_lea.vmem %s51_s29, 2048  ;;  %p2955_p6 = scmp.lt.s32.totalorder %s51_s29, %s51_s29 }
  0x2c   :  { %p2951_p5 = scmp.ne.s32.totalorder %s51_s29, %s2950_s14  ;;  %p2956_p7 = scmp.lt.s32.totalorder %s2950_s14, %s2950_s14 }
  0x2e   :  { %p2957_p8 = por %p2956_p7, %p2955_p6 }
  0x30   :  { %p2958_p9 = pnand %p2957_p8, %p2951_p5 }
  0x32   :  { %2961 = shalt.err (!%p2958_p9)
}
  0x33   :  { %56 = dma.hbm_to_vmem [thread:$0]  %s3477_s5, 2048, %s51_s29, [#allocation7], %s2994_s1, %s2994_s1, %s2995_s25  }
  0x34   :  { %2984 = dma.done.wait [#allocation4], 512  }
  0x35   :  { %2985 = vsyncadd [#allocation4], 4294966784 }
  0x36   :  { %2986 = dma.done.wait [#allocation7], 8192  }
  0x37   :  { %2987 = vsyncadd [#allocation7], 4294959104  ;;  %v2997_v0 = vmov 0.0   ;;  %v73_v1 = vld [vmem:[#allocation6 + $0x8] sm:$0xff]  ;;  %v76_v2 = vld [vmem:[#allocation6 + $0x20] sm:$0xff]  ;;  %vm391_vm0 = vcmask 261120  }
  0x38   :  { %201 = vmatprep.mubr.f32.mxu0 %v2997_v0  ;;  %v72_v3 = vld [vmem:[#allocation6] sm:$0xff]  ;;  %v2568_v4 = vpack.c.bf16 %v76_v2, %v73_v1  ;;  %v75_v5 = vld [vmem:[#allocation6 + $0x18] sm:$0xff]  ;;  %v82_v7 = vld [vmem:[#allocation6 + $0x50] sm:$0xff]  ;;  %vm479_vm2 = vcmask 130048   ;;  %s3000_s20 = smov 32   ;;  %vm807_vm3 = vcmask 523520  }
  0x39   :  { %v79_v6 = vld [vmem:[#allocation6 + $0x38] sm:$0xff]  ;;  %v2570_v8 = vpack.c.bf16 %v75_v5, %v72_v3  ;;  %v78_v10 = vld [vmem:[#allocation6 + $0x30] sm:$0xff]  ;;  %v81_v11 = vld [vmem:[#allocation6 + $0x48] sm:$0xff]  ;;  %v122_v3 = vlaneseq  ;;  %vm1024_vm4 = vcmask 785920   ;;  %vm1241_vm5 = vcmask 1048320   ;;  %s3001_s23 = smov [#allocation9]  }
  0x3a   :  { %v2572_v9 = vpack.c.bf16 %v82_v7, %v79_v6  ;;  %v85_v12 = vld [vmem:[#allocation6 + $0x68] sm:$0xff]  ;;  %2569 = vmatprep.subr.bf16.mxu0 %v2568_v4  ;;  %v88_v13 = vld [vmem:[#allocation6 + $0x80] sm:$0xff]  ;;  %v2574_v14 = vpack.c.bf16 %v81_v11, %v78_v10  ;;  %v87_v17 = vld [vmem:[#allocation6 + $0x78] sm:$0xff]  ;;  %s2213_s24 = sshll.u32 %s3001_s23, 4  ;;  %s2214_s24 = int_to_ptr.vmem [resolvable:$true] %s2213_s24 }
  0x3b   :  { %2571 = vmatpush1.bf16.msra.mxu0 %v2570_v8  ;;  %v2576_v15 = vpack.c.bf16 %v88_v13, %v85_v12  ;;  %v84_v16 = vld [vmem:[#allocation6 + $0x60] sm:$0xff]  ;;  %v91_v18 = vld [vmem:[#allocation6 + $0x98] sm:$0xff]  ;;  %v94_v19 = vld [vmem:[#allocation6 + $0xb0] sm:$0xff]  ;;  %v3090_v4 = vshrl.u32 %v122_v3, 7  ;;  %s2962_s26 = scalar_lea.vmem %s2214_s24, 512  ;;  %p2967_p11 = scmp.lt.s32.totalorder %s2214_s24, %s2214_s24 }
  0x3c   :  { %2573 = vmatprep.subr.bf16.mxu0 %v2572_v9  ;;  %v2578_v20 = vpack.c.bf16 %v87_v17, %v84_v16  ;;  %v2580_v21 = vpack.c.bf16 %v94_v19, %v91_v18  ;;  %v90_v22 = vld [vmem:[#allocation6 + $0x90] sm:$0xff]  ;;  %v93_v23 = vld [vmem:[#allocation6 + $0xa8] sm:$0xff]  ;;  %v100_v25 = vld [vmem:[#allocation6 + $0xe0] sm:$0xff]  ;;  %p2963_p10 = scmp.ne.s32.totalorder %s2214_s24, %s2962_s26  ;;  %p2968_p12 = scmp.lt.s32.totalorder %s2962_s26, %s2962_s26 }
  0x3d   :  { %v97_v24 = vld [vmem:[#allocation6 + $0xc8] sm:$0xff]  ;;  %v68_v26 = vld [vmem:[#allocation3] sm:$0xff]  ;;  %v2582_v27 = vpack.c.bf16 %v93_v23, %v90_v22  ;;  %v99_v30 = vld [vmem:[#allocation6 + $0xd8] sm:$0xff]  ;;  %v124_v5 = vsub.s32 0, %v3090_v4  ;;  %v128_v7 = vsub.s32 1, %v3090_v4 }
  0x3e   :  { %2412 = vmatprep.mubr.f32.mxu1 %v68_v26  ;;  %v2584_v28 = vpack.c.bf16 %v100_v25, %v97_v24  ;;  %v96_v29 = vld [vmem:[#allocation6 + $0xc0] sm:$0xff]  ;;  %v103_v31 = vld [vmem:[#allocation6 + $0xf8] sm:$0xff]  ;;  %v106_v32 = vld [vmem:[#allocation6 + $0x110] sm:$0xff]  ;;  %p2969_p13 = por %p2968_p12, %p2967_p11 }
  0x3f   :  { %2575 = vmatpush1.bf16.msra.mxu0 %v2574_v14  ;;  %v2586_v33 = vpack.c.bf16 %v99_v30, %v96_v29  ;;  %v2588_v34 = vpack.c.bf16 %v106_v32, %v103_v31  ;;  %v102_v35 = vld [vmem:[#allocation6 + $0xf0] sm:$0xff]  ;;  %v105_v36 = vld [vmem:[#allocation6 + $0x108] sm:$0xff]  ;;  %v112_v38 = vld [vmem:[#allocation6 + $0x140] sm:$0xff] }
  0x40   :  { %2577 = vmatprep.subr.bf16.mxu0 %v2576_v15  ;;  %v109_v37 = vld [vmem:[#allocation6 + $0x128] sm:$0xff]  ;;  %v2590_v39 = vpack.c.bf16 %v105_v36, %v102_v35  ;;  %v108_v41 = vld [vmem:[#allocation6 + $0x120] sm:$0xff]  ;;  %v111_v42 = vld [vmem:[#allocation6 + $0x138] sm:$0xff]  ;;  %p2970_p0 = pnand %p2969_p13, %p2963_p10 }
  0x41   :  { %v2592_v40 = vpack.c.bf16 %v112_v38, %v109_v37  ;;  %v115_v43 = vld [vmem:[#allocation6 + $0x158] sm:$0xff]  ;;  %v118_v44 = vld [vmem:[#allocation6 + $0x170] sm:$0xff]  ;;  %v2594_v45 = vpack.c.bf16 %v111_v42, %v108_v41  ;;  %v117_v48 = vld [vmem:[#allocation6 + $0x168] sm:$0xff] }
  0x42   :  { %v2596_v46 = vpack.c.bf16 %v118_v44, %v115_v43  ;;  %v114_v47 = vld [vmem:[#allocation6 + $0x150] sm:$0xff]  ;;  %v3086_v50 = vld [vmem:[#allocation3 + $0x8] sm:$0xff]  ;;  %v80_v53 = vld [vmem:[#allocation6 + $0x40] sm:$0xff] }
  0x43   :  { %2579 = vmatpush1.bf16.msra.mxu0 %v2578_v20  ;;  %v2598_v49 = vpack.c.bf16 %v117_v48, %v114_v47  ;;  %v74_v51 = vld [vmem:[#allocation6 + $0x10] sm:$0xff]  ;;  %v77_v52 = vld [vmem:[#allocation6 + $0x28] sm:$0xff]  ;;  %v83_v55 = vld [vmem:[#allocation6 + $0x58] sm:$0xff] }
  0x44   :  { %2581 = vmatprep.subr.bf16.mxu0 %v2580_v21  ;;  %v2600_v54 = vpack.c.bf16 %v77_v52, %v74_v51  ;;  %v2604_v56 = vpack.c.bf16 %v83_v55, %v80_v53  ;;  %v86_v57 = vld [vmem:[#allocation6 + $0x70] sm:$0xff]  ;;  %v89_v58 = vld [vmem:[#allocation6 + $0x88] sm:$0xff]  ;;  %v92_v60 = vld [vmem:[#allocation6 + $0xa0] sm:$0xff] }
  0x45   :  { %v2608_v59 = vpack.c.bf16 %v89_v58, %v86_v57  ;;  %v95_v61 = vld [vmem:[#allocation6 + $0xb8] sm:$0xff]  ;;  %v98_v63 = vld [vmem:[#allocation6 + $0xd0] sm:$0xff]  ;;  %v101_v1 = vld [vmem:[#allocation6 + $0xe8] sm:$0xff] }
  0x46   :  { %2601 = vmatprep.subr.bf16.mxu1 %v2600_v54  ;;  %v2612_v62 = vpack.c.bf16 %v95_v61, %v92_v60  ;;  %v2616_v2 = vpack.c.bf16 %v101_v1, %v98_v63  ;;  %v3096_v6 = vld [vmem:[%s3474_s2] sm:$0x7]  ;;  %v107_v23 = vld [vmem:[#allocation6 + $0x118] sm:$0xff]  ;;  %v110_v25 = vld [vmem:[#allocation6 + $0x130] sm:$0xff]  ;;  %v132_v63 = vsub.s32 2, %v3090_v4 }
  0x47   :  { %2583 = vmatpush1.bf16.msra.mxu0 %v2582_v27  ;;  %2603 = vmatpush3.bf16.msra.mxu1 %v2600_v54  ;;  %v3100_v8 = vrot.slane %v3096_v6, %v124_v5  ;;  %v3103_v9 = vrot.slane %v3096_v6, %v128_v7  ;;  %v104_v22 = vld [vmem:[#allocation6 + $0x100] sm:$0xff]  ;;  %v119_v29 = vld [vmem:[#allocation6 + $0x178] sm:$0xff]  ;;  %v70_v31 = vld [vmem:[#allocation3 + $0x10] sm:$0xff] }
  0x48   :  { %2585 = vmatprep.subr.bf16.mxu0 %v2584_v28  ;;  %2605 = vmatprep.subr.bf16.mxu1 %v2604_v56  ;;  %v2620_v24 = vpack.c.bf16 %v107_v23, %v104_v22  ;;  %v116_v28 = vld [vmem:[#allocation6 + $0x160] sm:$0xff]  ;;  %v71_v32 = vld [vmem:[#allocation3 + $0x18] sm:$0xff]  ;;  %vm3134_vm1 = vmpackc.low %vm391_vm0, %vm391_vm0  ;;  %v133_v1 = vrot.slane %v3096_v6, %v132_v63 }
  0x49   :  { %v2628_v30 = vpack.c.bf16 %v119_v29, %v116_v28  ;;  %v311_v42 = vld [vmem:[%s3475_s3] sm:$0x1]  ;;  %s2998_s3 = smov 96  }
  0x4a   :  { %v3126_v53 = vld [vmem:[%s3476_s4] ss:$0 sm:$0xff]  ;;  %s2999_s4 = smov 64  }
  0x4b   :  { %2587 = vmatpush1.bf16.msra.mxu0 %v2586_v33  ;;  %2607 = vmatpush3.bf16.msra.mxu1 %v2604_v56 }
  0x4c   :  { %2589 = vmatprep.subr.bf16.mxu0 %v2588_v34  ;;  %2609 = vmatprep.subr.bf16.mxu1 %v2608_v59 }
  0x4f   :  { %2591 = vmatpush1.bf16.msra.mxu0 %v2590_v39  ;;  %2611 = vmatpush3.bf16.msra.mxu1 %v2608_v59 }
  0x50   :  { %2593 = vmatprep.subr.bf16.mxu0 %v2592_v40  ;;  %2613 = vmatprep.subr.bf16.mxu1 %v2612_v62 }
  0x53   :  { %2595 = vmatpush1.bf16.msra.mxu0 %v2594_v45  ;;  %2615 = vmatpush3.bf16.msra.mxu1 %v2612_v62  ;;  %v312_v45 = vmul.f32 0.17677669, %v311_v42 }
  0x54   :  { %2597 = vmatprep.subr.bf16.mxu0 %v2596_v46  ;;  %2617 = vmatprep.subr.bf16.mxu1 %v2616_v2 }
  0x55   :  { %v3118_v46 = vrot.slane %v312_v45, %v124_v5 }
  0x57   :  { %2599 = vmatpush1.bf16.msra.mxu0 %v2598_v49  ;;  %2619 = vmatpush3.bf16.msra.mxu1 %v2616_v2 }
  0x58   :  { %2621 = vmatprep.subr.bf16.mxu1 %v2620_v24 }
  0x5a   :  { %202 = vmatmul.mubr.f32.vlgmr.msra.gmra.mrb[0].mxu0 %v68_v26  ;;  %v113_v26 = vld [vmem:[#allocation6 + $0x148] sm:$0xff] }
  0x5b   :  { %207 = vmatprep.mubr.f32.mxu0 %v2997_v0  ;;  %2623 = vmatpush3.bf16.msra.mxu1 %v2620_v24  ;;  %v2624_v27 = vpack.c.bf16 %v113_v26, %v110_v25 }
  0x5d   :  { %2625 = vmatprep.subr.bf16.mxu1 %v2624_v27 }
  0x5e   :  { %208 = vmatmul.mubr.f32.gmra.mrb[2].mxu0 %v3086_v50 }
  0x5f   :  { %213 = vmatprep.mubr.f32.mxu0 %v2997_v0  ;;  %2627 = vmatpush3.bf16.msra.mxu1 %v2624_v27 }
  0x60   :  { %2629 = vmatprep.subr.bf16.mxu1 %v2628_v30 }
  0x62   :  { %214 = vmatmul.mubr.f32.gmra.mrb[4].mxu0 %v70_v31 }
  0x63   :  { %2631 = vmatpush3.bf16.msra.mxu1 %v2628_v30  ;;  %219 = vmatprep.mubr.f32.mxu0 %v2997_v0 }
  0x66   :  { %2413 = vmatmul.mubr.f32.vlgmr.msra.gmra.mrb[0].mxu1 %v3086_v50  ;;  %220 = vmatmul.mubr.f32.gmra.mrb[6].mxu0 %v71_v32 }
  0x67   :  { %2415 = vmatprep.mubr.f32.mxu1 %v70_v31 }
  0x6a   :  { %2416 = vmatmul.mubr.f32.gmra.mrb[2].mxu1 %v71_v32 }
 0x12d   :  { %v203_v10 = vpop.f32.mrb[0].mxu0 }
 0x12e   :  { %v204_v11 = vadd.f32 %v203_v10, %v3100_v8  ;;  %v205_v12 = vpop.f32.mrb[1].mxu0 }
 0x12f   :  { %v206_v13 = vadd.f32 %v205_v12, %v3103_v9 }
 0x130   :  { %v314_v14 = vmul.f32 %v204_v11, %v204_v11 }
 0x131   :  { %v209_v15 = vpop.f32.mrb[2].mxu0  ;;  %v353_v16 = vmul.f32 %v206_v13, %v206_v13 }
 0x132   :  { %v3108_v17 = vadd.f32 %v209_v15, %v3100_v8  ;;  %v211_v18 = vpop.f32.mrb[3].mxu0  ;;  %318 = vadd.xlane.f32.xlu1 %v314_v14 }
 0x133   :  { %v212_v19 = vadd.f32 %v211_v18, %v3103_v9  ;;  %357 = vadd.xlane.f32.xlu0 %v353_v16 }
 0x134   :  { %v315_v20 = vmul.f32 %v3108_v17, %v3108_v17 }
 0x135   :  { %v354_v21 = vmul.f32 %v212_v19, %v212_v19 }
 0x136   :  { %320 = vadd.xlane.f32.xlu1 %v315_v20  ;;  %v215_v20 = vpop.f32.mrb[4].mxu0 }
 0x137   :  { %359 = vadd.xlane.f32.xlu0 %v354_v21  ;;  %v217_v21 = vpop.f32.mrb[5].mxu0  ;;  %v3174_v25 = vadd.f32 %v215_v20, %v3100_v8 }
 0x138   :  { %v218_v24 = vadd.f32 %v217_v21, %v3103_v9 }
 0x139   :  { %v2414_v2 = vpop.f32.mrb[0].mxu1  ;;  %v221_v22 = vpop.f32.mrb[6].mxu0  ;;  %v316_v28 = vmul.f32 %v3174_v25, %v3174_v25 }
 0x13a   :  { %v298_v3 = vadd.f32 %v2414_v2, %v133_v1  ;;  %v292_v5 = vpop.f32.mrb[1].mxu1  ;;  %v223_v23 = vpop.f32.mrb[7].mxu0  ;;  %v355_v26 = vmul.f32 %v218_v24, %v218_v24  ;;  %v3180_v29 = vadd.f32 %v221_v22, %v3100_v8 }
 0x13b   :  { %v293_v7 = vadd.f32 %v292_v5, %v133_v1  ;;  %v224_v27 = vadd.f32 %v223_v23, %v3103_v9 }
 0x13c   :  { %v317_v31 = vmul.f32 %v3180_v29, %v3180_v29 }
 0x13d   :  { %v2417_v10 = vpop.f32.mrb[2].mxu1  ;;  %v3152_v15 = vpack.i.bf16 %v298_v3, %v293_v7  ;;  %v356_v30 = vmul.f32 %v224_v27, %v224_v27 }
 0x13e   :  { %v308_v12 = vadd.f32 %v2417_v10, %v133_v1 }
 0x1bf   :  { %v319_v33 = vpop.xlane.xlu1 %318 }
 0x1c0   :  { %v327_v34 = vmul.f32 0.0078125, %v319_v33  ;;  %v358_v35 = vpop.xlane.xlu0 %357 }
 0x1c1   :  { %v365_v36 = vmul.f32 0.0078125, %v358_v35 }
 0x1c2   :  { %v331_v37 = vadd.f32 1e-06, %v327_v34 }
 0x1c3   :  { %v369_v38 = vadd.f32 1e-06, %v365_v36  ;;  %v321_v39 = vpop.xlane.xlu1 %320 }
 0x1c4   :  { %2816 = vrsqrt.f32 %v331_v37  ;;  %v360_v40 = vpop.xlane.xlu0 %359  ;;  %v328_v43 = vmul.f32 0.0078125, %v321_v39 }
 0x1c5   :  { %2818 = vrsqrt.f32 %v369_v38  ;;  %v366_v41 = vmul.f32 0.0078125, %v360_v40 }
 0x1c6   :  { %v332_v0 = vadd.f32 1e-06, %v328_v43 }
 0x1c7   :  { %v370_v44 = vadd.f32 1e-06, %v366_v41 }
 0x1c9   :  { %2820 = vrsqrt.f32 %v370_v44 }
 0x1ca   :  { %2822 = vrsqrt.f32 %v332_v0 }
 0x1ce   :  { %v2817_v47 = vpop.eup %2816 }
 0x1cf   :  { %v2819_v48 = vpop.eup %2818  ;;  %v339_v49 = vmul.f32 %v2817_v47, %v204_v11  ;;  %v2638_v11 = vpack.c.bf16 %v298_v3, %v293_v7 }
 0x1d0   :  { %v377_v51 = vmul.f32 %v2819_v48, %v206_v13  ;;  %v302_v13 = vpop.f32.mrb[3].mxu1 }
 0x1d1   :  { %v3121_v50 = vmul.f32 %v3118_v46, %v339_v49  ;;  %v303_v14 = vadd.f32 %v302_v13, %v133_v1 }
 0x1d2   :  { %v387_v55 = vmul.f32 %v3126_v53, %v377_v51 }
 0x1d3   :  { %v2821_v52 = vpop.eup %2820  ;;  %2422 = vmatprep.mubr.msk.f32.mxu1 %vm391_vm0, %v3121_v50  ;;  %v3154_v16 = vpack.c.bf16 %v308_v12, %v303_v14 }
 0x1d4   :  { %v378_v54 = vmul.f32 %v2821_v52, %v212_v19  ;;  %v2823_v60 = vpop.eup %2822 }
 0x1d5   :  { %v340_v61 = vmul.f32 %v2823_v60, %v3108_v17  ;;  %v3156_v17 = vpack.i.bf16 %v308_v12, %v303_v14 }
 0x1d6   :  { %v388_v56 = vmul.f32 %v3126_v53, %v378_v54 }
 0x1d7   :  { %v3146_v62 = vmul.f32 %v3118_v46, %v340_v61 }
 0x1d8   :  { %v2632_v58 = vpack.c.bf16 %v388_v56, %v387_v55  ;;  %v3138_v59 = vpack.i.bf16 %v388_v56, %v387_v55 }
 0x1da   :  { %2634 = vmatprep.subr.msk.bf16.mxu1 %vm3134_vm1, %v2632_v58 }
 0x1db   :  { %2637 = vmatpush3.bf16.xpose.msk.msra.mxu1 %vm3134_vm1, %v2632_v58 }
 0x1dc   :  { %2639 = vmatprep.subr.bf16.mxu1 %v2638_v11 }
 0x1e2   :  { %2423 = vmatmul.mubr.msk.f32.vlgmr.msra.gmra.mrb[4].mxu1 %vm391_vm0, %v3146_v62 }
 0x1e3   :  { %2641 = vmatpush3.bf16.msra.mxu1 %v2638_v11 }
 0x2b5   :  { %v2424_v4 = vpop.f32.mrb[4].mxu1 }
 0x2b6   :  { %v470_v6 = vpop.f32.mrb[5].mxu1  ;;  %v483_v18 = vsel %vm479_vm2, %v2424_v4, -inf }
 0x2b7   :  { %484 = vmax.xlane.f32.xlu1 %v483_v18  ;;  %v480_v19 = vsel %vm479_vm2, %v470_v6, -inf }
 0x2b8   :  { %481 = vmax.xlane.f32.xlu0 %v480_v19 }
 0x2c8   :  { %591 = vrot.lane.b32.xlu1 %v3121_v50, %s2998_s3 }
 0x2cc   :  { %2762 = vrot.lane.b32.xlu1 %v3138_v59, %s2999_s4 }
 0x2ce   :  { %2757 = vrot.lane.b32.xlu0 %v3138_v59, %s2998_s3 }
 0x2d0   :  { %593 = vrot.lane.b32.xlu1 %v3146_v62, %s2998_s3 }
 0x2d2   :  { %810 = vrot.lane.b32.xlu0 %v3121_v50, %s2999_s4 }
 0x2d4   :  { %812 = vrot.lane.b32.xlu1 %v3146_v62, %s2999_s4 }
 0x2f1   :  { %361 = vadd.xlane.f32.xlu0 %v355_v26 }
 0x2f5   :  { %322 = vadd.xlane.f32.xlu0 %v316_v28 }
 0x2f8   :  { %363 = vadd.xlane.f32.xlu1 %v356_v30 }
 0x2fc   :  { %324 = vadd.xlane.f32.xlu1 %v317_v31 }
 0x344   :  { %v485_v32 = vpop.xlane.xlu1 %484 }
 0x345   :  { %v487_v33 = vsub.f32 %v2424_v4, %v485_v32  ;;  %v482_v34 = vpop.xlane.xlu0 %481 }
 0x346   :  { %v486_v35 = vsub.f32 %v470_v6, %v482_v34 }
 0x347   :  { %v490_v36 = vmul.f32 1.442695, %v487_v33 }
 0x348   :  { %v488_v9 = vmul.f32 1.442695, %v486_v35  ;;  %v592_v37 = vpop.permute.xlu1 %591 }
 0x349   :  { %v2758_v38 = vpop.permute.xlu0 %2757 }
 0x34a   :  { %2824 = vpow2.f32 %v488_v9  ;;  %v2760_v39 = vunpack.i.h.bf16 %v2758_v38  ;;  %v2759_v40 = vunpack.i.l.bf16 %v2758_v38 }
 0x34b   :  { %2826 = vpow2.f32 %v490_v36 }
 0x34c   :  { %v2642_v8 = vpack.c.bf16 %v2760_v39, %v2759_v40  ;;  %v2763_v41 = vpop.permute.xlu1 %2762 }
 0x34d   :  { %v2765_v42 = vunpack.i.h.bf16 %v2763_v41  ;;  %v2764_v43 = vunpack.i.l.bf16 %v2763_v41  ;;  %v811_v44 = vpop.permute.xlu0 %810 }
 0x34e   :  { %2644 = vmatprep.subr.msk.bf16.mxu1 %vm3134_vm1, %v2642_v8  ;;  %2450 = vmatprep.mubr.msk.f32.mxu0 %vm391_vm0, %v811_v44 }
 0x34f   :  { %v2652_v45 = vpack.c.bf16 %v2765_v42, %v2764_v43 }
 0x350   :  { %v594_v0 = vpop.permute.xlu1 %593 }
 0x351   :  { %2654 = vmatprep.subr.msk.bf16.mxu0 %vm3134_vm1, %v2652_v45 }
 0x352   :  { %2657 = vmatpush3.bf16.xpose.msk.msra.mxu0 %vm3134_vm1, %v2652_v45 }
 0x354   :  { %v3191_v47 = vpop.eup %2824  ;;  %v813_v49 = vpop.permute.xlu1 %812 }
 0x355   :  { %v3193_v48 = vpop.eup %2826  ;;  %2429 = vmatprep.mubr.msk.f32.mxu1 %vm479_vm2, %v3191_v47 }
 0x356   :  { %2430 = vmatmul.mubr.msk.f32.vlgmr.msra.gmra.mrb[6].mxu1 %vm479_vm2, %v3193_v48 }
 0x357   :  { %2647 = vmatpush3.bf16.xpose.msk.msra.mxu1 %vm3134_vm1, %v2642_v8  ;;  %2436 = vmatprep.mubr.msk.f32.mxu1 %vm391_vm0, %v592_v37 }
 0x359   :  { %2451 = vmatmul.mubr.msk.f32.vlgmr.msra.gmra.mrb[8].mxu0 %vm391_vm0, %v813_v49 }
 0x35e   :  { %2437 = vmatmul.mubr.msk.f32.vlgmr.msra.gmra.mrb[8].mxu1 %vm391_vm0, %v594_v0 }
 0x37e   :  { %v362_v52 = vpop.xlane.xlu0 %361 }
 0x37f   :  { %v367_v54 = vmul.f32 0.0078125, %v362_v52 }
 0x381   :  { %v371_v56 = vadd.f32 1e-06, %v367_v54 }
 0x382   :  { %v323_v19 = vpop.xlane.xlu0 %322 }
 0x383   :  { %2828 = vrsqrt.f32 %v371_v56  ;;  %v329_v38 = vmul.f32 0.0078125, %v323_v19 }
 0x385   :  { %v364_v51 = vpop.xlane.xlu1 %363  ;;  %v333_v8 = vadd.f32 1e-06, %v329_v38 }
 0x386   :  { %v368_v55 = vmul.f32 0.0078125, %v364_v51 }
 0x388   :  { %v372_v58 = vadd.f32 1e-06, %v368_v55 }
 0x389   :  { %v325_v21 = vpop.xlane.xlu1 %324 }
 0x38a   :  { %2830 = vrsqrt.f32 %v372_v58  ;;  %v330_v44 = vmul.f32 0.0078125, %v325_v21 }
 0x38c   :  { %v334_v51 = vadd.f32 1e-06, %v330_v44 }
 0x38d   :  { %v2829_v60 = vpop.eup %2828 }
 0x38e   :  { %v379_v63 = vmul.f32 %v2829_v60, %v218_v24 }
 0x390   :  { %v3205_v2 = vmul.f32 %v3126_v53, %v379_v63 }
 0x394   :  { %v2831_v61 = vpop.eup %2830 }
 0x395   :  { %v380_v1 = vmul.f32 %v2831_v61, %v224_v27 }
 0x397   :  { %v3208_v3 = vmul.f32 %v3126_v53, %v380_v1 }
 0x399   :  { %v3212_v5 = vpack.i.bf16 %v3208_v3, %v3205_v2  ;;  %v2672_v56 = vpack.c.bf16 %v3208_v3, %v3205_v2 }
 0x429   :  { %v3214_v7 = vpop.f32.mrb[6].mxu1 }
 0x42a   :  { %v3216_v10 = vpop.f32.mrb[7].mxu1 }
 0x42c   :  { %v2452_v11 = vpop.f32.mrb[8].mxu0 }
 0x42d   :  { %v892_v12 = vpop.f32.mrb[9].mxu0  ;;  %v904_v13 = vsel %vm479_vm2, %v2452_v11, -inf }
 0x42e   :  { %905 = vmax.xlane.f32.xlu0 %v904_v13  ;;  %v901_v4 = vsel %vm479_vm2, %v892_v12, -inf }
 0x431   :  { %v2438_v14 = vpop.f32.mrb[8].mxu1 }
 0x432   :  { %v673_v6 = vpop.f32.mrb[9].mxu1  ;;  %902 = vmax.xlane.f32.xlu0 %v901_v4  ;;  %v685_v53 = vsel %vm479_vm2, %v2438_v14, -inf }
 0x433   :  { %686 = vmax.xlane.f32.xlu1 %v685_v53  ;;  %v682_v18 = vsel %vm479_vm2, %v673_v6, -inf }
 0x436   :  { %683 = vmax.xlane.f32.xlu0 %v682_v18 }
 0x444   :  { %2772 = vrot.lane.b32.xlu1 %v3152_v15, %s2999_s4 }
 0x448   :  { %2777 = vrot.lane.b32.xlu1 %v3138_v59, %s3000_s20 }
 0x44c   :  { %1027 = vrot.lane.b32.xlu1 %v3121_v50, %s3000_s20  ;;  %2767 = vrot.lane.b32.xlu0 %v3152_v15, %s2998_s3 }
 0x450   :  { %1029 = vrot.lane.b32.xlu0 %v3146_v62, %s3000_s20 }
 0x4bb   :  { %v906_v20 = vpop.xlane.xlu0 %905 }
 0x4bc   :  { %v908_v59 = vsub.f32 %v2452_v11, %v906_v20 }
 0x4be   :  { %v911_v9 = vmul.f32 1.442695, %v908_v59 }
 0x4bf   :  { %v903_v22 = vpop.xlane.xlu0 %902 }
 0x4c0   :  { %v687_v23 = vpop.xlane.xlu1 %686  ;;  %v907_v26 = vsub.f32 %v892_v12, %v903_v22 }
 0x4c1   :  { %v689_v24 = vsub.f32 %v2438_v14, %v687_v23 }
 0x4c2   :  { %v909_v32 = vmul.f32 1.442695, %v907_v26 }
 0x4c3   :  { %v684_v27 = vpop.xlane.xlu0 %683  ;;  %v692_v31 = vmul.f32 1.442695, %v689_v24 }
 0x4c4   :  { %v2773_v28 = vpop.permute.xlu1 %2772  ;;  %v688_v30 = vsub.f32 %v673_v6, %v684_v27 }
 0x4c5   :  { %v2775_v33 = vunpack.i.h.bf16 %v2773_v28  ;;  %v2774_v35 = vunpack.i.l.bf16 %v2773_v28 }
 0x4c6   :  { %v690_v50 = vmul.f32 1.442695, %v688_v30 }
 0x4c7   :  { %v2768_v34 = vpop.permute.xlu0 %2767  ;;  %v2658_v39 = vpack.c.bf16 %v2775_v33, %v2774_v35 }
 0x4c8   :  { %2832 = vpow2.f32 %v690_v50  ;;  %v2770_v36 = vunpack.i.h.bf16 %v2768_v34  ;;  %v2769_v62 = vunpack.i.l.bf16 %v2768_v34  ;;  %v2778_v40 = vpop.permute.xlu1 %2777 }
 0x4c9   :  { %2834 = vpow2.f32 %v692_v31  ;;  %v2780_v41 = vunpack.i.h.bf16 %v2778_v40  ;;  %v2779_v42 = vunpack.i.l.bf16 %v2778_v40 }
 0x4ca   :  { %2836 = vpow2.f32 %v909_v32  ;;  %v2648_v37 = vpack.c.bf16 %v2770_v36, %v2769_v62 }
 0x4cb   :  { %2838 = vpow2.f32 %v911_v9  ;;  %v2662_v49 = vpack.c.bf16 %v2780_v41, %v2779_v42  ;;  %v1030_v61 = vpop.permute.xlu0 %1029 }
 0x4cc   :  { %2649 = vmatprep.subr.bf16.mxu1 %v2648_v37  ;;  %2840 = vrsqrt.f32 %v333_v8  ;;  %v1028_v54 = vpop.permute.xlu1 %1027 }
 0x4cd   :  { %2651 = vmatpush3.bf16.msra.mxu1 %v2648_v37  ;;  %2842 = vrsqrt.f32 %v334_v51 }
 0x4ce   :  { %2659 = vmatprep.subr.bf16.mxu1 %v2658_v39 }
 0x4d2   :  { %v3232_v43 = vpop.eup %2832 }
 0x4d3   :  { %v3234_v45 = vpop.eup %2834  ;;  %2443 = vmatprep.mubr.msk.f32.mxu1 %vm479_vm2, %v3232_v43  ;;  %v694_v57 = vsel %vm479_vm2, %v3232_v43, 0.0 }
 0x4d4   :  { %v3238_v0 = vpop.eup %2836  ;;  %2444 = vmatmul.mubr.msk.f32.vlgmr.msra.gmra.mrb[10].mxu1 %vm479_vm2, %v3234_v45 }
 0x4d5   :  { %2661 = vmatpush3.bf16.msra.mxu1 %v2658_v39  ;;  %2457 = vmatprep.mubr.msk.f32.mxu1 %vm479_vm2, %v3238_v0  ;;  %v3246_v52 = vpop.eup %2838 }
 0x4d6   :  { %2664 = vmatprep.subr.msk.bf16.mxu1 %vm3134_vm1, %v2662_v49  ;;  %v2841_v55 = vpop.eup %2840 }
 0x4d7   :  { %v341_v58 = vmul.f32 %v2841_v55, %v3174_v25  ;;  %v2843_v60 = vpop.eup %2842 }
 0x4d8   :  { %2458 = vmatmul.mubr.msk.f32.vlgmr.msra.gmra.mrb[12].mxu1 %vm479_vm2, %v3246_v52  ;;  %v342_v1 = vmul.f32 %v2843_v60, %v3180_v29 }
 0x4d9   :  { %2464 = vmatprep.mubr.msk.f32.mxu1 %vm391_vm0, %v1028_v54  ;;  %v3259_v63 = vmul.f32 %v3118_v46, %v341_v58 }
 0x4da   :  { %v3269_v2 = vmul.f32 %v3118_v46, %v342_v1 }
 0x4de   :  { %2667 = vmatpush3.bf16.xpose.msk.msra.mxu1 %vm3134_vm1, %v2662_v49 }
 0x4df   :  { %2674 = vmatprep.subr.msk.bf16.mxu1 %vm3134_vm1, %v2672_v56 }
 0x4e5   :  { %2465 = vmatmul.mubr.msk.f32.vlgmr.msra.gmra.mrb[14].mxu1 %vm391_vm0, %v1030_v61 }
 0x4e6   :  { %2677 = vmatpush3.bf16.xpose.msk.msra.mxu1 %vm3134_vm1, %v2672_v56  ;;  %2478 = vmatprep.mubr.msk.f32.mxu1 %vm391_vm0, %v3259_v63 }
 0x4e7   :  { %2679 = vmatprep.subr.bf16.mxu1 %v3154_v16 }
 0x4ed   :  { %2479 = vmatmul.mubr.msk.f32.vlgmr.msra.gmra.mrb[16].mxu1 %vm391_vm0, %v3269_v2 }
 0x4ee   :  { %2681 = vmatpush3.bf16.msra.mxu1 %v3154_v16 }
 0x5a7   :  { %v3274_v25 = vpop.f32.mrb[10].mxu1 }
 0x5a8   :  { %v3276_v3 = vpop.f32.mrb[11].mxu1 }
 0x5ab   :  { %v3278_v11 = vpop.f32.mrb[12].mxu1 }
 0x5ac   :  { %v3280_v12 = vpop.f32.mrb[13].mxu1 }
 0x5b8   :  { %v2466_v13 = vpop.f32.mrb[14].mxu1 }
 0x5b9   :  { %v1109_v29 = vpop.f32.mrb[15].mxu1  ;;  %v1121_v53 = vsel %vm479_vm2, %v2466_v13, -inf }
 0x5ba   :  { %v1118_v16 = vsel %vm479_vm2, %v1109_v29, -inf }
 0x5c0   :  { %v2480_v14 = vpop.f32.mrb[16].mxu1 }
 0x5c1   :  { %v1322_v4 = vpop.f32.mrb[17].mxu1  ;;  %v1334_v46 = vsel %vm479_vm2, %v2480_v14, -inf }
 0x5c2   :  { %1335 = vmax.xlane.f32.xlu0 %v1334_v46  ;;  %v1331_v6 = vsel %vm479_vm2, %v1322_v4, -inf }
 0x5c3   :  { %1332 = vmax.xlane.f32.xlu1 %v1331_v6 }
 0x5d4   :  { %1442 = vrot.lane.b32.xlu1 %v3259_v63, %s2998_s3 }
 0x5d8   :  { %2782 = vrot.lane.b32.xlu0 %v3212_v5, %s2998_s3  ;;  %1444 = vrot.lane.b32.xlu1 %v3269_v2, %s2998_s3 }
 0x5f7   :  { %1119 = vmax.xlane.f32.xlu0 %v1118_v16 }
 0x5fc   :  { %1122 = vmax.xlane.f32.xlu1 %v1121_v53 }
 0x60d   :  { %2792 = vrot.lane.b32.xlu1 %v3156_v17, %s2998_s3 }
 0x611   :  { %2797 = vrot.lane.b32.xlu1 %v3212_v5, %s2999_s4 }
 0x615   :  { %1660 = vrot.lane.b32.xlu1 %v3259_v63, %s2999_s4 }
 0x619   :  { %2807 = vrot.lane.b32.xlu1 %v3212_v5, %s3000_s20 }
 0x64f   :  { %v1336_v18 = vpop.xlane.xlu0 %1335 }
 0x650   :  { %v1338_v19 = vsub.f32 %v2480_v14, %v1336_v18  ;;  %v1333_v20 = vpop.xlane.xlu1 %1332 }
 0x651   :  { %v1337_v21 = vsub.f32 %v1322_v4, %v1333_v20 }
 0x652   :  { %v1341_v22 = vmul.f32 1.442695, %v1338_v19 }
 0x653   :  { %v1339_v23 = vmul.f32 1.442695, %v1337_v21  ;;  %v2783_v24 = vpop.permute.xlu0 %2782 }
 0x654   :  { %v2785_v26 = vunpack.i.h.bf16 %v2783_v24  ;;  %v2784_v27 = vunpack.i.l.bf16 %v2783_v24  ;;  %v1443_v5 = vpop.permute.xlu1 %1442 }
 0x655   :  { %2844 = vpow2.f32 %v1339_v23 }
 0x656   :  { %2846 = vpow2.f32 %v1341_v22  ;;  %v2682_v28 = vpack.c.bf16 %v2785_v26, %v2784_v27 }
 0x658   :  { %2684 = vmatprep.subr.msk.bf16.mxu1 %vm3134_vm1, %v2682_v28  ;;  %v1445_v31 = vpop.permute.xlu1 %1444 }
 0x65f   :  { %v3302_v30 = vpop.eup %2844 }
 0x660   :  { %v3304_v59 = vpop.eup %2846  ;;  %2485 = vmatprep.mubr.msk.f32.mxu1 %vm479_vm2, %v3302_v30 }
 0x661   :  { %2486 = vmatmul.mubr.msk.f32.vlgmr.msra.gmra.mrb[18].mxu1 %vm479_vm2, %v3304_v59 }
 0x662   :  { %2687 = vmatpush3.bf16.xpose.msk.msra.mxu1 %vm3134_vm1, %v2682_v28  ;;  %2492 = vmatprep.mubr.msk.f32.mxu1 %vm391_vm0, %v1443_v5 }
 0x669   :  { %2493 = vmatmul.mubr.msk.f32.vlgmr.msra.gmra.mrb[20].mxu1 %vm391_vm0, %v1445_v31 }
 0x684   :  { %v1120_v32 = vpop.xlane.xlu0 %1119 }
 0x685   :  { %v1124_v50 = vsub.f32 %v1109_v29, %v1120_v32 }
 0x687   :  { %v1126_v33 = vmul.f32 1.442695, %v1124_v50 }
 0x689   :  { %2848 = vpow2.f32 %v1126_v33  ;;  %v1123_v39 = vpop.xlane.xlu1 %1122 }
 0x68a   :  { %v1125_v40 = vsub.f32 %v2466_v13, %v1123_v39 }
 0x68c   :  { %v1128_v41 = vmul.f32 1.442695, %v1125_v40 }
 0x68d   :  { %v2793_v44 = vpop.permute.xlu1 %2792 }
 0x68e   :  { %2850 = vpow2.f32 %v1128_v41  ;;  %v2795_v56 = vunpack.i.h.bf16 %v2793_v44  ;;  %v2794_v60 = vunpack.i.l.bf16 %v2793_v44 }
 0x690   :  { %v2688_v14 = vpack.c.bf16 %v2795_v56, %v2794_v60 }
 0x691   :  { %v2798_v1 = vpop.permute.xlu1 %2797 }
 0x692   :  { %v2800_v13 = vunpack.i.h.bf16 %v2798_v1  ;;  %v2799_v4 = vunpack.i.l.bf16 %v2798_v1  ;;  %v916_v1 = vsel %vm479_vm2, %v3246_v52, 0.0 }
 0x693   :  { %v3314_v34 = vpop.eup %2848 }
 0x694   :  { %2471 = vmatprep.mubr.msk.f32.mxu0 %vm479_vm2, %v3314_v34  ;;  %v2692_v6 = vpack.c.bf16 %v2800_v13, %v2799_v4 }
 0x695   :  { %v1661_v18 = vpop.permute.xlu1 %1660 }
 0x698   :  { %v3328_v46 = vpop.eup %2850 }
 0x699   :  { %v2808_v5 = vpop.permute.xlu1 %2807 }
 0x69a   :  { %v2809_v39 = vunpack.i.l.bf16 %v2808_v5 }
 0x734   :  { %v3318_v35 = vpop.f32.mrb[18].mxu1 }
 0x735   :  { %v3320_v36 = vpop.f32.mrb[19].mxu1 }
 0x73c   :  { %v2494_v62 = vpop.f32.mrb[20].mxu1 }
 0x73d   :  { %v1524_v9 = vpop.f32.mrb[21].mxu1  ;;  %v1536_v37 = vsel %vm479_vm2, %v2494_v62, -inf }
 0x73e   :  { %1537 = vmax.xlane.f32.xlu0 %v1536_v37  ;;  %v1533_v38 = vsel %vm479_vm2, %v1524_v9, -inf }
 0x742   :  { %1534 = vmax.xlane.f32.xlu0 %v1533_v38  ;;  %v2810_v38 = vunpack.i.h.bf16 %v2808_v5 }
 0x744   :  { %v2702_v41 = vpack.c.bf16 %v2810_v38, %v2809_v39 }
 0x758   :  { %2787 = vrot.lane.b32.xlu0 %v3152_v15, %s3000_s20 }
 0x75c   :  { %1662 = vrot.lane.b32.xlu0 %v3269_v2, %s2999_s4 }
 0x7cb   :  { %v1538_v8 = vpop.xlane.xlu0 %1537 }
 0x7cc   :  { %v1540_v42 = vsub.f32 %v2494_v62, %v1538_v8 }
 0x7ce   :  { %v1543_v54 = vmul.f32 1.442695, %v1540_v42 }
 0x7cf   :  { %v1535_v49 = vpop.xlane.xlu0 %1534 }
 0x7d0   :  { %v1539_v51 = vsub.f32 %v1524_v9, %v1535_v49 }
 0x7d2   :  { %v1541_v55 = vmul.f32 1.442695, %v1539_v51 }
 0x7d3   :  { %v2788_v58 = vpop.permute.xlu0 %2787 }
 0x7d4   :  { %2852 = vpow2.f32 %v1541_v55  ;;  %v2790_v61 = vunpack.i.h.bf16 %v2788_v58  ;;  %v2789_v15 = vunpack.i.l.bf16 %v2788_v58 }
 0x7d5   :  { %2854 = vpow2.f32 %v1543_v54 }
 0x7d6   :  { %v2668_v29 = vpack.c.bf16 %v2790_v61, %v2789_v15  ;;  %v697_v61 = vsel %vm479_vm2, %v3234_v45, 0.0  ;;  %v913_v15 = vsel %vm479_vm2, %v3238_v0, 0.0 }
 0x7d7   :  { %v1663_v19 = vpop.permute.xlu0 %1662 }
 0x7d8   :  { %2669 = vmatprep.subr.bf16.mxu0 %v2668_v29 }
 0x7d9   :  { %2671 = vmatpush3.bf16.msra.mxu0 %v2668_v29  ;;  %v1130_v29 = vsel %vm479_vm2, %v3314_v34, 0.0  ;;  %v1133_v34 = vsel %vm479_vm2, %v3328_v46, 0.0 }
 0x7da   :  { %2689 = vmatprep.subr.bf16.mxu0 %v2688_v14 }
 0x7dc   :  { %2472 = vmatmul.mubr.msk.f32.vlgmr.msra.gmra.mrb[10].mxu0 %vm479_vm2, %v3328_v46 }
 0x7dd   :  { %2691 = vmatpush3.bf16.msra.mxu0 %v2688_v14 }
 0x7de   :  { %v3332_v16 = vpop.eup %2852  ;;  %2694 = vmatprep.subr.msk.bf16.mxu0 %vm3134_vm1, %v2692_v6 }
 0x7df   :  { %v3336_v53 = vpop.eup %2854  ;;  %2499 = vmatprep.mubr.msk.f32.mxu0 %vm479_vm2, %v3332_v16  ;;  %v1545_v43 = vsel %vm479_vm2, %v3332_v16, 0.0 }
 0x7e0   :  { %2500 = vmatmul.mubr.msk.f32.vlgmr.msra.gmra.mrb[12].mxu0 %vm479_vm2, %v3336_v53  ;;  %v1548_v45 = vsel %vm479_vm2, %v3336_v53, 0.0 }
 0x7e1   :  { %2506 = vmatprep.mubr.msk.f32.mxu0 %vm391_vm0, %v1661_v18 }
 0x7e6   :  { %2697 = vmatpush3.bf16.xpose.msk.msra.mxu0 %vm3134_vm1, %v2692_v6 }
 0x7ed   :  { %2507 = vmatmul.mubr.msk.f32.vlgmr.msra.gmra.mrb[14].mxu0 %vm391_vm0, %v1663_v19 }
 0x8af   :  { %v3346_v20 = vpop.f32.mrb[10].mxu0 }
 0x8b0   :  { %v3348_v21 = vpop.f32.mrb[11].mxu0 }
 0x8b3   :  { %v3350_v22 = vpop.f32.mrb[12].mxu0 }
 0x8b4   :  { %v3352_v23 = vpop.f32.mrb[13].mxu0 }
 0x8c0   :  { %v2508_v24 = vpop.f32.mrb[14].mxu0 }
 0x8c1   :  { %v1742_v26 = vpop.f32.mrb[15].mxu0  ;;  %v1754_v27 = vsel %vm479_vm2, %v2508_v24, -inf }
 0x8c2   :  { %1755 = vmax.xlane.f32.xlu0 %v1754_v27  ;;  %v1751_v28 = vsel %vm479_vm2, %v1742_v26, -inf }
 0x8c3   :  { %1752 = vmax.xlane.f32.xlu1 %v1751_v28 }
 0x8d4   :  { %1876 = vrot.lane.b32.xlu1 %v3259_v63, %s3000_s20 }
 0x8d8   :  { %2802 = vrot.lane.b32.xlu0 %v3156_v17, %s2999_s4 }
 0x8dc   :  { %1878 = vrot.lane.b32.xlu0 %v3269_v2, %s3000_s20 }
 0x94f   :  { %v1756_v31 = vpop.xlane.xlu0 %1755 }
 0x950   :  { %v1758_v32 = vsub.f32 %v2508_v24, %v1756_v31  ;;  %v1753_v50 = vpop.xlane.xlu1 %1752 }
 0x951   :  { %v1757_v33 = vsub.f32 %v1742_v26, %v1753_v50 }
 0x952   :  { %v1761_v62 = vmul.f32 1.442695, %v1758_v32 }
 0x953   :  { %v1759_v9 = vmul.f32 1.442695, %v1757_v33  ;;  %v2803_v37 = vpop.permute.xlu0 %2802 }
 0x954   :  { %v2805_v40 = vunpack.i.h.bf16 %v2803_v37  ;;  %v2804_v8 = vunpack.i.l.bf16 %v2803_v37  ;;  %v1877_v44 = vpop.permute.xlu1 %1876 }
 0x955   :  { %2856 = vpow2.f32 %v1759_v9 }
 0x956   :  { %2858 = vpow2.f32 %v1761_v62  ;;  %v2698_v63 = vpack.c.bf16 %v2805_v40, %v2804_v8  ;;  %v492_v8 = vsel %vm479_vm2, %v3191_v47, 0.0 }
 0x957   :  { %v1879_v49 = vpop.permute.xlu0 %1878 }
 0x958   :  { %2699 = vmatprep.subr.bf16.mxu1 %v2698_v63 }
 0x959   :  { %2701 = vmatpush3.bf16.msra.mxu1 %v2698_v63 }
 0x95a   :  { %2704 = vmatprep.subr.msk.bf16.mxu1 %vm3134_vm1, %v2702_v41 }
 0x95f   :  { %v2857_v2 = vpop.eup %2856 }
 0x960   :  { %v2859_v42 = vpop.eup %2858  ;;  %2513 = vmatprep.mubr.msk.f32.mxu1 %vm479_vm2, %v2857_v2  ;;  %v1763_v0 = vsel %vm479_vm2, %v2857_v2, 0.0  ;;  %v495_v2 = vsel %vm479_vm2, %v3193_v48, 0.0 }
 0x961   :  { %2514 = vmatmul.mubr.msk.f32.vlgmr.msra.gmra.mrb[22].mxu1 %vm479_vm2, %v2859_v42  ;;  %v1766_v52 = vsel %vm479_vm2, %v2859_v42, 0.0 }
 0x962   :  { %2707 = vmatpush3.bf16.xpose.msk.msra.mxu1 %vm3134_vm1, %v2702_v41  ;;  %2520 = vmatprep.mubr.msk.f32.mxu1 %vm391_vm0, %v1877_v44 }
 0x969   :  { %2521 = vmatmul.mubr.msk.f32.vlgmr.msra.gmra.mrb[24].mxu1 %vm391_vm0, %v1879_v49 }
 0xa34   :  { %v3370_v51 = vpop.f32.mrb[22].mxu1 }
 0xa35   :  { %v3372_v54 = vpop.f32.mrb[23].mxu1 }
 0xa3c   :  { %v2522_v55 = vpop.f32.mrb[24].mxu1 }
 0xa3d   :  { %v1958_v56 = vpop.f32.mrb[25].mxu1  ;;  %v1970_v58 = vsel %vm479_vm2, %v2522_v55, -inf }
 0xa3e   :  { %1971 = vmax.xlane.f32.xlu0 %v1970_v58  ;;  %v1967_v60 = vsel %vm479_vm2, %v1958_v56, -inf }
 0xa3f   :  { %1968 = vmax.xlane.f32.xlu1 %v1967_v60 }
 0xa43   :  { %695 = vadd.xlane.f32.xlu1 %v694_v57  ;;  %v2096_v57 = vld [vmem:[#allocation8] sm:$0xff] }
 0xa47   :  { %698 = vadd.xlane.f32.xlu1 %v697_v61  ;;  %v2097_v61 = vld [vmem:[#allocation8 + $0x8] sm:$0xff] }
 0xa4b   :  { %914 = vadd.xlane.f32.xlu1 %v913_v15 }
 0xa4f   :  { %917 = vadd.xlane.f32.xlu1 %v916_v1 }
 0xa53   :  { %1131 = vadd.xlane.f32.xlu1 %v1130_v29  ;;  %v2712_v29 = vpack.c.bf16 %v2097_v61, %v2096_v57 }
 0xa54   :  { %2812 = vrot.lane.b32.xlu0 %v3156_v17, %s3000_s20  ;;  %v1343_v17 = vsel %vm479_vm2, %v3302_v30, 0.0 }
 0xa57   :  { %1546 = vadd.xlane.f32.xlu1 %v1545_v43 }
 0xa5b   :  { %1549 = vadd.xlane.f32.xlu1 %v1548_v45  ;;  %v2098_v45 = vld [vmem:[#allocation8 + $0x10] sm:$0xff] }
 0xa5f   :  { %1764 = vadd.xlane.f32.xlu1 %v1763_v0  ;;  %v2099_v0 = vld [vmem:[#allocation8 + $0x18] sm:$0xff] }
 0xa63   :  { %1767 = vadd.xlane.f32.xlu1 %v1766_v52  ;;  %v2716_v52 = vpack.c.bf16 %v2099_v0, %v2098_v45 }
 0xa73   :  { %1134 = vadd.xlane.f32.xlu0 %v1133_v34 }
 0xa77   :  { %1344 = vadd.xlane.f32.xlu0 %v1343_v17 }
 0xacb   :  { %v1972_v14 = vpop.xlane.xlu0 %1971 }
 0xacc   :  { %v1974_v13 = vsub.f32 %v2522_v55, %v1972_v14  ;;  %v1969_v4 = vpop.xlane.xlu1 %1968 }
 0xacd   :  { %v1973_v6 = vsub.f32 %v1958_v56, %v1969_v4  ;;  %v2101_v4 = vld [vmem:[#allocation8 + $0x28] sm:$0xff] }
 0xace   :  { %v1977_v16 = vmul.f32 1.442695, %v1974_v13  ;;  %v2100_v13 = vld [vmem:[#allocation8 + $0x20] sm:$0xff] }
 0xacf   :  { %v1975_v53 = vmul.f32 1.442695, %v1973_v6  ;;  %v2813_v18 = vpop.permute.xlu0 %2812 }
 0xad0   :  { %2860 = vpow2.f32 %v1977_v16  ;;  %v2815_v19 = vunpack.i.h.bf16 %v2813_v18  ;;  %v2814_v24 = vunpack.i.l.bf16 %v2813_v18  ;;  %v696_v26 = vpop.xlane.xlu1 %695 }
 0xad1   :  { %2862 = vpow2.f32 %v1975_v53  ;;  %v2720_v53 = vpack.c.bf16 %v2101_v4, %v2100_v13 }
 0xad2   :  { %v2708_v27 = vpack.c.bf16 %v2815_v19, %v2814_v24  ;;  %2864 = vrcp.f32 %v696_v26 }
 0xad4   :  { %2709 = vmatprep.subr.bf16.mxu0 %v2708_v27  ;;  %v699_v46 = vpop.xlane.xlu1 %698 }
 0xad5   :  { %2711 = vmatpush3.bf16.msra.mxu0 %v2708_v27  ;;  %v2102_v27 = vld [vmem:[#allocation8 + $0x30] sm:$0xff] }
 0xad6   :  { %2713 = vmatprep.subr.bf16.mxu0 %v2712_v29 }
 0xad8   :  { %v915_v28 = vpop.xlane.xlu1 %914 }
 0xada   :  { %v2861_v30 = vpop.eup %2860 }
 0xadb   :  { %v2863_v5 = vpop.eup %2862  ;;  %v1982_v37 = vsel %vm479_vm2, %v2861_v30, 0.0 }
 0xadc   :  { %v2865_v31 = vpop.eup %2864  ;;  %2527 = vmatprep.mubr.msk.f32.mxu0 %vm479_vm2, %v2863_v5  ;;  %v918_v32 = vpop.xlane.xlu1 %917  ;;  %v1979_v50 = vsel %vm479_vm2, %v2863_v5, 0.0 }
 0xadd   :  { %v791_v33 = vmul.f32 %v2865_v31, %v696_v26  ;;  %2866 = vrcp.f32 %v918_v32  ;;  %2528 = vmatmul.mubr.msk.f32.vlgmr.msra.gmra.mrb[16].mxu0 %vm479_vm2, %v2861_v30  ;;  %1980 = vadd.xlane.f32.xlu1 %v1979_v50 }
 0xade   :  { %2868 = vrcp.f32 %v699_v46  ;;  %2715 = vmatpush3.bf16.msra.mxu0 %v2712_v29 }
 0xadf   :  { %v793_v62 = vsub.f32 2.0, %v791_v33  ;;  %2870 = vrcp.f32 %v915_v28  ;;  %2717 = vmatprep.subr.bf16.mxu0 %v2716_v52 }
 0xae0   :  { %v1132_v9 = vpop.xlane.xlu1 %1131 }
 0xae1   :  { %v795_v38 = vmul.f32 %v2865_v31, %v793_v62  ;;  %1983 = vadd.xlane.f32.xlu1 %v1982_v37  ;;  %2872 = vrcp.f32 %v1132_v9 }
 0xae2   :  { %2719 = vmatpush3.bf16.msra.mxu0 %v2716_v52 }
 0xae3   :  { %v797_v39 = vmul.f32 %v795_v38, %v3276_v3  ;;  %v1346_v3 = vsel %vm479_vm2, %v3304_v59, 0.0  ;;  %2721 = vmatprep.subr.bf16.mxu0 %v2720_v53  ;;  %v2106_v38 = vld [vmem:[#allocation8 + $0x50] sm:$0xff] }
 0xae4   :  { %v1547_v40 = vpop.xlane.xlu1 %1546 }
 0xae5   :  { %801 = vrot.lane.b32.xlu0 %v797_v39, %s3000_s20  ;;  %493 = vadd.xlane.f32.xlu1 %v492_v8  ;;  %2874 = vrcp.f32 %v1547_v40  ;;  %v2107_v39 = vld [vmem:[#allocation8 + $0x58] sm:$0xff] }
 0xae6   :  { %2723 = vmatpush3.bf16.msra.mxu0 %v2720_v53 }
 0xae7   :  { %v2867_v63 = vpop.eup %2866 }
 0xae8   :  { %v1009_v41 = vmul.f32 %v2867_v63, %v918_v32  ;;  %v3408_v44 = vpop.xlane.xlu1 %1549  ;;  %v2869_v55 = vpop.eup %2868  ;;  %v2105_v32 = vld [vmem:[#allocation8 + $0x48] sm:$0xff] }
 0xae9   :  { %496 = vadd.xlane.f32.xlu1 %v495_v2  ;;  %v2871_v56 = vpop.eup %2870  ;;  %v792_v58 = vmul.f32 %v2869_v55, %v699_v46  ;;  %v2103_v46 = vld [vmem:[#allocation8 + $0x38] sm:$0xff] }
 0xaea   :  { %v1011_v42 = vsub.f32 2.0, %v1009_v41  ;;  %v1008_v48 = vmul.f32 %v2871_v56, %v915_v28  ;;  %v2724_v31 = vpack.c.bf16 %v2103_v46, %v2102_v27 }
 0xaeb   :  { %v2873_v15 = vpop.eup %2872  ;;  %v794_v1 = vsub.f32 2.0, %v792_v58 }
 0xaec   :  { %v1013_v49 = vmul.f32 %v2867_v63, %v1011_v42  ;;  %v1765_v60 = vpop.xlane.xlu1 %1764  ;;  %v1010_v43 = vsub.f32 2.0, %v1008_v48  ;;  %v1225_v59 = vmul.f32 %v2873_v15, %v1132_v9  ;;  %2725 = vmatprep.subr.bf16.mxu0 %v2724_v31  ;;  %v2732_v63 = vpack.c.bf16 %v2107_v39, %v2106_v38  ;;  %v2108_v42 = vld [vmem:[#allocation8 + $0x60] sm:$0xff]  ;;  %v2111_v48 = vld [vmem:[#allocation8 + $0x78] sm:$0xff] }
 0xaed   :  { %1347 = vadd.xlane.f32.xlu1 %v1346_v3  ;;  %2876 = vrcp.f32 %v1765_v60  ;;  %2727 = vmatpush3.bf16.msra.mxu0 %v2724_v31 }
 0xaee   :  { %v1015_v47 = vmul.f32 %v3278_v11, %v1013_v49  ;;  %v796_v11 = vmul.f32 %v2869_v55, %v794_v1  ;;  %v1012_v17 = vmul.f32 %v2871_v56, %v1010_v43  ;;  %v1227_v14 = vsub.f32 2.0, %v1225_v59  ;;  %v2109_v49 = vld [vmem:[#allocation8 + $0x68] sm:$0xff] }
 0xaef   :  { %v2875_v34 = vpop.eup %2874  ;;  %2878 = vrcp.f32 %v3408_v44 }
 0xaf0   :  { %1020 = vrot.lane.b32.xlu0 %v1015_v47, %s2999_s4  ;;  %v1642_v6 = vmul.f32 %v2875_v34, %v1547_v40  ;;  %v798_v16 = vmul.f32 %v3274_v25, %v796_v11  ;;  %v1768_v19 = vpop.xlane.xlu1 %1767  ;;  %v1229_v24 = vmul.f32 %v2873_v15, %v1227_v14  ;;  %v1014_v26 = vmul.f32 %v1012_v17, %v3280_v12  ;;  %v2104_v25 = vld [vmem:[#allocation8 + $0x40] sm:$0xff] }
 0xaf1   :  { %2880 = vrcp.f32 %v1768_v19  ;;  %v2728_v9 = vpack.c.bf16 %v2105_v32, %v2104_v25  ;;  %v2736_v47 = vpack.c.bf16 %v2109_v49, %v2108_v42 }
 0xaf2   :  { %v1644_v28 = vsub.f32 2.0, %v1642_v6  ;;  %v1231_v12 = vmul.f32 %v1229_v24, %v3348_v21 }
 0xaf3   :  { %2729 = vmatprep.subr.bf16.mxu0 %v2728_v9 }
 0xaf4   :  { %v1646_v50 = vmul.f32 %v2875_v34, %v1644_v28  ;;  %2731 = vmatpush3.bf16.msra.mxu0 %v2728_v9 }
 0xaf5   :  { %2733 = vmatprep.subr.bf16.mxu0 %v2732_v63 }
 0xaf6   :  { %v1648_v8 = vmul.f32 %v1646_v50, %v3352_v23 }
 0xaf7   :  { %v2877_v18 = vpop.eup %2876 }
 0xaf8   :  { %v1858_v30 = vmul.f32 %v2877_v18, %v1765_v60  ;;  %2735 = vmatpush3.bf16.msra.mxu0 %v2732_v63 }
 0xaf9   :  { %v2879_v37 = vpop.eup %2878  ;;  %2737 = vmatprep.subr.bf16.mxu0 %v2736_v47 }
 0xafa   :  { %v1860_v33 = vsub.f32 2.0, %v1858_v30  ;;  %v1643_v2 = vmul.f32 %v2879_v37, %v3408_v44  ;;  %v2110_v44 = vld [vmem:[#allocation8 + $0x70] sm:$0xff] }
 0xafb   :  { %v2881_v41 = vpop.eup %2880  ;;  %v2740_v15 = vpack.c.bf16 %v2111_v48, %v2110_v44 }
 0xafc   :  { %v1862_v40 = vmul.f32 %v2877_v18, %v1860_v33  ;;  %v1645_v56 = vsub.f32 2.0, %v1643_v2  ;;  %v1859_v58 = vmul.f32 %v2881_v41, %v1768_v19  ;;  %2739 = vmatpush3.bf16.msra.mxu0 %v2736_v47 }
 0xafd   :  { %2741 = vmatprep.subr.bf16.mxu0 %v2740_v15 }
 0xafe   :  { %803 = vrot.lane.b32.xlu1 %v798_v16, %s3000_s20  ;;  %v1864_v55 = vmul.f32 %v1862_v40, %v3372_v54  ;;  %v1647_v1 = vmul.f32 %v2879_v37, %v1645_v56  ;;  %v1861_v29 = vsub.f32 2.0, %v1859_v58 }
 0xb00   :  { %v1135_v5 = vpop.xlane.xlu0 %1134  ;;  %2743 = vmatpush3.bf16.msra.mxu0 %v2740_v15  ;;  %v1863_v45 = vmul.f32 %v2881_v41, %v1861_v29  ;;  %v1649_v11 = vmul.f32 %v3350_v22, %v1647_v1 }
 0xb01   :  { %2882 = vrcp.f32 %v1135_v5 }
 0xb02   :  { %1018 = vrot.lane.b32.xlu1 %v1014_v26, %s2999_s4  ;;  %v1865_v52 = vmul.f32 %v3370_v51, %v1863_v45 }
 0xb04   :  { %v1345_v62 = vpop.xlane.xlu0 %1344 }
 0xb05   :  { %2884 = vrcp.f32 %v1345_v62 }
 0xb06   :  { %1235 = vrot.lane.b32.xlu1 %v1231_v12, %s2998_s3 }
 0xb0a   :  { %1652 = vrot.lane.b32.xlu1 %v1648_v8, %s3000_s20 }
 0xb0b   :  { %v2883_v21 = vpop.eup %2882 }
 0xb0c   :  { %v1226_v3 = vmul.f32 %v2883_v21, %v1135_v5 }
 0xb0e   :  { %v1228_v60 = vsub.f32 2.0, %v1226_v3  ;;  %1868 = vrot.lane.b32.xlu1 %v1864_v55, %s2999_s4 }
 0xb0f   :  { %v2885_v23 = vpop.eup %2884 }
 0xb10   :  { %v1230_v57 = vmul.f32 %v2883_v21, %v1228_v60  ;;  %v1432_v61 = vmul.f32 %v2885_v23, %v1345_v62  ;;  %v2275_v60 = vld [vmem:[%s3478_s6] ss:$0 sm:$0xff] }
 0xb12   :  { %v1434_v43 = vsub.f32 2.0, %v1432_v61  ;;  %v1232_v59 = vmul.f32 %v3346_v20, %v1230_v57 }
 0xb14   :  { %v1436_v54 = vmul.f32 %v2885_v23, %v1434_v43  ;;  %1237 = vrot.lane.b32.xlu0 %v1232_v59, %s2998_s3 }
 0xb16   :  { %v1438_v0 = vmul.f32 %v1436_v54, %v3320_v36 }
 0xb18   :  { %1440 = vst.msk [vmem:[#allocation2 + $0x10] sm:$0xff] %vm391_vm0, %v1438_v0  ;;  %1654 = vrot.lane.b32.xlu0 %v1649_v11, %s3000_s20 }
 0xb1c   :  { %1870 = vrot.lane.b32.xlu0 %v1865_v52, %s2999_s4 }
 0xb57   :  { %v802_v36 = vpop.permute.xlu0 %801 }
 0xb62   :  { %v1021_v18 = vpop.permute.xlu0 %1020 }
 0xb6a   :  { %v1981_v34 = vpop.xlane.xlu1 %1980 }
 0xb6e   :  { %v1984_v20 = vpop.xlane.xlu1 %1983 }
 0xb72   :  { %v494_v17 = vpop.xlane.xlu1 %493 }
 0xb73   :  { %2886 = vrcp.f32 %v494_v17 }
 0xb76   :  { %v497_v14 = vpop.xlane.xlu1 %496 }
 0xb77   :  { %2888 = vrcp.f32 %v497_v14 }
 0xb7a   :  { %v1348_v13 = vpop.xlane.xlu1 %1347 }
 0xb7b   :  { %2890 = vrcp.f32 %v1348_v13 }
 0xb7c   :  { %2892 = vrcp.f32 %v1984_v20 }
 0xb7d   :  { %v2887_v4 = vpop.eup %2886  ;;  %2894 = vrcp.f32 %v1981_v34 }
 0xb7e   :  { %v581_v6 = vmul.f32 %v2887_v4, %v494_v17  ;;  %v804_v22 = vpop.permute.xlu1 %803 }
 0xb80   :  { %v583_v16 = vsub.f32 2.0, %v581_v6 }
 0xb81   :  { %v2889_v53 = vpop.eup %2888 }
 0xb82   :  { %v585_v19 = vmul.f32 %v2887_v4, %v583_v16  ;;  %v582_v24 = vmul.f32 %v2889_v53, %v497_v14  ;;  %v1019_v51 = vpop.permute.xlu1 %1018 }
 0xb84   :  { %v587_v26 = vmul.f32 %v585_v19, %v3216_v10  ;;  %v584_v27 = vsub.f32 2.0, %v582_v24 }
 0xb85   :  { %v2891_v46 = vpop.eup %2890 }
 0xb86   :  { %589 = vst.msk [vmem:[#allocation2] sm:$0xff] %vm391_vm0, %v587_v26  ;;  %v586_v28 = vmul.f32 %v2889_v53, %v584_v27  ;;  %v1433_v30 = vmul.f32 %v2891_v46, %v1348_v13  ;;  %v1238_v5 = vpop.permute.xlu0 %1237  ;;  %v1236_v31 = vpop.permute.xlu1 %1235 }
 0xb87   :  { %808 = vst.msk [vmem:[#allocation2] sm:$0xff] %vm807_vm3, %v802_v36 }
 0xb88   :  { %v588_v25 = vmul.f32 %v3214_v7, %v586_v28  ;;  %v1435_v32 = vsub.f32 2.0, %v1433_v30  ;;  %1025 = vst.msk [vmem:[#allocation2] sm:$0xff] %vm1024_vm4, %v1019_v51 }
 0xb89   :  { %1242 = vst.msk [vmem:[#allocation2] sm:$0xff] %vm1241_vm5, %v1236_v31 }
 0xb8a   :  { %590 = vst.msk [vmem:[#allocation2 + $0x8] sm:$0xff] %vm391_vm0, %v588_v25  ;;  %v1437_v10 = vmul.f32 %v2891_v46, %v1435_v32  ;;  %v1655_v50 = vpop.permute.xlu0 %1654  ;;  %v1653_v33 = vpop.permute.xlu1 %1652 }
 0xb8b   :  { %809 = vst.msk [vmem:[#allocation2 + $0x8] sm:$0xff] %vm807_vm3, %v804_v22  ;;  %1658 = vst.msk [vmem:[#allocation2 + $0x10] sm:$0xff] %vm807_vm3, %v1653_v33 }
 0xb8c   :  { %v1439_v62 = vmul.f32 %v3318_v35, %v1437_v10  ;;  %1026 = vst.msk [vmem:[#allocation2 + $0x8] sm:$0xff] %vm1024_vm4, %v1021_v18  ;;  %v2893_v35 = vpop.eup %2892 }
 0xb8d   :  { %1243 = vst.msk [vmem:[#allocation2 + $0x8] sm:$0xff] %vm1241_vm5, %v1238_v5  ;;  %v2895_v38 = vpop.eup %2894  ;;  %v2075_v39 = vmul.f32 %v2893_v35, %v1984_v20 }
 0xb8e   :  { %1441 = vst.msk [vmem:[#allocation2 + $0x18] sm:$0xff] %vm391_vm0, %v1439_v62  ;;  %v1871_v7 = vpop.permute.xlu0 %1870  ;;  %v1869_v12 = vpop.permute.xlu1 %1868  ;;  %v2074_v40 = vmul.f32 %v2895_v38, %v1981_v34 }
 0xb8f   :  { %1659 = vst.msk [vmem:[#allocation2 + $0x18] sm:$0xff] %vm807_vm3, %v1655_v50  ;;  %v2077_v8 = vsub.f32 2.0, %v2075_v39 }
 0xb90   :  { %1874 = vst.msk [vmem:[#allocation2 + $0x10] sm:$0xff] %vm1024_vm4, %v1869_v12  ;;  %1875 = vst.msk [vmem:[#allocation2 + $0x18] sm:$0xff] %vm1024_vm4, %v1871_v7  ;;  %v2092_v9 = vld [vmem:[#allocation2] sm:$0xff]  ;;  %v2076_v63 = vsub.f32 2.0, %v2074_v40 }
 0xb91   :  { %2562 = vmatprep.mubr.f32.mxu0 %v2092_v9  ;;  %v2079_v41 = vmul.f32 %v2893_v35, %v2077_v8 }
 0xb92   :  { %v2078_v21 = vmul.f32 %v2895_v38, %v2076_v63 }
 0xb94   :  { %v2093_v37 = vld [vmem:[#allocation2 + $0x8] sm:$0xff] }
 0xb95   :  { %2563 = vmatmul.mubr.f32.vlgmr.msra.gmra.mrb[18].mxu0 %v2093_v37 }
 0xbb0   :  { %v2529_v2 = vpop.f32.mrb[16].mxu0 }
 0xbb1   :  { %v2081_v42 = vmul.f32 %v2529_v2, %v2079_v41  ;;  %v2063_v49 = vpop.f32.mrb[17].mxu0 }
 0xbb2   :  { %v2080_v3 = vmul.f32 %v2078_v21, %v2063_v49 }
 0xbb3   :  { %2086 = vrot.lane.b32.xlu0 %v2081_v42, %s2998_s3 }
 0xbb4   :  { %2084 = vrot.lane.b32.xlu1 %v2080_v3, %s2998_s3 }
 0xc25   :  { %v2087_v55 = vpop.permute.xlu0 %2086 }
 0xc26   :  { %2091 = vst.msk [vmem:[#allocation2 + $0x18] sm:$0xff] %vm1241_vm5, %v2087_v55  ;;  %v2085_v47 = vpop.permute.xlu1 %2084 }
 0xc27   :  { %2090 = vst.msk [vmem:[#allocation2 + $0x10] sm:$0xff] %vm1241_vm5, %v2085_v47 }
 0xc2d   :  { %v2095_v58 = vld [vmem:[#allocation2 + $0x18] sm:$0xff] }
 0xc2e   :  { %v2094_v56 = vld [vmem:[#allocation2 + $0x10] sm:$0xff] }
 0xc2f   :  { %2565 = vmatprep.mubr.f32.mxu0 %v2094_v56 }
 0xc30   :  { %2566 = vmatmul.mubr.f32.gmra.mrb[20].mxu0 %v2095_v58 }
 0xc68   :  { %v2564_v23 = vpop.f32.mrb[18].mxu0 }
 0xc69   :  { %v2191_v44 = vadd.f32 %v2564_v23, %v2275_v60  ;;  %v2185_v48 = vpop.f32.mrb[19].mxu0 }
 0xc6a   :  { %v2186_v57 = vadd.f32 %v2275_v60, %v2185_v48 }
 0xc6b   :  { %2205 = vst [vmem:[#allocation9 + $0x8] sm:$0xff] %v2191_v44 }
 0xc6c   :  { %2204 = vst [vmem:[#allocation9] sm:$0xff] %v2186_v57 }
 0xd03   :  { %v2567_v61 = vpop.f32.mrb[20].mxu0 }
 0xd04   :  { %v2201_v15 = vadd.f32 %v2567_v61, %v2275_v60  ;;  %v2195_v1 = vpop.f32.mrb[21].mxu0 }
 0xd05   :  { %v2196_v29 = vadd.f32 %v2275_v60, %v2195_v1 }
 0xd06   :  { %2207 = vst [vmem:[#allocation9 + $0x18] sm:$0xff] %v2201_v15 }
 0xd07   :  { %2206 = vst [vmem:[#allocation9 + $0x10] sm:$0xff] %v2196_v29 }
 0xd08   :  { %2973 = shalt.err (!%p2970_p0)
}
 0xd09   :  { %s2974_s28 = scalar_lea.hbm %s3479_s7, 512 }
 0xd0a   :  { %p2975_p1 = scmp.ne.s32.totalorder %s3479_s7, %s2974_s28  ;;  %p2978_p2 = scmp.lt.u32.totalorder %s2974_s28, %s3479_s7 }
 0xd0c   :  { %p2980_p3 = pnand %p2978_p2, %p2975_p1 }
 0xd0e   :  { %2983 = shalt.err (!%p2980_p3)
}
 0xd0f   :  { %2219 = dma.vmem_to_hbm [thread:$0]  %s2214_s24, 512, %s3479_s7, [#allocation5], %s2994_s1, %s2994_s1, %s2995_s25  }
 0xd10   :  { %2988 = dma.done.wait [#allocation5], 512  }
 0xd11   :  { %2989 = vsyncadd [#allocation5], 4294966784 }
 0xd12   :  { %2223 = vsyncpa [#allocation4], 1 }
 0xd13   :  { %2224 = vsyncpa [#allocation7], 1 }
 0xd14   :  { %2225 = vsyncpa [#allocation5], 1 }

</bundles_post_ra>
